<compile_context>
chip_gen: v6e
topology: v6e:2x2x1
jax: 0.10.0
libtpu: 0.0.40
codegen_flags: <defaults>
</compile_context>

<pallas_src>
import functools

import jax
import jax.numpy as jnp
from jax.experimental import pallas as pl
from jax.experimental.pallas import tpu as pltpu

PAD = 3                 # unified spatial pad (max reach: dilated 3x3 conv)
LANE = 128              # canvas M is rounded up to a lane multiple
MATMUL_DTYPE = jnp.bfloat16
BN_EPS_ATT = 1e-3       # BasicConv2d uses BatchNorm2d(eps=0.001)
BN_EPS_MS = 1e-5        # Multiscale uses BatchNorm2d default eps=1e-5

# Canonical tap orderings shared by the weight packer and the kernel.
_MS_TAPS = tuple(sorted(
    {(dy, dx) for dy in (-1, 0, 1) for dx in (-1, 0, 1)} |
    {(3 * dy, 3 * dx) for dy in (-1, 0, 1) for dx in (-1, 0, 1)}))   # 17 taps
_ATT_TAPS = tuple((dy, dx) for dy in (-1, 0, 1) for dx in (-1, 0, 1))  # 9 taps
_ATT_CENTER = _ATT_TAPS.index((0, 0))                                  # == 4


def _round_up(x, m):
    return ((x + m - 1) // m) * m


# ------------------------------ Pallas kernels ------------------------------

def _upconv_kernel(x_ref, w_ref, b_ref, o_ref):
    """ConvTranspose2d(k=2, s=2) as a single lane-dense matmul.

    x: (Cin, M1) bf16, w: (4*Cout, Cin) bf16, b: (4*Cout, 1) f32 -> bf16 out.
    """
    y = jnp.dot(w_ref[...], x_ref[...], preferred_element_type=jnp.float32)
    o_ref[...] = (y + b_ref[...]).astype(o_ref.dtype)


def _up_fused_kernel(x2_ref, x1_ref, valid_ref,
                     w_ms_ref, b_ms_ref,
                     w_a1_ref, b_a1_ref, wpsi1_ref, bpsi1_ref,
                     w_a2_ref, b_a2_ref, wpsi2_ref, bpsi2_ref,
                     o_ref, *, wp, m_size, cout, sub):
    """Fused Multiscale + Attention#1 + Attention#2 on the resident canvas."""
    valid = valid_ref[...]                        # (1, M) f32, 1 at real pixels
    x2 = x2_ref[...].astype(jnp.float32)          # (C2, M) skip-connection canvas
    x1 = x1_ref[...].astype(jnp.float32)          # (C1, M) upsampled canvas

    def shift(v, dy, dx):                         # v[:, m] -> v[:, m + dy*wp + dx]
        off = dy * wp + dx
        return pltpu.roll(v, (-off) % m_size, axis=1) if off else v

    # ---------------- Multiscale (one K-stacked matmul) ----------------
    # separable 3x3/stride-1 max-pool (4 rolls) with -1e30 sentinel at pad lanes
    xneg = x2 + (valid - 1.0) * 1e30
    hmax = jnp.maximum(jnp.maximum(xneg, shift(xneg, 0, 1)), shift(xneg, 0, -1))
    mp = jnp.maximum(jnp.maximum(hmax, shift(hmax, 1, 0)), shift(hmax, -1, 0))
    mp = jnp.where(valid > 0.0, mp, 0.0)          # mask sentinel BEFORE the MXU

    kstack = jnp.concatenate(
        [shift(x2, dy, dx) for dy, dx in _MS_TAPS] + [mp], axis=0)  # (18*C2, M)
    ms = jnp.dot(w_ms_ref[...], kstack.astype(MATMUL_DTYPE),
                 preferred_element_type=jnp.float32)
    ms = jnp.maximum(ms + b_ms_ref[...], 0.0) * valid              # (cout, M)

    # ---------------- Attention block (used twice) ----------------
    rv = _round_up(cout, 8)          # start of q rows in the packed output
    rq = _round_up(sub, 8)           # padded q/k row-group size

    def attention(xin, w, b, wpsi, bpsi):
        # One matmul for v(3x3) + q(1x1) + k(1x1): 9 K-stacked taps.
        kst = jnp.concatenate([shift(xin, dy, dx) for dy, dx in _ATT_TAPS],
                              axis=0)                              # (9*Cin, M)
        y = jnp.dot(w, kst.astype(MATMUL_DTYPE),
                    preferred_element_type=jnp.float32)
        y = jnp.maximum(y + b, 0.0)            # ReLU for v/q/k (pad rows stay 0)
        v = y[:cout]
        q = y[rv:rv + rq]
        k = y[rv + rq:rv + 2 * rq]
        t = jnp.maximum(q * k, 0.0)            # psi's leading ReLU (free)
        # psi 1x1 conv (sub -> 1) as a VPU/XLU weighted sublane sum (BN folded).
        psi = jnp.sum(t * wpsi, axis=0, keepdims=True) + bpsi
        psi = jax.nn.sigmoid(jnp.maximum(psi, 0.0))                # (1, M)
        # gate + re-zero the padding ring so the next stage sees zero pad
        return psi * v * valid

    # concat([ms, x1]) stays in VMEM -- no HBM round trip.
    a1 = attention(jnp.concatenate([ms, x1], axis=0),
                   w_a1_ref[...], b_a1_ref[...], wpsi1_ref[...], bpsi1_ref[...])
    a2 = attention(a1,
                   w_a2_ref[...], b_a2_ref[...], wpsi2_ref[...], bpsi2_ref[...])
    o_ref[...] = a2.astype(o_ref.dtype)


# --------------------------- parameter preparation ---------------------------

def _fold_conv(p, eps):
    """Fold eval-mode BatchNorm into the conv. Returns f32 (w, b)."""
    s = p["gamma"] * jax.lax.rsqrt(p["var"] + eps)
    w = p["w"] * s[:, None, None, None]
    b = (p["b"] - p["mean"]) * s + p["beta"]
    return w, b


def _pack_ms(p):
    """Pack the four Multiscale branches into one K-stacked weight.

    Returns w: (4*sub, 18*cin) bf16 (17 tap blocks + 1 pooled block),
            b: (4*sub, 1) f32.
    """
    cin = p["s0"]["w"].shape[1]
    sub = p["s0"]["w"].shape[0]
    w0, b0 = _fold_conv(p["s0"], BN_EPS_MS)
    w1, b1 = _fold_conv(p["s1"], BN_EPS_MS)
    w2, b2 = _fold_conv(p["s2"], BN_EPS_MS)
    w3, b3 = _fold_conv(p["s3"], BN_EPS_MS)
    ntaps = len(_MS_TAPS)
    slot = {t: i for i, t in enumerate(_MS_TAPS)}

    w = jnp.zeros((4 * sub, (ntaps + 1) * cin), jnp.float32)
    s0_slot = slot[(0, 0)]
    w = w.at[0:sub, s0_slot * cin:(s0_slot + 1) * cin].add(w0[:, :, 0, 0])
    for a in range(3):
        for b_ in range(3):
            s = slot[(a - 1, b_ - 1)]
            w = w.at[sub:2 * sub, s * cin:(s + 1) * cin].add(w1[:, :, a, b_])
    for a in range(3):
        for b_ in range(3):
            s = slot[(3 * (a - 1), 3 * (b_ - 1))]
            w = w.at[2 * sub:3 * sub, s * cin:(s + 1) * cin].add(w2[:, :, a, b_])
    w = w.at[3 * sub:4 * sub, ntaps * cin:(ntaps + 1) * cin].add(w3[:, :, 0, 0])
    b = jnp.concatenate([b0, b1, b2, b3])[:, None]
    return w.astype(MATMUL_DTYPE), b


def _pack_att(p):
    """Pack an Attention block: v's 9 taps + q/k center-tap rows, one weight.

    Output rows: [v (cout), pad, q (sub, padded to 8), k (sub, padded to 8)].
    """
    cout, cin = p["v"]["w"].shape[0], p["v"]["w"].shape[1]
    sub = p["q"]["w"].shape[0]
    rv, rq = _round_up(cout, 8), _round_up(sub, 8)
    rows = rv + 2 * rq

    wq, bq = _fold_conv(p["q"], BN_EPS_ATT)
    wk, bk = _fold_conv(p["k"], BN_EPS_ATT)
    wv, bv = _fold_conv(p["v"], BN_EPS_ATT)
    wpsi, bpsi = _fold_conv(p["psi"], BN_EPS_ATT)

    w = jnp.zeros((rows, 9 * cin), jnp.float32)
    w = w.at[:cout, :].set(jnp.transpose(wv, (0, 2, 3, 1)).reshape(cout, 9 * cin))
    c0 = _ATT_CENTER * cin
    w = w.at[rv:rv + sub, c0:c0 + cin].set(wq[:, :, 0, 0])
    w = w.at[rv + rq:rv + rq + sub, c0:c0 + cin].set(wk[:, :, 0, 0])

    b = jnp.zeros((rows,), jnp.float32)
    b = b.at[:cout].set(bv)
    b = b.at[rv:rv + sub].set(bq)
    b = b.at[rv + rq:rv + rq + sub].set(bk)

    wpsi_pad = jnp.zeros((rq, 1), jnp.float32).at[:sub, 0].set(wpsi[0, :, 0, 0])
    return dict(w=w.astype(MATMUL_DTYPE), b=b[:, None],
                wpsi=wpsi_pad, bpsi=bpsi.reshape(1, 1))


def pack_up_params(params):
    """BN-fold, tap-pack and bf16-cast all weights ONCE (outside the step jit)."""
    cin_up = params["up_w"].shape[0]
    cout = params["up_w"].shape[1]
    w_up = jnp.transpose(params["up_w"], (2, 3, 1, 0)).reshape(4 * cout, cin_up)
    b_up = jnp.tile(params["up_b"], 4)[:, None]
    w_ms, b_ms = _pack_ms(params["ms"])
    a1, a2 = _pack_att(params["att1"]), _pack_att(params["att2"])
    return dict(
        w_up=w_up.astype(MATMUL_DTYPE), b_up=b_up,
        w_ms=w_ms, b_ms=b_ms,
        w_a1=a1["w"], b_a1=a1["b"], wpsi1=a1["wpsi"], bpsi1=a1["bpsi"],
        w_a2=a2["w"], b_a2=a2["b"], wpsi2=a2["wpsi"], bpsi2=a2["bpsi"],
    )


# ------------------------------ canvas helpers -------------------------------

def _to_canvas(x, hp, wp, m_size):
    """(C, N, H, W) -> (C, m_size) zero-padded, flattened canvas."""
    c, n, h, w = x.shape
    xp = jnp.pad(x, ((0, 0), (0, 0), (PAD, PAD), (PAD, PAD)))
    flat = xp.reshape(c, n * hp * wp)
    return jnp.pad(flat, ((0, 0), (0, m_size - n * hp * wp)))


def _from_canvas(y, n, h, w, hp, wp):
    c = y.shape[0]
    y = y[:, : n * hp * wp].reshape(c, n, hp, wp)
    return y[:, :, PAD:PAD + h, PAD:PAD + w]


# ------------------------------- module forward -------------------------------

def up_forward(packed, x1_nchw, x2_nchw):
    # bf16 before the relayout transposes (halves HBM bytes of the glue).
    x1 = jnp.transpose(x1_nchw.astype(MATMUL_DTYPE), (1, 0, 2, 3))
    x2 = jnp.transpose(x2_nchw.astype(MATMUL_DTYPE), (1, 0, 2, 3))

    cin_up, n, h1, w1 = x1.shape
    h2, w2 = x2.shape[2], x2.shape[3]
    hp, wp = h2 + 2 * PAD, w2 + 2 * PAD
    m_size = _round_up(n * hp * wp, LANE)
    cout = packed["b_ms"].shape[0]
    sub = cout // 4

    # ---- ConvTranspose2d(k=2, s=2): one lane-dense matmul, bf16 writeback ----
    m1 = n * h1 * w1
    m1p = _round_up(m1, LANE)
    x1_flat = jnp.pad(x1.reshape(cin_up, m1), ((0, 0), (0, m1p - m1)))
    y_up = pl.pallas_call(
        _upconv_kernel,
        out_shape=jax.ShapeDtypeStruct((4 * cout, m1p), MATMUL_DTYPE),
    )(x1_flat, packed["w_up"], packed["b_up"])
    # (a*2+b)*cout + o , n*h1*w1 + i*w1 + j  ->  (o, n, 2i+a, 2j+b)
    y_up = y_up[:, :m1].reshape(2, 2, cout, n, h1, w1)
    y_up = jnp.transpose(y_up, (2, 3, 4, 0, 5, 1)).reshape(cout, n, 2 * h1, 2 * w1)

    # F.pad so the upsampled map matches x2's spatial size.
    dh, dw = h2 - y_up.shape[2], w2 - y_up.shape[3]
    y_up = jnp.pad(y_up, ((0, 0), (0, 0),
                          (dh // 2, dh - dh // 2), (dw // 2, dw - dw // 2)))

    # ---- canvases: pad once at the top, slice once at the very end ----------
    valid = _to_canvas(jnp.ones((1, n, h2, w2), jnp.float32), hp, wp, m_size)
    x2_canvas = _to_canvas(x2, hp, wp, m_size)
    x1_canvas = _to_canvas(y_up, hp, wp, m_size)

    # ---- Multiscale + Attention x 2: ONE fused kernel ------------------------
    # TODO(synk): for production sizes add a parallel M grid axis (v7x dual TC)
    # with a 3*wp+3 lane halo; at these toy sizes a single step is optimal.
    kernel = functools.partial(_up_fused_kernel, wp=wp, m_size=m_size,
                               cout=cout, sub=sub)
    y = pl.pallas_call(
        kernel,
        out_shape=jax.ShapeDtypeStruct((cout, m_size), jnp.float32),
    )(x2_canvas, x1_canvas, valid,
      packed["w_ms"], packed["b_ms"],
      packed["w_a1"], packed["b_a1"], packed["wpsi1"], packed["bpsi1"],
      packed["w_a2"], packed["b_a2"], packed["wpsi2"], packed["bpsi2"])

    out = _from_canvas(y, n, h2, w2, hp, wp)               # (Cout, N, H, W)
    return jnp.transpose(out, (1, 0, 2, 3))                # -> NCHW


# ------------------------------- parameter init -------------------------------

def init_conv(key, cin, cout, k):
    ks = jax.random.split(key, 6)
    return dict(
        w=0.1 * jax.random.normal(ks[0], (cout, cin, k, k), jnp.float32),
        b=0.1 * jax.random.normal(ks[1], (cout,), jnp.float32),
        gamma=1.0 + 0.1 * jax.random.normal(ks[2], (cout,), jnp.float32),
        beta=0.1 * jax.random.normal(ks[3], (cout,), jnp.float32),
        mean=0.1 * jax.random.normal(ks[4], (cout,), jnp.float32),
        var=1.0 + 0.1 * jax.random.uniform(ks[5], (cout,), jnp.float32),
    )


def init_attention(key, cin, cout):
    sub = cout // 4
    k1, k2, k3, k4 = jax.random.split(key, 4)
    return dict(q=init_conv(k1, cin, sub, 1),
                k=init_conv(k2, cin, sub, 1),
                v=init_conv(k3, cin, cout, 3),
                psi=init_conv(k4, sub, 1, 1))


def init_up(key, cin, cout):
    ks = jax.random.split(key, 8)
    sub = cout // 4
    return dict(
        up_w=0.1 * jax.random.normal(ks[0], (cin, cout, 2, 2), jnp.float32),
        up_b=0.1 * jax.random.normal(ks[1], (cout,), jnp.float32),
        ms=dict(s0=init_conv(ks[2], cout, sub, 1),
                s1=init_conv(ks[3], cout, sub, 3),
                s2=init_conv(ks[4], cout, sub, 3),
                s3=init_conv(ks[5], cout, sub, 1)),
        att1=init_attention(ks[6], cin, cout),
        att2=init_attention(ks[7], cout, cout),
    )


# ------------------------------------ main ------------------------------------

if __name__ == "__main__":
    in_channels, out_channels = 16, 8          # U-Net convention: in = 2 * out
    B, H1, W1 = 2, 8, 8                        # x1 spatial (pre-upsample)
    H2, W2 = 16, 16                            # x2 spatial

    key = jax.random.PRNGKey(0)
    kp, kx1, kx2 = jax.random.split(key, 3)
    params = init_up(kp, in_channels, out_channels)
    packed = pack_up_params(params)            # BN fold + tap packing, ONCE

    x1 = jax.random.normal(kx1, (B, in_channels, H1, W1), jnp.float32)   # NCHW
    x2 = jax.random.normal(kx2, (B, out_channels, H2, W2), jnp.float32)  # NCHW

    out = jax.jit(up_forward)(packed, x1, x2)
    out = jax.block_until_ready(out)
    assert out.shape == (B, out_channels, H2, W2), out.shape
    assert jnp.all(jnp.isfinite(out))
    print("KERNEL_OK")
</pallas_src>

<mosaic_0001>
module attributes {stable_mosaic.version = 11 : i64} {
  func.func @_upconv_kernel(%arg0: memref<16x128xbf16, #tpu.memory_space<vmem>>, %arg1: memref<32x16xbf16, #tpu.memory_space<vmem>>, %arg2: memref<32x1xf32, #tpu.memory_space<vmem>>, %arg3: memref<32x128xbf16, #tpu.memory_space<vmem>>) attributes {dimension_semantics = [], scalar_prefetch = 0 : i64, scratch_operands = 0 : i64, tpu.core_type = #tpu.core_type<tc>} {
    %c0 = arith.constant 0 : index
    %c0_0 = arith.constant 0 : index
    %0 = vector.load %arg1[%c0, %c0_0] : memref<32x16xbf16, #tpu.memory_space<vmem>>, vector<32x16xbf16>
    %c0_1 = arith.constant 0 : index
    %c0_2 = arith.constant 0 : index
    %1 = vector.load %arg0[%c0_1, %c0_2] : memref<16x128xbf16, #tpu.memory_space<vmem>>, vector<16x128xbf16>
    %cst = arith.constant dense<0.000000e+00> : vector<32x128xf32>
    %2 = tpu.matmul %0, %1, %cst {dimension_numbers = #tpu.dot_dimension_numbers<[1], [0], [0], [1], [0, 0, 1, 1], [], []>} : vector<32x16xbf16>, vector<16x128xbf16>, vector<32x128xf32> -> vector<32x128xf32>
    %c0_3 = arith.constant 0 : index
    %c0_4 = arith.constant 0 : index
    %3 = vector.load %arg2[%c0_3, %c0_4] : memref<32x1xf32, #tpu.memory_space<vmem>>, vector<32x1xf32>
    %4 = vector.broadcast %3 : vector<32x1xf32> to vector<32x128xf32>
    %5 = arith.addf %2, %4 : vector<32x128xf32>
    %6 = arith.truncf %5 : vector<32x128xf32> to vector<32x128xbf16>
    %c0_5 = arith.constant 0 : index
    %c0_6 = arith.constant 0 : index
    %7 = vector.load %arg3[%c0_5, %c0_6] : memref<32x128xbf16, #tpu.memory_space<vmem>>, vector<32x128xbf16>
    tpu.vector_store %arg3[%c0_5, %c0_6], %6 {strides = array<i32>} : memref<32x128xbf16, #tpu.memory_space<vmem>>, vector<32x128xbf16>,
    return
  }
}

module attributes {stable_mosaic.version = 11 : i64} {
  func.func @_up_fused_kernel(%arg0: memref<8x1024xbf16, #tpu.memory_space<vmem>>, %arg1: memref<8x1024xbf16, #tpu.memory_space<vmem>>, %arg2: memref<1x1024xf32, #tpu.memory_space<vmem>>, %arg3: memref<8x144xbf16, #tpu.memory_space<vmem>>, %arg4: memref<8x1xf32, #tpu.memory_space<vmem>>, %arg5: memref<24x144xbf16, #tpu.memory_space<vmem>>, %arg6: memref<24x1xf32, #tpu.memory_space<vmem>>, %arg7: memref<8x1xf32, #tpu.memory_space<vmem>>, %arg8: memref<1x1xf32, #tpu.memory_space<vmem>>, %arg9: memref<24x72xbf16, #tpu.memory_space<vmem>>, %arg10: memref<24x1xf32, #tpu.memory_space<vmem>>, %arg11: memref<8x1xf32, #tpu.memory_space<vmem>>, %arg12: memref<1x1xf32, #tpu.memory_space<vmem>>, %arg13: memref<8x1024xf32, #tpu.memory_space<vmem>>) attributes {dimension_semantics = [], scalar_prefetch = 0 : i64, scratch_operands = 0 : i64, tpu.core_type = #tpu.core_type<tc>} {
    %c0 = arith.constant 0 : index
    %c0_0 = arith.constant 0 : index
    %0 = vector.load %arg2[%c0, %c0_0] : memref<1x1024xf32, #tpu.memory_space<vmem>>, vector<1x1024xf32>
    %c0_1 = arith.constant 0 : index
    %c0_2 = arith.constant 0 : index
    %1 = vector.load %arg0[%c0_1, %c0_2] : memref<8x1024xbf16, #tpu.memory_space<vmem>>, vector<8x1024xbf16>
    %2 = arith.extf %1 : vector<8x1024xbf16> to vector<8x1024xf32>
    %c0_3 = arith.constant 0 : index
    %c0_4 = arith.constant 0 : index
    %3 = vector.load %arg1[%c0_3, %c0_4] : memref<8x1024xbf16, #tpu.memory_space<vmem>>, vector<8x1024xbf16>
    %4 = arith.extf %3 : vector<8x1024xbf16> to vector<8x1024xf32>
    %cst = arith.constant 1.000000e+00 : f32
    %5 = vector.broadcast %cst : f32 to vector<1x1024xf32>
    %6 = arith.subf %0, %5 : vector<1x1024xf32>
    %cst_5 = arith.constant 1.000000e+30 : f32
    %7 = vector.broadcast %cst_5 : f32 to vector<1x1024xf32>
    %8 = arith.mulf %6, %7 : vector<1x1024xf32>
    %9 = vector.broadcast %8 : vector<1x1024xf32> to vector<8x1024xf32>
    %10 = arith.addf %2, %9 : vector<8x1024xf32>
    %c1023_i32 = arith.constant 1023 : i32
    %11 = tpu.dynamic_rotate %10 by %c1023_i32 dim 1 : vector<8x1024xf32>, i32 -> vector<8x1024xf32>
    %12 = arith.maximumf %10, %11 : vector<8x1024xf32>
    %c1_i32 = arith.constant 1 : i32
    %13 = tpu.dynamic_rotate %10 by %c1_i32 dim 1 : vector<8x1024xf32>, i32 -> vector<8x1024xf32>
    %14 = arith.maximumf %12, %13 : vector<8x1024xf32>
    %c1002_i32 = arith.constant 1002 : i32
    %15 = tpu.dynamic_rotate %14 by %c1002_i32 dim 1 : vector<8x1024xf32>, i32 -> vector<8x1024xf32>
    %16 = arith.maximumf %14, %15 : vector<8x1024xf32>
    %c22_i32 = arith.constant 22 : i32
    %17 = tpu.dynamic_rotate %14 by %c22_i32 dim 1 : vector<8x1024xf32>, i32 -> vector<8x1024xf32>
    %18 = arith.maximumf %16, %17 : vector<8x1024xf32>
    %cst_6 = arith.constant 0.000000e+00 : f32
    %19 = vector.broadcast %cst_6 : f32 to vector<1x1024xf32>
    %20 = arith.cmpf ogt, %0, %19 : vector<1x1024xf32>
    %cst_7 = arith.constant 0.000000e+00 : f32
    %21 = vector.shape_cast %20 : vector<1x1024xi1> to vector<1x1024xi1>
    %22 = vector.broadcast %21 : vector<1x1024xi1> to vector<8x1024xi1>
    %23 = vector.broadcast %cst_7 : f32 to vector<8x1024xf32>
    %24 = arith.select %22, %18, %23 : vector<8x1024xi1>, vector<8x1024xf32>
    %c69_i32 = arith.constant 69 : i32
    %25 = tpu.dynamic_rotate %2 by %c69_i32 dim 1 : vector<8x1024xf32>, i32 -> vector<8x1024xf32>
    %c66_i32 = arith.constant 66 : i32
    %26 = tpu.dynamic_rotate %2 by %c66_i32 dim 1 : vector<8x1024xf32>, i32 -> vector<8x1024xf32>
    %c63_i32 = arith.constant 63 : i32
    %27 = tpu.dynamic_rotate %2 by %c63_i32 dim 1 : vector<8x1024xf32>, i32 -> vector<8x1024xf32>
    %c23_i32 = arith.constant 23 : i32
    %28 = tpu.dynamic_rotate %2 by %c23_i32 dim 1 : vector<8x1024xf32>, i32 -> vector<8x1024xf32>
    %c22_i32_8 = arith.constant 22 : i32
    %29 = tpu.dynamic_rotate %2 by %c22_i32_8 dim 1 : vector<8x1024xf32>, i32 -> vector<8x1024xf32>
    %c21_i32 = arith.constant 21 : i32
    %30 = tpu.dynamic_rotate %2 by %c21_i32 dim 1 : vector<8x1024xf32>, i32 -> vector<8x1024xf32>
    %c3_i32 = arith.constant 3 : i32
    %31 = tpu.dynamic_rotate %2 by %c3_i32 dim 1 : vector<8x1024xf32>, i32 -> vector<8x1024xf32>
    %c1_i32_9 = arith.constant 1 : i32
    %32 = tpu.dynamic_rotate %2 by %c1_i32_9 dim 1 : vector<8x1024xf32>, i32 -> vector<8x1024xf32>
    %c1023_i32_10 = arith.constant 1023 : i32
    %33 = tpu.dynamic_rotate %2 by %c1023_i32_10 dim 1 : vector<8x1024xf32>, i32 -> vector<8x1024xf32>
    %c1021_i32 = arith.constant 1021 : i32
    %34 = tpu.dynamic_rotate %2 by %c1021_i32 dim 1 : vector<8x1024xf32>, i32 -> vector<8x1024xf32>
    %c1003_i32 = arith.constant 1003 : i32
    %35 = tpu.dynamic_rotate %2 by %c1003_i32 dim 1 : vector<8x1024xf32>, i32 -> vector<8x1024xf32>
    %c1002_i32_11 = arith.constant 1002 : i32
    %36 = tpu.dynamic_rotate %2 by %c1002_i32_11 dim 1 : vector<8x1024xf32>, i32 -> vector<8x1024xf32>
    %c1001_i32 = arith.constant 1001 : i32
    %37 = tpu.dynamic_rotate %2 by %c1001_i32 dim 1 : vector<8x1024xf32>, i32 -> vector<8x1024xf32>
    %c961_i32 = arith.constant 961 : i32
    %38 = tpu.dynamic_rotate %2 by %c961_i32 dim 1 : vector<8x1024xf32>, i32 -> vector<8x1024xf32>
    %c958_i32 = arith.constant 958 : i32
    %39 = tpu.dynamic_rotate %2 by %c958_i32 dim 1 : vector<8x1024xf32>, i32 -> vector<8x1024xf32>
    %c955_i32 = arith.constant 955 : i32
    %40 = tpu.dynamic_rotate %2 by %c955_i32 dim 1 : vector<8x1024xf32>, i32 -> vector<8x1024xf32>
    %41 = tpu.concatenate %25, %26, %27, %28, %29, %30, %31, %32, %2, %33, %34, %35, %36, %37, %38, %39 in 0 : vector<8x1024xf32>, vector<8x1024xf32>, vector<8x1024xf32>, vector<8x1024xf32>, vector<8x1024xf32>, vector<8x1024xf32>, vector<8x1024xf32>, vector<8x1024xf32>, vector<8x1024xf32>, vector<8x1024xf32>, vector<8x1024xf32>, vector<8x1024xf32>, vector<8x1024xf32>, vector<8x1024xf32>, vector<8x1024xf32>, vector<8x1024xf32> -> vector<128x1024xf32>
    %42 = tpu.concatenate %40, %24 in 0 : vector<8x1024xf32>, vector<8x1024xf32> -> vector<16x1024xf32>
    %43 = tpu.concatenate %41, %42 in 0 : vector<128x1024xf32>, vector<16x1024xf32> -> vector<144x1024xf32>
    %c0_12 = arith.constant 0 : index
    %c0_13 = arith.constant 0 : index
    %44 = vector.load %arg3[%c0_12, %c0_13] : memref<8x144xbf16, #tpu.memory_space<vmem>>, vector<8x144xbf16>
    %45 = arith.truncf %43 : vector<144x1024xf32> to vector<144x1024xbf16>
    %cst_14 = arith.constant dense<0.000000e+00> : vector<8x1024xf32>
    %46 = tpu.matmul %44, %45, %cst_14 {dimension_numbers = #tpu.dot_dimension_numbers<[1], [0], [0], [1], [0, 0, 1, 1], [], []>} : vector<8x144xbf16>, vector<144x1024xbf16>, vector<8x1024xf32> -> vector<8x1024xf32>
    %c0_15 = arith.constant 0 : index
    %c0_16 = arith.constant 0 : index
    %47 = vector.load %arg4[%c0_15, %c0_16] : memref<8x1xf32, #tpu.memory_space<vmem>>, vector<8x1xf32>
    %48 = vector.broadcast %47 : vector<8x1xf32> to vector<8x1024xf32>
    %49 = arith.addf %46, %48 : vector<8x1024xf32>
    %cst_17 = arith.constant 0.000000e+00 : f32
    %50 = vector.broadcast %cst_17 : f32 to vector<8x1024xf32>
    %51 = arith.maximumf %49, %50 : vector<8x1024xf32>
    %52 = vector.broadcast %0 : vector<1x1024xf32> to vector<8x1024xf32>
    %53 = arith.mulf %51, %52 : vector<8x1024xf32>
    %54 = tpu.concatenate %53, %4 in 0 : vector<8x1024xf32>, vector<8x1024xf32> -> vector<16x1024xf32>
    %c0_18 = arith.constant 0 : index
    %c0_19 = arith.constant 0 : index
    %55 = vector.load %arg5[%c0_18, %c0_19] : memref<24x144xbf16, #tpu.memory_space<vmem>>, vector<24x144xbf16>
    %c0_20 = arith.constant 0 : index
    %c0_21 = arith.constant 0 : index
    %56 = vector.load %arg6[%c0_20, %c0_21] : memref<24x1xf32, #tpu.memory_space<vmem>>, vector<24x1xf32>
    %c0_22 = arith.constant 0 : index
    %c0_23 = arith.constant 0 : index
    %57 = vector.load %arg7[%c0_22, %c0_23] : memref<8x1xf32, #tpu.memory_space<vmem>>, vector<8x1xf32>
    %c0_24 = arith.constant 0 : index
    %c0_25 = arith.constant 0 : index
    %58 = vector.load %arg8[%c0_24, %c0_25] : memref<1x1xf32, #tpu.memory_space<vmem>>, vector<1x1xf32>
    %c23_i32_26 = arith.constant 23 : i32
    %59 = tpu.dynamic_rotate %54 by %c23_i32_26 dim 1 : vector<16x1024xf32>, i32 -> vector<16x1024xf32>
    %c22_i32_27 = arith.constant 22 : i32
    %60 = tpu.dynamic_rotate %54 by %c22_i32_27 dim 1 : vector<16x1024xf32>, i32 -> vector<16x1024xf32>
    %c21_i32_28 = arith.constant 21 : i32
    %61 = tpu.dynamic_rotate %54 by %c21_i32_28 dim 1 : vector<16x1024xf32>, i32 -> vector<16x1024xf32>
    %c1_i32_29 = arith.constant 1 : i32
    %62 = tpu.dynamic_rotate %54 by %c1_i32_29 dim 1 : vector<16x1024xf32>, i32 -> vector<16x1024xf32>
    %c1023_i32_30 = arith.constant 1023 : i32
    %63 = tpu.dynamic_rotate %54 by %c1023_i32_30 dim 1 : vector<16x1024xf32>, i32 -> vector<16x1024xf32>
    %c1003_i32_31 = arith.constant 1003 : i32
    %64 = tpu.dynamic_rotate %54 by %c1003_i32_31 dim 1 : vector<16x1024xf32>, i32 -> vector<16x1024xf32>
    %c1002_i32_32 = arith.constant 1002 : i32
    %65 = tpu.dynamic_rotate %54 by %c1002_i32_32 dim 1 : vector<16x1024xf32>, i32 -> vector<16x1024xf32>
    %c1001_i32_33 = arith.constant 1001 : i32
    %66 = tpu.dynamic_rotate %54 by %c1001_i32_33 dim 1 : vector<16x1024xf32>, i32 -> vector<16x1024xf32>
    %67 = tpu.concatenate %59, %60, %61, %62, %54, %63, %64, %65, %66 in 0 : vector<16x1024xf32>, vector<16x1024xf32>, vector<16x1024xf32>, vector<16x1024xf32>, vector<16x1024xf32>, vector<16x1024xf32>, vector<16x1024xf32>, vector<16x1024xf32>, vector<16x1024xf32> -> vector<144x1024xf32>
    %68 = arith.truncf %67 : vector<144x1024xf32> to vector<144x1024xbf16>
    %cst_34 = arith.constant dense<0.000000e+00> : vector<24x1024xf32>
    %69 = tpu.matmul %55, %68, %cst_34 {dimension_numbers = #tpu.dot_dimension_numbers<[1], [0], [0], [1], [0, 0, 1, 1], [], []>} : vector<24x144xbf16>, vector<144x1024xbf16>, vector<24x1024xf32> -> vector<24x1024xf32>
    %70 = vector.broadcast %56 : vector<24x1xf32> to vector<24x1024xf32>
    %71 = arith.addf %69, %70 : vector<24x1024xf32>
    %cst_35 = arith.constant 0.000000e+00 : f32
    %72 = vector.broadcast %cst_35 : f32 to vector<24x1024xf32>
    %73 = arith.maximumf %71, %72 : vector<24x1024xf32>
    %74 = vector.extract_strided_slice %73 {offsets = [0, 0], sizes = [8, 1024], strides = [1, 1]} : vector<24x1024xf32> to vector<8x1024xf32>
    %75 = vector.extract_strided_slice %73 {offsets = [8, 0], sizes = [8, 1024], strides = [1, 1]} : vector<24x1024xf32> to vector<8x1024xf32>
    %76 = vector.extract_strided_slice %73 {offsets = [16, 0], sizes = [8, 1024], strides = [1, 1]} : vector<24x1024xf32> to vector<8x1024xf32>
    %77 = arith.mulf %75, %76 : vector<8x1024xf32>
    %cst_36 = arith.constant 0.000000e+00 : f32
    %78 = vector.broadcast %cst_36 : f32 to vector<8x1024xf32>
    %79 = arith.maximumf %77, %78 : vector<8x1024xf32>
    %80 = vector.broadcast %57 : vector<8x1xf32> to vector<8x1024xf32>
    %81 = arith.mulf %79, %80 : vector<8x1024xf32>
    %cst_37 = arith.constant dense<0.000000e+00> : vector<1024xf32>
    %82 = vector.multi_reduction <add>, %81, %cst_37 [0] : vector<8x1024xf32> to vector<1024xf32>
    %83 = vector.shape_cast %82 : vector<1024xf32> to vector<1x1024xf32>
    %84 = vector.broadcast %58 : vector<1x1xf32> to vector<1x1024xf32>
    %85 = arith.addf %83, %84 : vector<1x1024xf32>
    %cst_38 = arith.constant 0.000000e+00 : f32
    %86 = vector.broadcast %cst_38 : f32 to vector<1x1024xf32>
    %87 = arith.maximumf %85, %86 : vector<1x1024xf32>
    %88 = arith.negf %87 : vector<1x1024xf32>
    %89 = math.exp %88 : vector<1x1024xf32>
    %cst_39 = arith.constant 1.000000e+00 : f32
    %90 = vector.broadcast %cst_39 : f32 to vector<1x1024xf32>
    %91 = arith.addf %90, %89 : vector<1x1024xf32>
    %92 = arith.divf %90, %91 : vector<1x1024xf32>
    %93 = vector.broadcast %92 : vector<1x1024xf32> to vector<8x1024xf32>
    %94 = arith.mulf %93, %74 : vector<8x1024xf32>
    %95 = vector.broadcast %0 : vector<1x1024xf32> to vector<8x1024xf32>
    %96 = arith.mulf %94, %95 : vector<8x1024xf32>
    %c0_40 = arith.constant 0 : index
    %c0_41 = arith.constant 0 : index
    %97 = vector.load %arg9[%c0_40, %c0_41] : memref<24x72xbf16, #tpu.memory_space<vmem>>, vector<24x72xbf16>
    %c0_42 = arith.constant 0 : index
    %c0_43 = arith.constant 0 : index
    %98 = vector.load %arg10[%c0_42, %c0_43] : memref<24x1xf32, #tpu.memory_space<vmem>>, vector<24x1xf32>
    %c0_44 = arith.constant 0 : index
    %c0_45 = arith.constant 0 : index
    %99 = vector.load %arg11[%c0_44, %c0_45] : memref<8x1xf32, #tpu.memory_space<vmem>>, vector<8x1xf32>
    %c0_46 = arith.constant 0 : index
    %c0_47 = arith.constant 0 : index
    %100 = vector.load %arg12[%c0_46, %c0_47] : memref<1x1xf32, #tpu.memory_space<vmem>>, vector<1x1xf32>
    %c23_i32_48 = arith.constant 23 : i32
    %101 = tpu.dynamic_rotate %96 by %c23_i32_48 dim 1 : vector<8x1024xf32>, i32 -> vector<8x1024xf32>
    %c22_i32_49 = arith.constant 22 : i32
    %102 = tpu.dynamic_rotate %96 by %c22_i32_49 dim 1 : vector<8x1024xf32>, i32 -> vector<8x1024xf32>
    %c21_i32_50 = arith.constant 21 : i32
    %103 = tpu.dynamic_rotate %96 by %c21_i32_50 dim 1 : vector<8x1024xf32>, i32 -> vector<8x1024xf32>
    %c1_i32_51 = arith.constant 1 : i32
    %104 = tpu.dynamic_rotate %96 by %c1_i32_51 dim 1 : vector<8x1024xf32>, i32 -> vector<8x1024xf32>
    %c1023_i32_52 = arith.constant 1023 : i32
    %105 = tpu.dynamic_rotate %96 by %c1023_i32_52 dim 1 : vector<8x1024xf32>, i32 -> vector<8x1024xf32>
    %c1003_i32_53 = arith.constant 1003 : i32
    %106 = tpu.dynamic_rotate %96 by %c1003_i32_53 dim 1 : vector<8x1024xf32>, i32 -> vector<8x1024xf32>
    %c1002_i32_54 = arith.constant 1002 : i32
    %107 = tpu.dynamic_rotate %96 by %c1002_i32_54 dim 1 : vector<8x1024xf32>, i32 -> vector<8x1024xf32>
    %c1001_i32_55 = arith.constant 1001 : i32
    %108 = tpu.dynamic_rotate %96 by %c1001_i32_55 dim 1 : vector<8x1024xf32>, i32 -> vector<8x1024xf32>
    %109 = tpu.concatenate %101, %102, %103, %104, %96, %105, %106, %107, %108 in 0 : vector<8x1024xf32>, vector<8x1024xf32>, vector<8x1024xf32>, vector<8x1024xf32>, vector<8x1024xf32>, vector<8x1024xf32>, vector<8x1024xf32>, vector<8x1024xf32>, vector<8x1024xf32> -> vector<72x1024xf32>
    %110 = arith.truncf %109 : vector<72x1024xf32> to vector<72x1024xbf16>
    %cst_56 = arith.constant dense<0.000000e+00> : vector<24x1024xf32>
    %111 = tpu.matmul %97, %110, %cst_56 {dimension_numbers = #tpu.dot_dimension_numbers<[1], [0], [0], [1], [0, 0, 1, 1], [], []>} : vector<24x72xbf16>, vector<72x1024xbf16>, vector<24x1024xf32> -> vector<24x1024xf32>
    %112 = vector.broadcast %98 : vector<24x1xf32> to vector<24x1024xf32>
    %113 = arith.addf %111, %112 : vector<24x1024xf32>
    %cst_57 = arith.constant 0.000000e+00 : f32
    %114 = vector.broadcast %cst_57 : f32 to vector<24x1024xf32>
    %115 = arith.maximumf %113, %114 : vector<24x1024xf32>
    %116 = vector.extract_strided_slice %115 {offsets = [0, 0], sizes = [8, 1024], strides = [1, 1]} : vector<24x1024xf32> to vector<8x1024xf32>
    %117 = vector.extract_strided_slice %115 {offsets = [8, 0], sizes = [8, 1024], strides = [1, 1]} : vector<24x1024xf32> to vector<8x1024xf32>
    %118 = vector.extract_strided_slice %115 {offsets = [16, 0], sizes = [8, 1024], strides = [1, 1]} : vector<24x1024xf32> to vector<8x1024xf32>
    %119 = arith.mulf %117, %118 : vector<8x1024xf32>
    %cst_58 = arith.constant 0.000000e+00 : f32
    %120 = vector.broadcast %cst_58 : f32 to vector<8x1024xf32>
    %121 = arith.maximumf %119, %120 : vector<8x1024xf32>
    %122 = vector.broadcast %99 : vector<8x1xf32> to vector<8x1024xf32>
    %123 = arith.mulf %121, %122 : vector<8x1024xf32>
    %cst_59 = arith.constant dense<0.000000e+00> : vector<1024xf32>
    %124 = vector.multi_reduction <add>, %123, %cst_59 [0] : vector<8x1024xf32> to vector<1024xf32>
    %125 = vector.shape_cast %124 : vector<1024xf32> to vector<1x1024xf32>
    %126 = vector.broadcast %100 : vector<1x1xf32> to vector<1x1024xf32>
    %127 = arith.addf %125, %126 : vector<1x1024xf32>
    %cst_60 = arith.constant 0.000000e+00 : f32
    %128 = vector.broadcast %cst_60 : f32 to vector<1x1024xf32>
    %129 = arith.maximumf %127, %128 : vector<1x1024xf32>
    %130 = arith.negf %129 : vector<1x1024xf32>
    %131 = math.exp %130 : vector<1x1024xf32>
    %cst_61 = arith.constant 1.000000e+00 : f32
    %132 = vector.broadcast %cst_61 : f32 to vector<1x1024xf32>
    %133 = arith.addf %132, %131 : vector<1x1024xf32>
    %134 = arith.divf %132, %133 : vector<1x1024xf32>
    %135 = vector.broadcast %134 : vector<1x1024xf32> to vector<8x1024xf32>
    %136 = arith.mulf %135, %116 : vector<8x1024xf32>
    %137 = vector.broadcast %0 : vector<1x1024xf32> to vector<8x1024xf32>
    %138 = arith.mulf %136, %137 : vector<8x1024xf32>
    %c0_62 = arith.constant 0 : index
    %c0_63 = arith.constant 0 : index
    %139 = vector.load %arg13[%c0_62, %c0_63] : memref<8x1024xf32, #tpu.memory_space<vmem>>, vector<8x1024xf32>
    tpu.vector_store %arg13[%c0_62, %c0_63], %138 {strides = array<i32>} : memref<8x1024xf32, #tpu.memory_space<vmem>>, vector<8x1024xf32>,
    return
  }
}

</mosaic_0001>

<bundles_post_ra>
// kernel: up_forward.2
= control target key start
LH: loop header
LB: loop body
LE: loop exit
PB: predicated region body
PF: predicated region fallthrough
CT: control target
= control target key end

     0   :  { %vm61_vm0 = vcmask 130048   ;;  %v180_v1 = vmov 0   ;;  %s230_s0 = inlined_call_operand.vmem [shape: bf16[16,128], index: 0, kind: input, shape index: {}]   ;;  %s231_s1 = inlined_call_operand.vmem [shape: bf16[32,16], index: 1, kind: input, shape index: {}]   ;;  %s232_s2 = inlined_call_operand.vmem [shape: f32[32,1], index: 2, kind: input, shape index: {}]   ;;  %s233_s3 = inlined_call_operand.vmem [shape: bf16[32,128], index: 3, kind: output, shape index: {}]  }
   0x1   :  { %v177_v0 = vld [vmem:[%s230_s0] sm:$0xff]   ;;  %176 = vset.pattern.permute.xlu1 %v180_v1  ;;  %175 = vset.pattern.permute.xlu0 %v180_v1  ;;  %v179_v3 = vld [vmem:[%s231_s1 + $0x8] sm:$0xff]   ;;  %v23_v4 = vld [vmem:[%s232_s2 + $0x10] sm:$0xff] }
   0x2   :  { %v178_v2 = vld [vmem:[%s231_s1] sm:$0xff]   ;;  %168 = vmatprep.subr.bf16.mxu0 %v177_v0  ;;  %37 = vperm.xlu1 %176, %v23_v4   ;;  %v24_v6 = vld [vmem:[%s232_s2 + $0x18] sm:$0xff]  ;;  %v22_v7 = vld [vmem:[%s232_s2 + $0x8] sm:$0xff] }
   0x3   :  { %169 = vmatpush3.bf16.msra.mxu0 %v177_v0  ;;  %170 = vmatprep.mubr.msk.bf16.mxu0 %vm61_vm0, %v178_v2  ;;  %v21_v5 = vld [vmem:[%s232_s2] sm:$0xff] }
   0x4   :  { %27 = vperm.xlu0 %175, %v21_v5  }
   0x6   :  { %171 = vmatmul.mubr.msk.bf16.vlgmr.msra.gmra.mxu0 %vm61_vm0, %v179_v3  ;;  %42 = vperm.xlu1 %176, %v24_v6  }
   0x8   :  { %32 = vperm.xlu0 %175, %v22_v7  }
  0x7d   :  { %v38_v8 = vpop.permute.xlu1 %37 }
  0x7f   :  { %v28_v9 = vpop.permute.xlu0 %27 }
  0x81   :  { %v43_v12 = vpop.permute.xlu1 %42 }
  0x83   :  { %v33_v16 = vpop.permute.xlu0 %32 }
  0xc6   :  { %v172_v10 = vpop.f32.mrf.mxu0 }
  0xc7   :  { %v111_v14 = vadd.f32 %v172_v10, %v38_v8 }
  0xc8   :  { %v102_v11 = vpop.f32.mrf.mxu0 }
  0xc9   :  { %v103_v18 = vadd.f32 %v102_v11, %v28_v9 }
  0xca   :  { %v173_v13 = vpop.f32.mrf.mxu0 }
  0xcb   :  { %v114_v15 = vadd.f32 %v173_v13, %v43_v12 }
  0xcc   :  { %v105_v17 = vpop.f32.mrf.mxu0 }
  0xcd   :  { %v162_v19 = vpack.c.bf16 %v114_v15, %v111_v14  ;;  %v106_v20 = vadd.f32 %v105_v17, %v33_v16 }
  0xcf   :  { %164 = vst [vmem:[%s233_s3 + $0x8] sm:$0xff] %v162_v19   ;;  %v157_v21 = vpack.c.bf16 %v106_v20, %v103_v18 }
  0xd1   :  { %158 = vst [vmem:[%s233_s3] sm:$0xff] %v157_v21  }

// kernel: up_forward.3
= control target key start
LH: loop header
LB: loop body
LE: loop exit
PB: predicated region body
PF: predicated region fallthrough
CT: control target
= control target key end

     0   :  { %v77_v0 = vlaneseq  ;;  %s3618_s18 = smov 1   ;;  %s3619_s19 = smov 65   ;;  %vm6767_vm6 = vcmask 130048   ;;  %s6702_s0 = inlined_call_operand.vmem [shape: bf16[8,1024], index: 0, kind: input, shape index: {}]   ;;  %s6703_s2 = inlined_call_operand.vmem [shape: f32[1,1024], index: 2, kind: input, shape index: {}]   ;;  %s6704_s3 = inlined_call_operand.vmem [shape: bf16[8,144], index: 3, kind: input, shape index: {}]   ;;  %s6705_s4 = inlined_call_operand.vmem [shape: f32[8,1], index: 4, kind: input, shape index: {}]   ;;  %s6706_s1 = inlined_call_operand.vmem [shape: bf16[8,1024], index: 1, kind: input, shape index: {}]   ;;  %s6707_s5 = inlined_call_operand.vmem [shape: bf16[24,144], index: 5, kind: input, shape index: {}]   ;;  %s6708_s6 = inlined_call_operand.vmem [shape: f32[24,1], index: 6, kind: input, shape index: {}]   ;;  %s6709_s7 = inlined_call_operand.vmem [shape: f32[8,1], index: 7, kind: input, shape index: {}]   ;;  %s6710_s8 = inlined_call_operand.<no memory space> [shape: f32[1,1], index: 8, kind: input, shape index: {}]   ;;  %s6711_s12 = inlined_call_operand.<no memory space> [shape: f32[1,1], index: 12, kind: input, shape index: {}]   ;;  %s6712_s9 = inlined_call_operand.vmem [shape: bf16[24,72], index: 9, kind: input, shape index: {}]   ;;  %s6713_s10 = inlined_call_operand.vmem [shape: f32[24,1], index: 10, kind: input, shape index: {}]   ;;  %s6714_s11 = inlined_call_operand.vmem [shape: f32[8,1], index: 11, kind: input, shape index: {}]   ;;  %s6715_s13 = inlined_call_operand.vmem [shape: f32[8,1024], index: 13, kind: output, shape index: {}]  }
   0x1   :  { %v3708_v1 = vld [vmem:[%s6703_s2] sm:$0xff]  ;;  %v51_v3 = vld [vmem:[%s6702_s0 + $0x8] sm:$0xff]  ;;  %v53_v7 = vld [vmem:[%s6702_s0 + $0x18] sm:$0xff]  ;;  %s3620_s20 = smov 62   ;;  %s3621_s21 = smov 106  }
   0x2   :  { %v50_v2 = vld [vmem:[%s6702_s0] sm:$0xff]  ;;  %v2610_v4 = vadd.f32 -1.0, %v3708_v1  ;;  %v78_v5 = vshrl.u32 %v77_v0, 7  ;;  %v52_v8 = vld [vmem:[%s6702_s0 + $0x10] sm:$0xff]  ;;  %v3726_v10 = vunpack.c.l.bf16 %v51_v3  ;;  %v3732_v13 = vunpack.c.h.bf16 %v51_v3  ;;  %s3617_s0 = smov 127   ;;  %s3622_s22 = smov 105  }
   0x3   :  { %v3724_v9 = vunpack.c.h.bf16 %v50_v2  ;;  %v3734_v14 = vunpack.c.l.bf16 %v50_v2  ;;  %v3738_v17 = vunpack.c.h.bf16 %v53_v7  ;;  %v3740_v18 = vunpack.c.h.bf16 %v52_v8  ;;  %s3623_s23 = smov 125   ;;  %s3624_s24 = smov 107  }
   0x4   :  { %v75_v6 = vmul.f32 1e+30, %v2610_v4  ;;  %v3728_v11 = vsub.s32 1, %v78_v5  ;;  %v3730_v12 = vsub.s32 2, %v78_v5  ;;  %v3742_v19 = vsub.s32 0, %v78_v5  ;;  %s3625_s25 = smov 3  }
   0x5   :  { %6843 = vst [vmem:[#allocation5_spill] sm:$0xff] %v3738_v17  ;;  %6844 = vst [vmem:[#allocation6_spill] sm:$0xff] %v3740_v18  ;;  %v3744_v20 = vsub.s32 7, %v78_v5  ;;  %v3746_v21 = vsub.s32 3, %v78_v5  ;;  %v3748_v22 = vunpack.c.l.bf16 %v52_v8  ;;  %v3756_v25 = vsub.s32 5, %v78_v5  ;;  %s3626_s26 = smov 21  }
   0x6   :  { %6842 = vst [vmem:[#allocation4_spill] sm:$0xff] %v3728_v11  ;;  %v84_v15 = vrot.slane %v75_v6, %v3728_v11  ;;  %v88_v16 = vrot.slane %v75_v6, %v3730_v12  ;;  %6845 = vst [vmem:[#allocation7_spill] sm:$0xff] %v3742_v19  ;;  %v3758_v26 = vsub.s32 6, %v78_v5  ;;  %v80_v27 = vrot.slane %v75_v6, %v3742_v19  ;;  %s3627_s27 = smov 22   ;;  %s3628_s28 = smov 23  }
   0x7   :  { %6846 = vst [vmem:[#allocation8_spill] sm:$0xff] %v3744_v20  ;;  %6847 = vst [vmem:[#allocation9_spill] sm:$0xff] %v3746_v21  ;;  %v108_v28 = vrot.slane %v75_v6, %v3744_v20  ;;  %v92_v29 = vrot.slane %v75_v6, %v3746_v21  ;;  %v3763_v30 = vsub.s32 4, %v78_v5  ;;  %v3767_v32 = vunpack.c.l.bf16 %v53_v7  ;;  %s3629_s29 = smov 63   ;;  %s3630_s30 = smov 66  }
   0x8   :  { %v3751_v23 = vadd.f32 %v84_v15, %v3724_v9  ;;  %v3754_v24 = vadd.f32 %v88_v16, %v3726_v10  ;;  %6848 = vst [vmem:[#allocation10_spill] sm:$0xff] %v3758_v26  ;;  %v100_v33 = vrot.slane %v75_v6, %v3756_v25  ;;  %v104_v34 = vrot.slane %v75_v6, %v3758_v26  ;;  %s3631_s14 = smov 69   ;;  %s3632_s15 = smov 59  }
   0x9   :  { %6849 = vst [vmem:[#allocation11_spill] sm:$0xff] %v3763_v30  ;;  %6850 = vst [vmem:[#allocation12_spill] sm:$0xff] %v3767_v32  ;;  %v3772_v35 = vadd.f32 %v80_v27, %v3734_v14  ;;  %v3775_v36 = vadd.f32 %v108_v28, %v3738_v17  ;;  %v3778_v37 = vadd.f32 %v92_v29, %v3732_v13  ;;  %v3895_v56 = vand.u32 127, %v77_v0 }
   0xa   :  { %v2701_v31 = vpack.i.bf16 %v3754_v24, %v3751_v23  ;;  %v96_v38 = vrot.slane %v75_v6, %v3763_v30  ;;  %v3793_v43 = vadd.f32 %v100_v33, %v3740_v18  ;;  %v3796_v44 = vadd.f32 %v104_v34, %v3767_v32 }
   0xb   :  { %v2711_v39 = vpack.i.bf16 %v3751_v23, %v3772_v35  ;;  %v2706_v40 = vpack.i.bf16 %v3772_v35, %v3778_v37  ;;  %v2716_v42 = vpack.i.bf16 %v3775_v36, %v3754_v24  ;;  %v3813_v49 = vpack.i.bf16 %v3726_v10, %v3724_v9 }
   0xc   :  { %2702 = vrot.lane.b32.xlu0 %v2701_v31, %s3617_s0  ;;  %v3787_v41 = vadd.f32 %v96_v38, %v3748_v22  ;;  %v2726_v46 = vpack.i.bf16 %v3796_v44, %v3793_v43  ;;  %v2731_v47 = vpack.i.bf16 %v3778_v37, %v3796_v44  ;;  %v2751_v50 = vpack.i.bf16 %v3732_v13, %v3734_v14 }
   0xd   :  { %2712 = vrot.lane.b32.xlu1 %v2711_v39, %s3618_s18  ;;  %v3828_v51 = vpack.i.bf16 %v3740_v18, %v3748_v22  ;;  %v2836_v52 = vpack.i.bf16 %v3724_v9, %v3734_v14  ;;  %v2856_v53 = vpack.i.bf16 %v3726_v10, %v3738_v17  ;;  %v2876_v54 = vpack.i.bf16 %v3748_v22, %v3732_v13 }
   0xe   :  { %v2721_v45 = vpack.i.bf16 %v3787_v41, %v3775_v36  ;;  %v2736_v48 = vpack.i.bf16 %v3793_v43, %v3787_v41  ;;  %v3890_v55 = vpack.i.bf16 %v3738_v17, %v3767_v32  ;;  %vm6783_vm0 = vcmp.lt.s32.totalorder %v3895_v56, 127 }
   0xf   :  { %vm176_vm1 = vcmp.lt.s32.totalorder %v3895_v56, 1  ;;  %vm646_vm2 = vcmp.lt.s32.totalorder %v3895_v56, 65  ;;  %vm671_vm3 = vcmp.lt.s32.totalorder %v3895_v56, 62  ;;  %vm209_vm4 = vcmp.lt.s32.totalorder %v3895_v56, 106 }
  0x10   :  { %2707 = vrot.lane.b32.xlu0 %v2706_v40, %s3617_s0  ;;  %vm621_vm5 = vcmp.lt.s32.totalorder %v3895_v56, 105  ;;  %vm547_vm7 = vcmp.lt.s32.totalorder %v3895_v56, 125  ;;  %vm572_vm8 = vcmp.lt.s32.totalorder %v3895_v56, 107  ;;  %vm474_vm9 = vcmp.lt.s32.totalorder %v3895_v56, 3 }
  0x11   :  { %2717 = vrot.lane.b32.xlu1 %v2716_v42, %s3618_s18  ;;  %vm6803_vm10 = vcmp.lt.s32.totalorder %v3895_v56, 21  ;;  %vm242_vm11 = vcmp.lt.s32.totalorder %v3895_v56, 22  ;;  %vm6802_vm12 = vcmp.lt.s32.totalorder %v3895_v56, 23  ;;  %vm6784_vm13 = vcmp.lt.s32.totalorder %v3895_v56, 63 }
  0x12   :  { %vm6791_vm14 = vcmp.lt.s32.totalorder %v3895_v56, 66  ;;  %vm6801_vm15 = vcmp.lt.s32.totalorder %v3895_v56, 69 }
  0x14   :  { %2722 = vrot.lane.b32.xlu0 %v2721_v45, %s3617_s0 }
  0x15   :  { %2727 = vrot.lane.b32.xlu1 %v2726_v46, %s3617_s0 }
  0x18   :  { %2732 = vrot.lane.b32.xlu0 %v2731_v47, %s3618_s18 }
  0x19   :  { %2737 = vrot.lane.b32.xlu1 %v2736_v48, %s3618_s18 }
  0x1c   :  { %2742 = vrot.lane.b32.xlu0 %v3813_v49, %s3619_s19 }
  0x1d   :  { %2747 = vrot.lane.b32.xlu1 %v3813_v49, %s3620_s20 }
  0x20   :  { %2752 = vrot.lane.b32.xlu0 %v2751_v50, %s3619_s19 }
  0x21   :  { %2757 = vrot.lane.b32.xlu1 %v2751_v50, %s3620_s20 }
  0x24   :  { %2762 = vrot.lane.b32.xlu0 %v3813_v49, %s3621_s21 }
  0x25   :  { %2767 = vrot.lane.b32.xlu1 %v3813_v49, %s3622_s22 }
  0x28   :  { %2772 = vrot.lane.b32.xlu0 %v3828_v51, %s3619_s19 }
  0x29   :  { %2777 = vrot.lane.b32.xlu1 %v3828_v51, %s3620_s20 }
  0x2c   :  { %2782 = vrot.lane.b32.xlu0 %v2751_v50, %s3621_s21 }
  0x2d   :  { %2787 = vrot.lane.b32.xlu1 %v2751_v50, %s3622_s22 }
  0x30   :  { %2792 = vrot.lane.b32.xlu0 %v3813_v49, %s3623_s23 }
  0x31   :  { %2797 = vrot.lane.b32.xlu1 %v3813_v49, %s3624_s24 }
  0x34   :  { %2807 = vrot.lane.b32.xlu0 %v2751_v50, %s3623_s23 }
  0x35   :  { %2802 = vrot.lane.b32.xlu1 %v3828_v51, %s3622_s22 }
  0x38   :  { %2817 = vrot.lane.b32.xlu0 %v3813_v49, %s3617_s0 }
  0x39   :  { %2812 = vrot.lane.b32.xlu1 %v2751_v50, %s3624_s24 }
  0x3c   :  { %2827 = vrot.lane.b32.xlu0 %v3828_v51, %s3624_s24 }
  0x3d   :  { %2822 = vrot.lane.b32.xlu1 %v3828_v51, %s3623_s23 }
  0x40   :  { %2837 = vrot.lane.b32.xlu0 %v2836_v52, %s3625_s25 }
  0x41   :  { %2832 = vrot.lane.b32.xlu1 %v2751_v50, %s3617_s0 }
  0x44   :  { %2847 = vrot.lane.b32.xlu0 %v3828_v51, %s3617_s0 }
  0x45   :  { %2842 = vrot.lane.b32.xlu1 %v2836_v52, %s3618_s18 }
  0x48   :  { %2857 = vrot.lane.b32.xlu0 %v2856_v53, %s3618_s18 }
  0x49   :  { %2852 = vrot.lane.b32.xlu1 %v2856_v53, %s3625_s25 }
  0x4c   :  { %2867 = vrot.lane.b32.xlu0 %v2836_v52, %s3626_s26 }
  0x4d   :  { %2862 = vrot.lane.b32.xlu1 %v2836_v52, %s3627_s27 }
  0x50   :  { %2877 = vrot.lane.b32.xlu0 %v2876_v54, %s3618_s18 }
  0x51   :  { %2872 = vrot.lane.b32.xlu1 %v2876_v54, %s3625_s25 }
  0x54   :  { %2887 = vrot.lane.b32.xlu0 %v2856_v53, %s3626_s26 }
  0x55   :  { %2882 = vrot.lane.b32.xlu1 %v2856_v53, %s3627_s27 }
  0x58   :  { %2897 = vrot.lane.b32.xlu0 %v2836_v52, %s3628_s28 }
  0x59   :  { %2892 = vrot.lane.b32.xlu1 %v2836_v52, %s3629_s29 }
  0x5c   :  { %2902 = vrot.lane.b32.xlu0 %v2876_v54, %s3626_s26 }
  0x5d   :  { %2907 = vrot.lane.b32.xlu1 %v2856_v53, %s3629_s29 }
  0x60   :  { %2912 = vrot.lane.b32.xlu0 %v2856_v53, %s3628_s28 }
  0x61   :  { %2922 = vrot.lane.b32.xlu1 %v2836_v52, %s3630_s30 }
  0x64   :  { %2917 = vrot.lane.b32.xlu0 %v2836_v52, %s3631_s14 }
  0x65   :  { %390 = vrot.lane.b32.xlu1 %v3732_v13, %s3628_s28 }
  0x68   :  { %2927 = vrot.lane.b32.xlu0 %v2876_v54, %s3629_s29 }
  0x69   :  { %2937 = vrot.lane.b32.xlu1 %v2856_v53, %s3630_s30 }
  0x6c   :  { %2932 = vrot.lane.b32.xlu0 %v2856_v53, %s3631_s14 }
  0x6d   :  { %340 = vrot.lane.b32.xlu1 %v3732_v13, %s3630_s30 }
  0x70   :  { %315 = vrot.lane.b32.xlu0 %v3732_v13, %s3631_s14 }
  0x71   :  { %2952 = vrot.lane.b32.xlu1 %v2751_v50, %s3632_s15 }
  0x75   :  { %2957 = vrot.lane.b32.xlu1 %v3890_v55, %s3619_s19 }
  0x79   :  { %688 = vrot.lane.b32.xlu1 %v3748_v22, %s3632_s15 }
  0x7d   :  { %2972 = vrot.lane.b32.xlu1 %v3890_v55, %s3622_s22 }
  0x7e   :  { %v2703_v57 = vpop.permute.xlu0 %2702 }
  0x7f   :  { %v2705_v58 = vunpack.i.h.bf16 %v2703_v57  ;;  %v2704_v59 = vunpack.i.l.bf16 %v2703_v57  ;;  %v2713_v61 = vpop.permute.xlu1 %2712 }
  0x80   :  { %v2715_v63 = vunpack.i.h.bf16 %v2713_v61  ;;  %v2714_v0 = vunpack.i.l.bf16 %v2713_v61 }
  0x81   :  { %v149_v60 = vsel %vm6783_vm0, %v2704_v59, %v2705_v58 }
  0x82   :  { %v153_v62 = vmax.f32 %v3751_v23, %v149_v60  ;;  %v2708_v2 = vpop.permute.xlu0 %2707  ;;  %v183_v5 = vsel %vm176_vm1, %v2714_v0, %v2715_v63 }
  0x83   :  { %v2710_v3 = vunpack.i.h.bf16 %v2708_v2  ;;  %v2709_v4 = vunpack.i.l.bf16 %v2708_v2  ;;  %v2718_v6 = vpop.permute.xlu1 %2717 }
  0x84   :  { %v3912_v15 = vmax.f32 %v153_v62, %v183_v5  ;;  %v2720_v16 = vunpack.i.h.bf16 %v2718_v6  ;;  %v2719_v28 = vunpack.i.l.bf16 %v2718_v6 }
  0x85   :  { %v150_v7 = vsel %vm6783_vm0, %v2710_v3, %v2704_v59  ;;  %v148_v8 = vsel %vm6783_vm0, %v2705_v58, %v2709_v4 }
  0x86   :  { %v152_v23 = vmax.f32 %v3772_v35, %v150_v7  ;;  %v3915_v27 = vpop.permute.xlu0 %2722  ;;  %v2941_v31 = vpack.i.bf16 %v3912_v15, %v3748_v22  ;;  %v184_v33 = vsel %vm176_vm1, %v2720_v16, %v2714_v0  ;;  %v154_v34 = vmax.f32 %v3754_v24, %v148_v8 }
  0x87   :  { %v2725_v29 = vunpack.i.h.bf16 %v3915_v27  ;;  %v3923_v38 = vpop.permute.xlu1 %2727  ;;  %v182_v45 = vsel %vm176_vm1, %v2715_v63, %v2719_v28  ;;  %v2724_v48 = vunpack.i.l.bf16 %v3915_v27  ;;  %v3975_v0 = vpack.i.bf16 %v3767_v32, %v3740_v18 }
  0x88   :  { %2942 = vrot.lane.b32.xlu0 %v2941_v31, %s3621_s21  ;;  %v3926_v39 = vmax.f32 %v152_v23, %v184_v33  ;;  %v2729_v35 = vunpack.i.l.bf16 %v3923_v38  ;;  %v3941_v50 = vmax.f32 %v154_v34, %v182_v45  ;;  %v2730_v8 = vunpack.i.h.bf16 %v3923_v38 }
  0x89   :  { %v147_v40 = vsel %vm6783_vm0, %v2709_v4, %v2725_v29 }
  0x8a   :  { %v3931_v42 = vpop.permute.xlu0 %2732  ;;  %v2981_v24 = vpack.i.bf16 %v3926_v39, %v3732_v13  ;;  %v146_v47 = vsel %vm6783_vm0, %v2725_v29, %v2729_v35  ;;  %6851 = vst [vmem:[#allocation13_spill] sm:$0xff] %v3941_v50  ;;  %v155_v53 = vmax.f32 %v3778_v37, %v147_v40  ;;  %v151_v37 = vsel %vm6783_vm0, %v2724_v48, %v2710_v3 }
  0x8b   :  { %v2735_v46 = vunpack.i.h.bf16 %v3931_v42  ;;  %v156_v52 = vmax.f32 %v3787_v41, %v146_v47  ;;  %v3945_v54 = vpop.permute.xlu1 %2737  ;;  %v2734_v61 = vunpack.i.l.bf16 %v3931_v42  ;;  %v2986_v62 = vpack.i.bf16 %v3926_v39, %v3941_v50 }
  0x8c   :  { %2947 = vrot.lane.b32.xlu0 %v3813_v49, %s3632_s15  ;;  %v2739_v57 = vunpack.i.l.bf16 %v3945_v54  ;;  %2982 = vrot.lane.b32.xlu1 %v2981_v24, %s3627_s27  ;;  %v159_v23 = vmax.f32 %v3775_v36, %v151_v37  ;;  %v145_v34 = vsel %vm6783_vm0, %v2729_v35, %v2730_v8  ;;  %v6720_v24 = vmov 0  }
  0x8d   :  { %v181_v58 = vsel %vm176_vm1, %v2719_v28, %v2735_v46  ;;  %v177_v31 = vsel %vm176_vm1, %v2734_v61, %v2720_v16  ;;  %3397 = vset.pattern.permute.xlu0 %v6720_v24  ;;  %3076 = vset.pattern.permute.xlu1 %v6720_v24 }
  0x8e   :  { %v3953_v59 = vpop.permute.xlu0 %2742  ;;  %v180_v49 = vsel %vm176_vm1, %v2735_v46, %v2739_v57  ;;  %v3977_v2 = vmax.f32 %v155_v53, %v181_v58  ;;  %v4020_v35 = vmax.f32 %v159_v23, %v177_v31  ;;  %v157_v53 = vmax.f32 %v3793_v43, %v145_v34  ;;  %v4039_v43 = vld [vmem:[%s6704_s3] sm:$0xff] }
  0x8f   :  { %v2745_v60 = vunpack.i.h.bf16 %v3953_v59  ;;  %v2744_v41 = vunpack.i.l.bf16 %v3953_v59  ;;  %v3969_v63 = vpop.permute.xlu1 %2747  ;;  %v3979_v3 = vmax.f32 %v156_v52, %v180_v49  ;;  %v4049_v31 = vcombine.high %v4039_v43, %v4039_v43 }
  0x90   :  { %2962 = vrot.lane.b32.xlu0 %v3890_v55, %s3620_s20  ;;  %6852 = vst [vmem:[#allocation14_spill] sm:$0xff] %v3977_v2  ;;  %v2750_v4 = vunpack.i.h.bf16 %v3969_v63  ;;  %v2749_v5 = vunpack.i.l.bf16 %v3969_v63  ;;  %2987 = vrot.lane.b32.xlu1 %v2986_v62, %s3621_s21  ;;  %6856 = vst [vmem:[#allocation18_spill] sm:$0xff] %v4020_v35 }
  0x91   :  { %6853 = vst [vmem:[#allocation15_spill] sm:$0xff] %v3979_v3  ;;  %v652_v7 = vsel %vm646_vm2, %v2744_v41, %v2745_v60  ;;  %v2996_v28 = vpack.i.bf16 %v3979_v3, %v3977_v2  ;;  %6857 = vst [vmem:[#allocation19_spill] sm:$0xff] %v4049_v31  ;;  %2619 = vmatprep.mubr.msk.bf16.mxu0 %vm6767_vm6, %v4049_v31  ;;  %2626 = vmatprep.mubr.msk.bf16.mxu1 %vm6767_vm6, %v4049_v31  ;;  %vm259_vm6 = vcmp.gt.f32.partialorder %v3708_v1, 0.0 }
  0x92   :  { %v3985_v6 = vpop.permute.xlu0 %2752  ;;  %v677_v33 = vsel %vm671_vm3, %v2749_v5, %v2750_v4 }
  0x93   :  { %6854 = vst [vmem:[#allocation16_spill] sm:$0xff] %v3985_v6  ;;  %v6717_v29 = vunpack.i.l.bf16 %v3985_v6  ;;  %v4006_v40 = vpop.permute.xlu1 %2757  ;;  %v763_v36 = vpack.c.bf16 %v677_v33, %v652_v7  ;;  %v2755_v62 = vunpack.i.h.bf16 %v3985_v6  ;;  %v2991_v33 = vpack.i.bf16 %v4020_v35, %v3912_v15 }
  0x94   :  { %6855 = vst [vmem:[#allocation17_spill] sm:$0xff] %v4006_v40  ;;  %2967 = vrot.lane.b32.xlu0 %v3975_v0, %s3621_s21  ;;  %v6716_v45 = vunpack.i.l.bf16 %v4006_v40  ;;  %2997 = vrot.lane.b32.xlu1 %v2996_v28, %s3621_s21  ;;  %v2760_v37 = vunpack.i.h.bf16 %v4006_v40 }
  0x95   :  { %v653_v16 = vsel %vm646_vm2, %v6717_v29, %v2744_v41  ;;  %794 = vmatprep.subr.bf16.mxu0 %v763_v36  ;;  %v2740_v41 = vunpack.i.h.bf16 %v3945_v54 }
  0x96   :  { %v4012_v46 = vpop.permute.xlu0 %2762  ;;  %v678_v58 = vsel %vm671_vm3, %v6716_v45, %v2749_v5 }
  0x97   :  { %v2765_v47 = vunpack.i.h.bf16 %v4012_v46  ;;  %v2764_v52 = vunpack.i.l.bf16 %v4012_v46  ;;  %v2768_v49 = vpop.permute.xlu1 %2767  ;;  %v762_v63 = vpack.c.bf16 %v678_v58, %v653_v16  ;;  %v179_v46 = vsel %vm176_vm1, %v2739_v57, %v2740_v41 }
  0x98   :  { %2977 = vrot.lane.b32.xlu0 %v3890_v55, %s3623_s23  ;;  %v2770_v7 = vunpack.i.h.bf16 %v2768_v49  ;;  %v2769_v23 = vunpack.i.l.bf16 %v2768_v49  ;;  %3002 = vrot.lane.b32.xlu1 %v3890_v55, %s3624_s24  ;;  %v651_v49 = vsel %vm646_vm2, %v2745_v60, %v2755_v62  ;;  %v676_v57 = vsel %vm671_vm3, %v2750_v4, %v2760_v37 }
  0x99   :  { %v602_v28 = vsel %vm209_vm4, %v2764_v52, %v2765_v47  ;;  %795 = vmatpush1.bf16.msra.mxu0 %v762_v63  ;;  %v3006_v4 = vpack.i.bf16 %v3977_v2, %v3941_v50 }
  0x9a   :  { %v4043_v5 = vpop.permute.xlu0 %2772  ;;  %v627_v16 = vsel %vm621_vm5, %v2769_v23, %v2770_v7 }
  0x9b   :  { %v6718_v34 = vunpack.i.h.bf16 %v4043_v5  ;;  %v2774_v36 = vunpack.i.l.bf16 %v4043_v5  ;;  %v4067_v58 = vpop.permute.xlu1 %2777  ;;  %v755_v63 = vpack.c.bf16 %v627_v16, %v602_v28  ;;  %v4092_v28 = vmax.f32 %v157_v53, %v179_v46 }
  0x9c   :  { %6858 = vst [vmem:[#allocation20_spill] sm:$0xff] %v4067_v58  ;;  %2992 = vrot.lane.b32.xlu0 %v2991_v33, %s3627_s27  ;;  %v6719_v45 = vunpack.i.h.bf16 %v4067_v58  ;;  %v2779_v29 = vunpack.i.l.bf16 %v4067_v58  ;;  %3017 = vrot.lane.b32.xlu1 %v3890_v55, %s3617_s0  ;;  %v144_v53 = vsel %vm6783_vm0, %v2730_v8, %v2724_v48 }
  0x9d   :  { %v4084_v33 = vsel %vm646_vm2, %v2774_v36, %v6718_v34  ;;  %v650_v59 = vsel %vm646_vm2, %v2755_v62, %v2774_v36  ;;  %6861 = vst [vmem:[#allocation23_spill] sm:$0xff] %v4092_v28  ;;  %796 = vmatprep.subr.bf16.mxu0 %v755_v63  ;;  %v764_v36 = vpack.c.bf16 %v676_v57, %v651_v49 }
  0x9e   :  { %6859 = vst [vmem:[#allocation21_spill] sm:$0xff] %v4084_v33  ;;  %v4088_v60 = vpop.permute.xlu0 %2782  ;;  %v4100_v34 = vsel %vm671_vm3, %v2779_v29, %v6719_v45  ;;  %v675_v62 = vsel %vm671_vm3, %v2760_v37, %v2779_v29  ;;  %v3011_v8 = vpack.i.bf16 %v4092_v28, %v3738_v17  ;;  %v158_v57 = vmax.f32 %v3796_v44, %v144_v53 }
  0x9f   :  { %6860 = vst [vmem:[#allocation22_spill] sm:$0xff] %v4088_v60  ;;  %v6731_v16 = vunpack.i.h.bf16 %v4088_v60  ;;  %v6723_v55 = vunpack.i.l.bf16 %v4088_v60  ;;  %6862 = vst [vmem:[#allocation24_spill] sm:$0xff] %v4100_v34  ;;  %v4110_v46 = vpop.permute.xlu1 %2787  ;;  %v765_v63 = vpack.c.bf16 %v675_v62, %v650_v59  ;;  %v178_v59 = vsel %vm176_vm1, %v2740_v41, %v2734_v61 }
  0xa0   :  { %6863 = vst [vmem:[#allocation25_spill] sm:$0xff] %v4110_v46  ;;  %3007 = vrot.lane.b32.xlu0 %v3006_v4, %s3627_s27  ;;  %v6730_v24 = vunpack.i.h.bf16 %v4110_v46  ;;  %v6722_v29 = vunpack.i.l.bf16 %v4110_v46  ;;  %3027 = vrot.lane.b32.xlu1 %v3975_v0, %s3618_s18  ;;  %v4159_v54 = vmax.f32 %v158_v57, %v178_v59 }
  0xa1   :  { %v603_v38 = vsel %vm209_vm4, %v6723_v55, %v2764_v52  ;;  %v4127_v48 = vsel %vm209_vm4, %v2765_v47, %v6731_v16  ;;  %835 = vmatprep.subr.bf16.mxu1 %v765_v63 }
  0xa2   :  { %v2793_v27 = vpop.permute.xlu0 %2792  ;;  %836 = vmatpush1.bf16.msra.mxu1 %v764_v36  ;;  %v628_v52 = vsel %vm621_vm5, %v6722_v29, %v2769_v23  ;;  %v4142_v47 = vsel %vm621_vm5, %v2770_v7, %v6730_v24  ;;  %6865 = vst [vmem:[#allocation27_spill] sm:$0xff] %v4159_v54 }
  0xa3   :  { %v2795_v37 = vunpack.i.h.bf16 %v2793_v27  ;;  %v2794_v49 = vunpack.i.l.bf16 %v2793_v27  ;;  %v2798_v44 = vpop.permute.xlu1 %2797  ;;  %v754_v4 = vpack.c.bf16 %v628_v52, %v603_v38  ;;  %v3056_v52 = vpack.i.bf16 %v4020_v35, %v4159_v54 }
  0xa4   :  { %3012 = vrot.lane.b32.xlu0 %v3011_v8, %s3621_s21  ;;  %v2800_v62 = vunpack.i.h.bf16 %v2798_v44  ;;  %v2799_v36 = vunpack.i.l.bf16 %v2798_v44  ;;  %3037 = vrot.lane.b32.xlu1 %v3975_v0, %s3626_s26 }
  0xa5   :  { %v553_v42 = vsel %vm547_vm7, %v2794_v49, %v2795_v37  ;;  %797 = vmatpush1.bf16.msra.mxu0 %v754_v4 }
  0xa6   :  { %v4155_v7 = vpop.permute.xlu0 %2807  ;;  %v578_v61 = vsel %vm572_vm8, %v2799_v36, %v2800_v62 }
  0xa7   :  { %6864 = vst [vmem:[#allocation26_spill] sm:$0xff] %v4155_v7  ;;  %v4163_v41 = vpop.permute.xlu1 %2802  ;;  %v747_v53 = vpack.c.bf16 %v578_v61, %v553_v42  ;;  %v6729_v63 = vunpack.i.h.bf16 %v4155_v7  ;;  %v6724_v27 = vunpack.i.l.bf16 %v4155_v7  ;;  %v6883_v2 = vunpack.i.h.bf16 %v4155_v7 }
  0xa8   :  { %3022 = vrot.lane.b32.xlu0 %v3975_v0, %s3625_s25  ;;  %3047 = vrot.lane.b32.xlu1 %v3828_v51, %s3628_s28 }
  0xa9   :  { %798 = vmatprep.subr.bf16.mxu0 %v747_v53  ;;  %v554_v53 = vsel %vm547_vm7, %v6724_v27, %v2794_v49  ;;  %v4198_v29 = vsel %vm547_vm7, %v2795_v37, %v6729_v63 }
  0xaa   :  { %v4171_v38 = vpop.permute.xlu0 %2817 }
  0xab   :  { %v6726_v8 = vunpack.i.h.bf16 %v4171_v38  ;;  %v2819_v57 = vunpack.i.l.bf16 %v4171_v38  ;;  %v4177_v59 = vpop.permute.xlu1 %2812  ;;  %v6888_v7 = vunpack.i.h.bf16 %v4171_v38 }
  0xac   :  { %6866 = vst [vmem:[#allocation28_spill] sm:$0xff] %v4177_v59  ;;  %3032 = vrot.lane.b32.xlu0 %v3828_v51, %s3627_s27  ;;  %v6727_v4 = vunpack.i.h.bf16 %v4177_v59  ;;  %v6725_v42 = vunpack.i.l.bf16 %v4177_v59  ;;  %3057 = vrot.lane.b32.xlu1 %v3056_v52, %s3621_s21  ;;  %v6884_v1 = vunpack.i.h.bf16 %v4177_v59 }
  0xad   :  { %v528_v44 = vsel %vm6783_vm0, %v2819_v57, %v6726_v8 }
  0xae   :  { %v4188_v61 = vpop.permute.xlu0 %2827  ;;  %v579_v55 = vsel %vm572_vm8, %v6725_v42, %v2799_v36  ;;  %v739_v52 = vpack.c.bf16 %v528_v44, %v3724_v9  ;;  %v4209_v45 = vsel %vm572_vm8, %v2800_v62, %v6727_v4  ;;  %v3051_v9 = vpack.i.bf16 %v3979_v3, %v3767_v32 }
  0xaf   :  { %v4211_v49 = vpop.permute.xlu1 %2822  ;;  %v746_v37 = vpack.c.bf16 %v579_v55, %v554_v53 }
  0xb0   :  { %3042 = vrot.lane.b32.xlu0 %v3975_v0, %s3629_s29  ;;  %3067 = vrot.lane.b32.xlu1 %v3828_v51, %s3630_s30 }
  0xb1   :  { %799 = vmatpush1.bf16.msra.mxu0 %v746_v37 }
  0xb2   :  { %v2838_v36 = vpop.permute.xlu0 %2837  ;;  %800 = vmatprep.subr.bf16.mxu0 %v739_v52 }
  0xb3   :  { %v4221_v62 = vpop.permute.xlu1 %2832  ;;  %v2840_v55 = vunpack.i.h.bf16 %v2838_v36  ;;  %v2839_v53 = vunpack.i.l.bf16 %v2838_v36 }
  0xb4   :  { %6867 = vst [vmem:[#allocation29_spill] sm:$0xff] %v4221_v62  ;;  %3052 = vrot.lane.b32.xlu0 %v3051_v9, %s3627_s27  ;;  %v6728_v44 = vunpack.i.l.bf16 %v4221_v62  ;;  %236 = vrot.lane.b32.xlu1 %v4092_v28, %s3627_s27  ;;  %v2835_v58 = vunpack.i.h.bf16 %v4221_v62 }
  0xb5   :  { %v481_v23 = vsel %vm474_vm9, %v2839_v53, %v2840_v55 }
  0xb6   :  { %v4227_v42 = vpop.permute.xlu0 %2847  ;;  %v529_v52 = vsel %vm6783_vm0, %v6728_v44, %v2819_v57 }
  0xb7   :  { %v2843_v37 = vpop.permute.xlu1 %2842  ;;  %v738_v9 = vpack.c.bf16 %v529_v52, %v3734_v14 }
  0xb8   :  { %3062 = vrot.lane.b32.xlu0 %v3828_v51, %s3631_s14  ;;  %v2845_v27 = vunpack.i.h.bf16 %v2843_v37  ;;  %v2844_v8 = vunpack.i.l.bf16 %v2843_v37  ;;  %346 = vrot.lane.b32.xlu1 %v3767_v32, %s3630_s30 }
  0xb9   :  { %801 = vmatpush1.bf16.msra.mxu0 %v738_v9 }
  0xba   :  { %v4239_v36 = vpop.permute.xlu0 %2857  ;;  %v505_v51 = vsel %vm176_vm1, %v2844_v8, %v2845_v27 }
  0xbb   :  { %v6733_v4 = vunpack.i.h.bf16 %v4239_v36  ;;  %v6732_v57 = vunpack.i.l.bf16 %v4239_v36  ;;  %v4247_v44 = vpop.permute.xlu1 %2852  ;;  %v731_v14 = vpack.c.bf16 %v505_v51, %v481_v23 }
  0xbc   :  { %396 = vrot.lane.b32.xlu0 %v3767_v32, %s3628_s28  ;;  %v6736_v52 = vunpack.i.h.bf16 %v4247_v44  ;;  %v6735_v37 = vunpack.i.l.bf16 %v4247_v44  ;;  %238 = vrot.lane.b32.xlu1 %v4159_v54, %s3627_s27 }
  0xbd   :  { %v506_v63 = vsel %vm176_vm1, %v6732_v57, %v2844_v8  ;;  %v4263_v24 = vsel %vm176_vm1, %v2845_v27, %v6733_v4  ;;  %802 = vmatprep.subr.bf16.mxu0 %v731_v14 }
  0xbe   :  { %v2868_v9 = vpop.permute.xlu0 %2867  ;;  %v482_v16 = vsel %vm474_vm9, %v6735_v37, %v2839_v53  ;;  %v4274_v8 = vsel %vm474_vm9, %v2840_v55, %v6736_v52 }
  0xbf   :  { %v2870_v23 = vunpack.i.h.bf16 %v2868_v9  ;;  %v2869_v51 = vunpack.i.l.bf16 %v2868_v9  ;;  %v2863_v27 = vpop.permute.xlu1 %2862  ;;  %v730_v57 = vpack.c.bf16 %v506_v63, %v482_v16 }
  0xc0   :  { %321 = vrot.lane.b32.xlu0 %v3767_v32, %s3631_s14  ;;  %v2865_v9 = vunpack.i.h.bf16 %v2863_v27  ;;  %v2864_v4 = vunpack.i.l.bf16 %v2863_v27  ;;  %v778_v27 = vld [vmem:[%s6705_s4] sm:$0xff] }
  0xc1   :  { %v456_v53 = vsel %vm6803_vm10, %v2869_v51, %v2870_v23  ;;  %803 = vmatpush1.bf16.msra.mxu0 %v730_v57  ;;  %781 = vperm.xlu1 %3076, %v778_v27  }
  0xc2   :  { %v4281_v54 = vpop.permute.xlu0 %2877  ;;  %v431_v55 = vsel %vm242_vm11, %v2864_v4, %v2865_v9 }
  0xc3   :  { %v4287_v37 = vpop.permute.xlu1 %2872  ;;  %v723_v16 = vpack.c.bf16 %v456_v53, %v431_v55 }
  0xc4   :  { %3072 = vrot.lane.b32.xlu0 %v3975_v0, %s3632_s15  ;;  %v6891_v38 = vunpack.i.l.bf16 %v4287_v37 }
  0xc5   :  { %804 = vmatprep.subr.bf16.mxu0 %v723_v16 }
  0xc6   :  { %v4291_v63 = vpop.permute.xlu0 %2887 }
  0xc7   :  { %6868 = vst [vmem:[#allocation30_spill] sm:$0xff] %v4291_v63  ;;  %v6743_v14 = vunpack.i.h.bf16 %v4291_v63  ;;  %v6740_v52 = vunpack.i.l.bf16 %v4291_v63  ;;  %v4298_v57 = vpop.permute.xlu1 %2882 }
  0xc8   :  { %694 = vrot.lane.b32.xlu0 %v3738_v17, %s3632_s15  ;;  %v6745_v53 = vunpack.i.l.bf16 %v4298_v57  ;;  %v6869_v3 = vunpack.i.h.bf16 %v4298_v57 }
  0xc9   :  { %v457_v35 = vsel %vm6803_vm10, %v6740_v52, %v2869_v51  ;;  %v4312_v16 = vsel %vm6803_vm10, %v2870_v23, %v6743_v14 }
  0xca   :  { %v2898_v55 = vpop.permute.xlu0 %2897  ;;  %v432_v0 = vsel %vm242_vm11, %v6745_v53, %v2864_v4  ;;  %v4323_v51 = vsel %vm242_vm11, %v2865_v9, %v6869_v3 }
  0xcb   :  { %v2900_v27 = vunpack.i.h.bf16 %v2898_v55  ;;  %v2899_v28 = vunpack.i.l.bf16 %v2898_v55  ;;  %6870 = vst [vmem:[#allocation31_spill] sm:$0xff] %v4323_v51  ;;  %v2893_v52 = vpop.permute.xlu1 %2892  ;;  %v722_v26 = vpack.c.bf16 %v457_v35, %v432_v0 }
  0xcc   :  { %v2895_v14 = vunpack.i.h.bf16 %v2893_v52  ;;  %v2894_v55 = vunpack.i.l.bf16 %v2893_v52 }
  0xcd   :  { %v407_v4 = vsel %vm6802_vm12, %v2899_v28, %v2900_v27  ;;  %805 = vmatpush1.bf16.msra.mxu0 %v722_v26 }
  0xce   :  { %v4328_v32 = vpop.permute.xlu0 %2902  ;;  %v382_v53 = vsel %vm6784_vm13, %v2894_v55, %v2895_v14 }
  0xcf   :  { %v4334_v3 = vpop.permute.xlu1 %2907  ;;  %v715_v9 = vpack.c.bf16 %v407_v4, %v382_v53 }
  0xd0   :  { %6871 = vst [vmem:[#allocation32_spill] sm:$0xff] %v4334_v3  ;;  %v6748_v35 = vunpack.i.h.bf16 %v4334_v3  ;;  %v6747_v0 = vunpack.i.l.bf16 %v4334_v3 }
  0xd1   :  { %806 = vmatprep.subr.bf16.mxu0 %v715_v9 }
  0xd2   :  { %v4338_v17 = vpop.permute.xlu0 %2912  ;;  %v383_v26 = vsel %vm6784_vm13, %v6747_v0, %v2894_v55  ;;  %v4350_v53 = vsel %vm6784_vm13, %v2895_v14, %v6748_v35 }
  0xd3   :  { %6872 = vst [vmem:[#allocation33_spill] sm:$0xff] %v4338_v17  ;;  %v6753_v52 = vunpack.i.h.bf16 %v4338_v17  ;;  %v6752_v23 = vunpack.i.l.bf16 %v4338_v17  ;;  %6873 = vst [vmem:[#allocation34_spill] sm:$0xff] %v4350_v53  ;;  %v4352_v4 = vpop.permute.xlu1 %2922  ;;  %v6778_v53 = vunpack.i.l.bf16 %v4163_v41 }
  0xd4   :  { %v6758_v14 = vunpack.i.h.bf16 %v4352_v4  ;;  %v2924_v0 = vunpack.i.l.bf16 %v4352_v4 }
  0xd5   :  { %v408_v9 = vsel %vm6802_vm12, %v6752_v23, %v2899_v28  ;;  %v4364_v55 = vsel %vm6802_vm12, %v2900_v27, %v6753_v52 }
  0xd6   :  { %6874 = vst [vmem:[#allocation35_spill] sm:$0xff] %v4364_v55  ;;  %v4368_v35 = vpop.permute.xlu0 %2917  ;;  %v714_v18 = vpack.c.bf16 %v408_v9, %v383_v26  ;;  %v357_v27 = vsel %vm6791_vm14, %v2924_v0, %v6758_v14 }
  0xd7   :  { %v6759_v28 = vunpack.i.h.bf16 %v4368_v35  ;;  %v2919_v23 = vunpack.i.l.bf16 %v4368_v35  ;;  %v4378_v52 = vpop.permute.xlu1 %390 }
  0xd8   :  { %807 = vmatpush1.bf16.msra.mxu0 %v714_v18 }
  0xd9   :  { %v332_v26 = vsel %vm6801_vm15, %v2919_v23, %v6759_v28 }
  0xda   :  { %v4384_v9 = vpop.permute.xlu0 %2927  ;;  %v707_v20 = vpack.c.bf16 %v357_v27, %v332_v26 }
  0xdb   :  { %v4386_v31 = vpop.permute.xlu1 %2937 }
  0xdc   :  { %808 = vmatprep.subr.bf16.mxu0 %v707_v20  ;;  %6875 = vst [vmem:[#allocation36_spill] sm:$0xff] %v4386_v31  ;;  %v6765_v18 = vunpack.i.l.bf16 %v4386_v31 }
  0xde   :  { %v4389_v33 = vpop.permute.xlu0 %2932  ;;  %v358_v14 = vsel %vm6791_vm14, %v6765_v18, %v2924_v0  ;;  %v2824_v0 = vunpack.i.l.bf16 %v4211_v49  ;;  %v2829_v18 = vunpack.i.l.bf16 %v4188_v61 }
  0xdf   :  { %6876 = vst [vmem:[#allocation37_spill] sm:$0xff] %v4389_v33  ;;  %v6768_v34 = vunpack.i.l.bf16 %v4389_v33  ;;  %v4400_v20 = vpop.permute.xlu1 %340 }
  0xe0   :  { %6877 = vst [vmem:[#allocation38_spill] sm:$0xff] %v4400_v20 }
  0xe1   :  { %v333_v28 = vsel %vm6801_vm15, %v6768_v34, %v2919_v23 }
  0xe2   :  { %v706_v27 = vpack.c.bf16 %v358_v14, %v333_v28  ;;  %v4408_v30 = vpop.permute.xlu0 %315  ;;  %v2849_v28 = vunpack.i.l.bf16 %v4227_v42 }
  0xe3   :  { %v4402_v26 = vpop.permute.xlu1 %2952  ;;  %6879 = vst [vmem:[#allocation40_spill] sm:$0xff] %v4408_v30 }
  0xe4   :  { %809 = vmatpush1.bf16.msra.mxu0 %v706_v27  ;;  %v6881_v27 = vunpack.i.h.bf16 %v4088_v60  ;;  %v576_v60 = vsel %vm572_vm8, %v6884_v1, %v2829_v18  ;;  %v526_v59 = vsel %vm6783_vm0, %v2835_v58, %v2849_v28  ;;  %v6886_v1 = vpack.c.bf16 %v4142_v47, %v4127_v48 }
  0xe5   :  { %v527_v48 = vsel %vm6783_vm0, %v6888_v7, %v2835_v58  ;;  %v6889_v47 = vunpack.i.l.bf16 %v4281_v54  ;;  %v6892_v58 = vunpack.i.h.bf16 %v4247_v44 }
  0xe7   :  { %v4404_v40 = vpop.permute.xlu1 %2957  ;;  %v479_v7 = vsel %vm474_vm9, %v6892_v58, %v6891_v38  ;;  %v6894_v38 = vunpack.i.h.bf16 %v4211_v49 }
  0xe9   :  { %v4503_v58 = vsel %vm547_vm7, %v2824_v0, %v6894_v38  ;;  %v740_v38 = vpack.c.bf16 %v527_v48, %v3726_v10 }
  0xeb   :  { %v4406_v6 = vpop.permute.xlu1 %688 }
  0xec   :  { %6878 = vst [vmem:[#allocation39_spill] sm:$0xff] %v4406_v6  ;;  %v6882_v6 = vunpack.i.h.bf16 %v4110_v46 }
  0xee   :  { %v625_v50 = vsel %vm621_vm5, %v6882_v6, %v6778_v53  ;;  %v6885_v6 = vmov 0  }
  0xef   :  { %v4415_v23 = vpop.permute.xlu1 %2972  ;;  %v4447_v53 = vsel %vm259_vm6, 1, %v6885_v6  ;;  %vm696_vm6 = vcmp.lt.s32.totalorder %v3895_v56, 59 }
  0xf0   :  { %6880 = vst [vmem:[#allocation41_spill] sm:$0xff] %v4415_v23  ;;  %v551_v23 = vsel %vm547_vm7, %v6883_v2, %v2824_v0 }
  0xf1   :  { %v749_v2 = vpack.c.bf16 %v576_v60, %v551_v23  ;;  %v741_v23 = vpack.c.bf16 %v526_v59, %v3732_v13  ;;  %v2935_v13 = vunpack.i.h.bf16 %v4389_v33 }
  0xfa   :  { %v4413_v55 = vpop.permute.xlu0 %2942 }
  0xfb   :  { %v6775_v14 = vunpack.i.l.bf16 %v4413_v55 }
  0xfd   :  { %v600_v34 = vsel %vm209_vm4, %v6881_v27, %v6775_v14 }
  0xfe   :  { %v4441_v27 = vpop.permute.xlu0 %2947  ;;  %v757_v14 = vpack.c.bf16 %v625_v50, %v600_v34  ;;  %v4444_v51 = vpop.permute.xlu1 %2982  ;;  %v2940_v34 = vunpack.i.h.bf16 %v4386_v31  ;;  %v276_v50 = vrot.slane %v4447_v53, %v3746_v21  ;;  %v6910_v31 = vunpack.i.l.bf16 %v4328_v32 }
  0xff   :  { %v2949_v33 = vunpack.i.l.bf16 %v4441_v27  ;;  %v2985_v21 = vunpack.i.h.bf16 %v4444_v51 }
 0x100   :  { %837 = vmatprep.subr.bf16.mxu1 %v757_v14  ;;  %v268_v14 = vrot.slane %v4447_v53, %v3728_v11 }
 0x101   :  { %838 = vmatpush1.bf16.msra.mxu1 %v6886_v1  ;;  %v6890_v1 = vunpack.i.h.bf16 %v4239_v36 }
 0x102   :  { %v4458_v62 = vpop.permute.xlu0 %2962  ;;  %839 = vmatprep.subr.bf16.mxu1 %v749_v2  ;;  %v4462_v60 = vpop.permute.xlu1 %2987  ;;  %v264_v2 = vrot.slane %v4447_v53, %v3742_v19 }
 0x103   :  { %6887 = vst [vmem:[#allocation42_spill] sm:$0xff] %v4462_v60  ;;  %v503_v46 = vsel %vm176_vm1, %v6890_v1, %v6889_v47  ;;  %v6893_v47 = vpack.c.bf16 %v4209_v45, %v4198_v29  ;;  %v4492_v1 = vcombine.low %v4039_v43, %v4039_v43  ;;  %v6895_v45 = vunpack.i.h.bf16 %v4188_v61 }
 0x104   :  { %v6896_v29 = vunpack.i.h.bf16 %v4227_v42  ;;  %v733_v59 = vpack.c.bf16 %v503_v46, %v479_v7  ;;  %v6902_v46 = vunpack.i.h.bf16 %v4368_v35  ;;  %v6903_v7 = vunpack.i.h.bf16 %v4352_v4 }
 0x105   :  { %840 = vmatpush1.bf16.msra.mxu1 %v6893_v47  ;;  %v4509_v43 = vsel %vm572_vm8, %v2829_v18, %v6895_v45  ;;  %v6897_v18 = vunpack.i.h.bf16 %v4338_v17  ;;  %v6904_v35 = vunpack.i.l.bf16 %v4444_v51  ;;  %v6923_v17 = vld [vmem:[#allocation20_spill] sm:$0xff] }
 0x106   :  { %v4515_v47 = vsel %vm6783_vm0, %v2849_v28, %v6896_v29  ;;  %v4517_v6 = vpop.permute.xlu0 %2967  ;;  %841 = vmatprep.subr.bf16.mxu1 %v741_v23  ;;  %v4521_v0 = vpop.permute.xlu1 %2997  ;;  %v4532_v28 = vsel %vm6791_vm14, %v2940_v34, %v4400_v20  ;;  %v6898_v23 = vunpack.i.l.bf16 %v4384_v9  ;;  %v6899_v29 = vunpack.i.h.bf16 %v4334_v3 }
 0x107   :  { %v405_v45 = vsel %vm6802_vm12, %v6897_v18, %v4378_v52  ;;  %vm4540_vm0 = vcmp.eq.s32.totalorder %v268_v14, 1  ;;  %v4548_v48 = vsel %vm6801_vm15, %v6902_v46, %v2935_v13  ;;  %v4554_v18 = vsel %vm6791_vm14, %v6903_v7, %v2940_v34 }
 0x108   :  { %v380_v11 = vsel %vm6784_vm13, %v6899_v29, %v6898_v23  ;;  %v4559_v23 = vsel %vm6801_vm15, %v2935_v13, %v4408_v30  ;;  %v2989_v29 = vunpack.i.l.bf16 %v4462_v60  ;;  %v6905_v46 = vunpack.i.h.bf16 %v4298_v57 }
 0x109   :  { %842 = vmatpush1.bf16.msra.mxu1 %v740_v38  ;;  %vm4569_vm13 = vcmp.eq.s32.totalorder %v264_v2, 1  ;;  %v6908_v7 = vunpack.i.h.bf16 %v4163_v41  ;;  %v6909_v13 = vunpack.i.l.bf16 %v4163_v41  ;;  %v6797_v2 = vunpack.i.l.bf16 %v4404_v40 }
 0x10a   :  { %v429_v4 = vsel %vm242_vm11, %v6905_v46, %v6904_v35  ;;  %v4581_v38 = vpop.permute.xlu0 %2977  ;;  %843 = vmatprep.subr.bf16.mxu1 %v733_v59  ;;  %v2945_v46 = vunpack.i.h.bf16 %v4413_v55  ;;  %v4590_v19 = vpop.permute.xlu1 %3002  ;;  %v709_v20 = vpack.c.bf16 %v4532_v28, %v4559_v23  ;;  %vm4604_vm14 = vcmp.eq.s32.totalorder %v276_v50, 1 }
 0x10b   :  { %v4579_v14 = vsel %vm621_vm5, %v6909_v13, %v6908_v7  ;;  %v6911_v7 = vunpack.i.h.bf16 %v4291_v63  ;;  %v717_v13 = vpack.c.bf16 %v405_v45, %v380_v11  ;;  %v6914_v30 = vunpack.i.h.bf16 %v4462_v60 }
 0x10c   :  { %v6796_v28 = vunpack.i.l.bf16 %v4402_v26  ;;  %v6795_v23 = vunpack.i.h.bf16 %v4441_v27  ;;  %v6918_v60 = vunpack.i.h.bf16 %v4521_v0  ;;  %v6924_v63 = vunpack.i.h.bf16 %v6923_v17 }
 0x10d   :  { %v454_v59 = vsel %vm6803_vm10, %v6911_v7, %v6910_v31  ;;  %v216_v11 = vsel %vm209_vm4, %v6914_v30, %v2945_v46  ;;  %v215_v31 = vsel %vm209_vm4, %v2945_v46, %v2989_v29  ;;  %v2999_v7 = vunpack.i.l.bf16 %v4521_v0 }
 0x10e   :  { %v725_v35 = vpack.c.bf16 %v454_v59, %v429_v4  ;;  %v6915_v4 = vpack.c.bf16 %v4263_v24, %v4274_v8  ;;  %v4623_v30 = vpop.permute.xlu0 %2992  ;;  %v4629_v8 = vpop.permute.xlu1 %3017  ;;  %v218_v50 = vmax.f32 %v3926_v39, %v216_v11  ;;  %v219_v59 = vmax.f32 %v3912_v15, %v215_v31  ;;  %v6920_v11 = vld [vmem:[#allocation31_spill] sm:$0xff] }
 0x10f   :  { %6916 = vst [vmem:[#allocation43_spill] sm:$0xff] %v4623_v30  ;;  %v2994_v24 = vunpack.i.l.bf16 %v4623_v30  ;;  %v703_v45 = vsel %vm696_vm6, %v6796_v28, %v2949_v33  ;;  %v6919_v39 = vunpack.i.h.bf16 %v4623_v30  ;;  %v6921_v31 = vpack.c.bf16 %v4312_v16, %v6920_v11 }
 0x110   :  { %844 = vmatpush1.bf16.msra.mxu1 %v6915_v4  ;;  %v702_v4 = vsel %vm696_vm6, %v2949_v33, %v6795_v23  ;;  %v213_v23 = vsel %vm209_vm4, %v2999_v7, %v6918_v60  ;;  %v214_v33 = vsel %vm209_vm4, %v2989_v29, %v2999_v7  ;;  %v6922_v60 = vunpack.i.l.bf16 %v4458_v62 }
 0x111   :  { %845 = vmatprep.subr.bf16.mxu1 %v725_v35  ;;  %v6917_v35 = vunpack.i.h.bf16 %v4043_v5  ;;  %v249_v15 = vsel %vm242_vm11, %v2985_v21, %v2994_v24  ;;  %v250_v5 = vsel %vm242_vm11, %v6919_v39, %v2985_v21  ;;  %v6805_v21 = vunpack.i.h.bf16 %v4517_v6 }
 0x112   :  { %v252_v28 = vmax.f32 %v219_v59, %v249_v15  ;;  %v673_v30 = vsel %vm671_vm3, %v6924_v63, %v6922_v60  ;;  %v2969_v16 = vunpack.i.l.bf16 %v4517_v6  ;;  %v4674_v7 = vpop.permute.xlu1 %3027  ;;  %vm3634_vm15 = vmmov 1  }
 0x113   :  { %v648_v46 = vsel %vm646_vm2, %v6917_v35, %v6797_v2  ;;  %v251_v35 = vmax.f32 %v218_v50, %v250_v5  ;;  %v4662_v2 = vpop.permute.xlu0 %3007  ;;  %vm2613_vm12 = vmpackc.low %vm4540_vm0, %vm3634_vm15  ;;  %v6926_v50 = vld [vmem:[#allocation14_spill] sm:$0xff]  ;;  %v2965_v11 = vunpack.i.h.bf16 %v4458_v62  ;;  %v6934_v17 = vunpack.i.h.bf16 %v4402_v26 }
 0x114   :  { %846 = vmatpush1.bf16.msra.mxu1 %v6921_v31  ;;  %v6804_v39 = vunpack.i.h.bf16 %v4662_v2  ;;  %v3009_v29 = vunpack.i.l.bf16 %v4662_v2  ;;  %v221_v59 = vmax.f32 %v6926_v50, %v213_v23  ;;  %v2614_v63 = vpack.c.bf16 %v252_v28, %v702_v4  ;;  %vm4684_vm10 = vmpackc.low %vm4569_vm13, %vm3634_vm15  ;;  %v6929_v31 = vld [vmem:[#allocation13_spill] sm:$0xff]  ;;  %v6930_v23 = vld [vmem:[#allocation35_spill] sm:$0xff] }
 0x115   :  { %847 = vmatprep.subr.bf16.mxu1 %v717_v13  ;;  %v6925_v13 = vld [vmem:[#allocation41_spill] sm:$0xff]  ;;  %v2617_v5 = vpack.c.bf16 %v251_v35, %v703_v45  ;;  %v220_v60 = vmax.f32 %v6929_v31, %v214_v33  ;;  %v6931_v4 = vld [vmem:[#allocation34_spill] sm:$0xff]  ;;  %v6933_v50 = vld [vmem:[#allocation39_spill] sm:$0xff]  ;;  %v767_v31 = vpack.c.bf16 %v673_v30, %v648_v46  ;;  %v598_v30 = vsel %vm209_vm4, %v2969_v16, %v6805_v21 }
 0x116   :  { %v247_v10 = vsel %vm242_vm11, %v3009_v29, %v6804_v39  ;;  %v248_v28 = vsel %vm242_vm11, %v2994_v24, %v3009_v29  ;;  %v6932_v34 = vpack.c.bf16 %v6930_v23, %v6931_v4  ;;  %v700_v45 = vsel %vm696_vm6, %v6934_v17, %v6933_v50  ;;  %2615 = vmatprep.subr.msk.bf16.mxu0 %vm2613_vm12, %v2614_v63  ;;  %vm4722_vm12 = vmpackc.low %vm4604_vm14, %vm3634_vm15 }
 0x117   :  { %v254_v35 = vmax.f32 %v221_v59, %v247_v10  ;;  %v4704_v33 = vpop.permute.xlu0 %3012  ;;  %v6935_v39 = vrot.slane %v4447_v53, %v3730_v12  ;;  %v2979_v29 = vunpack.i.l.bf16 %v4581_v38  ;;  %v3004_v23 = vunpack.i.l.bf16 %v4590_v19  ;;  %2618 = vmatpush2.bf16.msk.msra.mxu0 %vm4684_vm10, %v2617_v5  ;;  %v6940_v59 = vld [vmem:[#allocation11_spill] sm:$0xff] }
 0x118   :  { %848 = vmatpush1.bf16.msra.mxu1 %v6932_v34  ;;  %v253_v4 = vmax.f32 %v220_v60, %v248_v28  ;;  %v4715_v34 = vpop.permute.xlu1 %3037  ;;  %v2875_v46 = vunpack.i.h.bf16 %v4287_v37  ;;  %876 = vmatprep.subr.bf16.mxu0 %v767_v31  ;;  %v3014_v3 = vunpack.i.l.bf16 %v4704_v33  ;;  %v6941_v15 = vpack.c.bf16 %v4554_v18, %v4548_v48  ;;  %v6944_v28 = vld [vmem:[#allocation16_spill] sm:$0xff]  ;;  %v6947_v31 = vld [vmem:[#allocation17_spill] sm:$0xff] }
 0x119   :  { %849 = vmatprep.subr.bf16.mxu1 %v709_v20  ;;  %vm4709_vm0 = vcmp.eq.s32.totalorder %v6935_v39, 1  ;;  %v6806_v39 = vunpack.i.h.bf16 %v4281_v54  ;;  %v2621_v17 = vpack.c.bf16 %v254_v35, %v700_v45  ;;  %v6942_v5 = vunpack.i.l.bf16 %v6925_v13 }
 0x11a   :  { %v6943_v60 = vunpack.i.h.bf16 %v4163_v41  ;;  %v6945_v21 = vunpack.i.l.bf16 %v6944_v28  ;;  %v6946_v45 = vunpack.i.h.bf16 %v4404_v40  ;;  %v6948_v63 = vunpack.i.l.bf16 %v6947_v31  ;;  %827 = vmatmul.mubr.bf16.vlgmr.msra.gmra.mxu0 %v4492_v1  ;;  %vm2623_vm10 = vmpackc.low %vm4709_vm0, %vm3634_vm15  ;;  %v6953_v31 = vld [vmem:[#allocation21_spill] sm:$0xff] }
 0x11b   :  { %v2975_v18 = vunpack.i.h.bf16 %v6925_v13  ;;  %v6950_v41 = vunpack.i.h.bf16 %v4441_v27  ;;  %v3019_v27 = vunpack.i.l.bf16 %v4629_v8  ;;  %v6956_v24 = vunpack.i.h.bf16 %v4188_v61 }
 0x11c   :  { %850 = vmatpush1.bf16.msra.mxu1 %v6941_v15  ;;  %v623_v10 = vsel %vm621_vm5, %v6943_v60, %v6942_v5  ;;  %v654_v35 = vsel %vm646_vm2, %v6946_v45, %v6945_v21  ;;  %v679_v48 = vsel %vm671_vm3, %v2965_v11, %v6948_v63  ;;  %v6949_v15 = vunpack.i.h.bf16 %v4402_v26  ;;  %v4766_v21 = vpop.permute.xlu0 %3022  ;;  %v4774_v45 = vpop.permute.xlu1 %3047 }
 0x11d   :  { %v6951_v60 = vunpack.i.l.bf16 %v4413_v55  ;;  %2622 = vmatprep.subr.msk.bf16.mxu1 %vm4722_vm12, %v2621_v17  ;;  %v759_v63 = vpack.c.bf16 %v623_v10, %v598_v30  ;;  %v6952_v55 = vld [vmem:[#allocation24_spill] sm:$0xff]  ;;  %v574_v30 = vsel %vm572_vm8, %v6956_v24, %v3004_v23  ;;  %v6957_v17 = vld [vmem:[#allocation19_spill] sm:$0xff]  ;;  %vm6958_vm13 = vcmask 130048   ;;  %v6962_v24 = vld [vmem:[#allocation22_spill] sm:$0xff] }
 0x11e   :  { %v701_v5 = vsel %vm696_vm6, %v6950_v41, %v6949_v15  ;;  %v6954_v15 = vpack.c.bf16 %v6952_v55, %v6953_v31  ;;  %v6955_v41 = vunpack.i.h.bf16 %v4211_v49  ;;  %2633 = vmatprep.mubr.msk.bf16.mxu0 %vm6958_vm13, %v6957_v17  ;;  %v6960_v10 = vunpack.i.l.bf16 %v4281_v54 }
 0x11f   :  { %v599_v28 = vsel %vm209_vm4, %v6951_v60, %v2969_v16  ;;  %v2624_v16 = vpack.c.bf16 %v253_v4, %v701_v5  ;;  %v6959_v4 = vunpack.i.l.bf16 %v4287_v37  ;;  %v6961_v5 = vunpack.i.l.bf16 %v4458_v62 }
 0x120   :  { %877 = vmatpush1.bf16.msra.mxu0 %v6954_v15  ;;  %v549_v20 = vsel %vm547_vm7, %v6955_v41, %v2979_v29  ;;  %v4807_v61 = vsel %vm176_vm1, %v6960_v10, %v6806_v39  ;;  %v769_v55 = vpack.c.bf16 %v679_v48, %v654_v35  ;;  %v2980_v31 = vunpack.i.h.bf16 %v4581_v38  ;;  %v4827_v48 = vpop.permute.xlu0 %3032 }
 0x121   :  { %v4799_v49 = vsel %vm474_vm9, %v6959_v4, %v2875_v46  ;;  %v672_v60 = vsel %vm671_vm3, %v6961_v5, %v2965_v11  ;;  %878 = vmatprep.subr.bf16.mxu0 %v759_v63  ;;  %v3005_v15 = vunpack.i.h.bf16 %v4590_v19  ;;  %2625 = vmatpush2.bf16.msk.msra.mxu1 %vm2623_vm10, %v2624_v16  ;;  %v758_v41 = vpack.c.bf16 %v4579_v14, %v599_v28  ;;  %v6966_v16 = vld [vmem:[#allocation8_spill] sm:$0xff]  ;;  %v4832_v5 = vpop.permute.xlu1 %3057  ;;  %vm6977_vm3 = vmmov %vm6958_vm13 }
 0x122   :  { %v6963_v4 = vunpack.i.l.bf16 %v6962_v24  ;;  %v6964_v39 = vunpack.i.h.bf16 %v4404_v40  ;;  %v6965_v62 = vunpack.i.l.bf16 %v4404_v40  ;;  %v3020_v35 = vunpack.i.h.bf16 %v4629_v8  ;;  %917 = vmatprep.subr.bf16.mxu1 %v769_v55 }
 0x123   :  { %v751_v63 = vpack.c.bf16 %v574_v30, %v549_v20  ;;  %v292_v14 = vrot.slane %v4447_v53, %v6966_v16  ;;  %v3024_v28 = vunpack.i.l.bf16 %v4766_v21  ;;  %v6969_v8 = vunpack.i.h.bf16 %v4227_v42 }
 0x124   :  { %v604_v10 = vsel %vm209_vm4, %v3014_v3, %v6963_v4  ;;  %v647_v11 = vsel %vm646_vm2, %v6965_v62, %v6964_v39  ;;  %879 = vmatpush1.bf16.msra.mxu0 %v758_v41  ;;  %v6967_v4 = vld [vmem:[#allocation25_spill] sm:$0xff]  ;;  %vm6970_vm2 = vcmp.lt.s32.totalorder %v3895_v56, 127  ;;  %v6971_v20 = vunpack.i.h.bf16 %v4517_v6  ;;  %868 = vmatmul.mubr.bf16.vlgmr.msra.gmra.mxu1 %v4492_v1 }
 0x125   :  { %v768_v24 = vpack.c.bf16 %v672_v60, %v647_v11  ;;  %v6968_v40 = vunpack.i.l.bf16 %v6967_v4  ;;  %v524_v55 = vsel %vm6970_vm2, %v6969_v8, %v3019_v27  ;;  %880 = vmatprep.subr.bf16.mxu0 %v751_v63  ;;  %v734_v60 = vpack.c.bf16 %v4807_v61, %v4799_v49  ;;  %v6973_v4 = vld [vmem:[#allocation26_spill] sm:$0xff]  ;;  %2640 = vmatprep.mubr.msk.bf16.mxu1 %vm6977_vm3, %v6957_v17  ;;  %v4872_v49 = vpop.permute.xlu0 %3042  ;;  %vm6981_vm14 = vmmov %vm6970_vm2 }
 0x126   :  { %v597_v30 = vsel %vm209_vm4, %v6971_v20, %v3014_v3  ;;  %v6972_v62 = vunpack.i.l.bf16 %v6925_v13  ;;  %v3029_v11 = vunpack.i.l.bf16 %v4674_v7  ;;  %v6974_v6 = vunpack.i.l.bf16 %v6973_v4  ;;  %v6978_v61 = vld [vmem:[#allocation6_spill] sm:$0xff] }
 0x127   :  { %v629_v39 = vsel %vm621_vm5, %v2975_v18, %v6968_v40  ;;  %918 = vmatpush1.bf16.msra.mxu1 %v768_v24  ;;  %v6975_v40 = vld [vmem:[#allocation28_spill] sm:$0xff]  ;;  %v548_v13 = vsel %vm547_vm7, %v2979_v29, %v2980_v31  ;;  %v743_v63 = vpack.c.bf16 %v524_v55, %v6978_v61  ;;  %v6979_v24 = vld [vmem:[#allocation29_spill] sm:$0xff]  ;;  %v3035_v38 = vunpack.i.h.bf16 %v4827_v48  ;;  %v4881_v29 = vpop.permute.xlu1 %3067 }
 0x128   :  { %v761_v41 = vpack.c.bf16 %v629_v39, %v604_v10  ;;  %v622_v42 = vsel %vm621_vm5, %v6972_v62, %v2975_v18  ;;  %v555_v3 = vsel %vm547_vm7, %v2980_v31, %v6974_v6  ;;  %v6976_v8 = vunpack.i.l.bf16 %v6975_v40  ;;  %vm6983_vm7 = vmmov %vm6970_vm2 }
 0x129   :  { %v573_v18 = vsel %vm572_vm8, %v3004_v23, %v3005_v15  ;;  %v6980_v39 = vunpack.i.l.bf16 %v6979_v24  ;;  %v3034_v20 = vunpack.i.l.bf16 %v4827_v48  ;;  %v6982_v19 = vpack.c.bf16 %v4509_v43, %v4503_v58 }
 0x12a   :  { %v580_v10 = vsel %vm572_vm8, %v3005_v15, %v6976_v8  ;;  %919 = vmatprep.subr.bf16.mxu1 %v761_v41  ;;  %v760_v23 = vpack.c.bf16 %v622_v42, %v597_v30  ;;  %v477_v31 = vsel %vm474_vm9, %v2875_v46, %v3024_v28  ;;  %v523_v15 = vsel %vm6983_vm7, %v3019_v27, %v3020_v35  ;;  %v6985_v42 = vld [vmem:[#allocation5_spill] sm:$0xff]  ;;  %v6987_v8 = vld [vmem:[#allocation12_spill] sm:$0xff] }
 0x12b   :  { %v530_v17 = vsel %vm6981_vm14, %v3020_v35, %v6980_v39  ;;  %881 = vmatpush1.bf16.msra.mxu0 %v6982_v19  ;;  %v3030_v55 = vunpack.i.h.bf16 %v4674_v7  ;;  %v3039_v41 = vunpack.i.l.bf16 %v4715_v34  ;;  %v753_v62 = vpack.c.bf16 %v580_v10, %v555_v3  ;;  %v4902_v35 = vpop.permute.xlu0 %3052  ;;  %v4918_v61 = vpop.permute.xlu1 %236 }
 0x12c   :  { %882 = vmatprep.subr.bf16.mxu0 %v743_v63  ;;  %v2905_v4 = vunpack.i.h.bf16 %v4328_v32  ;;  %v2930_v58 = vunpack.i.h.bf16 %v4384_v9  ;;  %v3025_v43 = vunpack.i.h.bf16 %v4766_v21  ;;  %920 = vmatpush1.bf16.msra.mxu1 %v760_v23  ;;  %v6984_v37 = vunpack.i.h.bf16 %v4281_v54 }
 0x12d   :  { %v3050_v27 = vunpack.i.h.bf16 %v4774_v45  ;;  %921 = vmatprep.subr.bf16.mxu1 %v753_v62  ;;  %v752_v30 = vpack.c.bf16 %v573_v18, %v548_v13  ;;  %v745_v6 = vpack.c.bf16 %v530_v17, %v6985_v42  ;;  %v500_v3 = vsel %vm176_vm1, %v3029_v11, %v3030_v55 }
 0x12e   :  { %v501_v46 = vsel %vm176_vm1, %v6984_v37, %v3029_v11  ;;  %v3044_v21 = vunpack.i.l.bf16 %v4872_v49  ;;  %v6986_v54 = vpack.c.bf16 %v4515_v47, %v3748_v22  ;;  %v427_v40 = vsel %vm242_vm11, %v3034_v20, %v3035_v38 }
 0x12f   :  { %v735_v7 = vpack.c.bf16 %v501_v46, %v477_v31  ;;  %v744_v10 = vpack.c.bf16 %v523_v15, %v6987_v8  ;;  %v3015_v13 = vunpack.i.h.bf16 %v4704_v33  ;;  %v3049_v18 = vunpack.i.l.bf16 %v4774_v45  ;;  %v4939_v15 = vpop.permute.xlu0 %3062 }
 0x130   :  { %883 = vmatpush1.bf16.msra.mxu0 %v6986_v54  ;;  %vm6988_vm0 = vcmp.lt.s32.totalorder %v3895_v56, 21  ;;  %v6989_v22 = vunpack.i.l.bf16 %v4239_v36  ;;  %v476_v63 = vsel %vm474_vm9, %v3024_v28, %v3025_v43  ;;  %v3070_v24 = vunpack.i.h.bf16 %v4881_v29  ;;  %922 = vmatpush1.bf16.msra.mxu1 %v752_v30  ;;  %v347_v54 = vpop.permute.xlu1 %346 }
 0x131   :  { %884 = vmatprep.subr.bf16.mxu0 %v735_v7  ;;  %v452_v11 = vsel %vm6988_vm0, %v2905_v4, %v3039_v41  ;;  %v3054_v39 = vunpack.i.l.bf16 %v4902_v35  ;;  %v6990_v17 = vunpack.i.l.bf16 %v4247_v44  ;;  %v3040_v23 = vunpack.i.h.bf16 %v4715_v34  ;;  %923 = vmatprep.subr.bf16.mxu1 %v745_v6  ;;  %vm6995_vm10 = vmmov %vm6988_vm0 }
 0x132   :  { %v499_v47 = vsel %vm176_vm1, %v3030_v55, %v6989_v22  ;;  %v6991_v36 = vunpack.i.l.bf16 %v4444_v51  ;;  %v727_v28 = vpack.c.bf16 %v452_v11, %v427_v40  ;;  %vm6992_vm12 = vcmp.lt.s32.totalorder %v3895_v56, 23  ;;  %vm7002_vm14 = vmmov %vm6988_vm0 }
 0x133   :  { %v475_v19 = vsel %vm474_vm9, %v3025_v43, %v6990_v17  ;;  %v403_v55 = vsel %vm6992_vm12, %v3049_v18, %v3050_v27  ;;  %v3069_v44 = vunpack.i.l.bf16 %v4881_v29  ;;  %v3065_v62 = vunpack.i.h.bf16 %v4939_v15  ;;  %vm7003_vm7 = vmmov %vm6992_vm12  ;;  %v397_v40 = vpop.permute.xlu0 %396 }
 0x134   :  { %v428_v31 = vsel %vm242_vm11, %v6991_v36, %v3034_v20  ;;  %v3064_v34 = vunpack.i.l.bf16 %v4939_v15  ;;  %885 = vmatpush1.bf16.msra.mxu0 %v734_v60  ;;  %vm6993_vm9 = vcmp.lt.s32.totalorder %v3895_v56, 63  ;;  %v6994_v20 = vunpack.i.l.bf16 %v4328_v32  ;;  %924 = vmatpush1.bf16.msra.mxu1 %v744_v10  ;;  %vm7009_vm12 = vmmov %vm6995_vm10  ;;  %v239_v33 = vpop.permute.xlu1 %238 }
 0x135   :  { %v378_v51 = vsel %vm6993_vm9, %v2930_v58, %v3044_v21  ;;  %v6996_v37 = vunpack.i.l.bf16 %v4384_v9  ;;  %vm6997_vm13 = vmmov %vm6993_vm9  ;;  %886 = vmatprep.subr.bf16.mxu0 %v727_v28  ;;  %v737_v7 = vpack.c.bf16 %v499_v47, %v475_v19  ;;  %v736_v30 = vpack.c.bf16 %v500_v3, %v476_v63  ;;  %v7007_v47 = vld [vmem:[#allocation30_spill] sm:$0xff] }
 0x136   :  { %v453_v43 = vsel %vm6995_vm10, %v6994_v20, %v2905_v4  ;;  %v6998_v60 = vunpack.i.l.bf16 %v4298_v57  ;;  %vm6999_vm2 = vcmp.lt.s32.totalorder %v3895_v56, 69  ;;  %vm7000_vm3 = vcmp.lt.s32.totalorder %v3895_v56, 66  ;;  %vm7012_vm9 = vmmov %vm7003_vm7 }
 0x137   :  { %v379_v46 = vsel %vm6997_vm13, %v6996_v37, %v2930_v58  ;;  %v726_v42 = vpack.c.bf16 %v453_v43, %v428_v31  ;;  %v328_v32 = vsel %vm6999_vm2, %v3064_v34, %v3065_v62  ;;  %v353_v9 = vsel %vm7000_vm3, %v3069_v44, %v3070_v24  ;;  %925 = vmatprep.subr.bf16.mxu1 %v737_v7  ;;  %v7010_v31 = vld [vmem:[#allocation33_spill] sm:$0xff]  ;;  %v322_v20 = vpop.permute.xlu0 %321  ;;  %v7021_v43 = vld [vmem:[#allocation10_spill] sm:$0xff]  ;;  %v7022_v37 = vld [vmem:[#allocation15_spill] sm:$0xff] }
 0x138   :  { %v425_v6 = vsel %vm242_vm11, %v3054_v39, %v6998_v60  ;;  %v7001_v4 = vunpack.i.h.bf16 %v4521_v0  ;;  %v451_v58 = vsel %vm7002_vm14, %v3039_v41, %v3040_v23  ;;  %v404_v3 = vsel %vm7003_vm7, %v4378_v52, %v3049_v18  ;;  %926 = vmatpush1.bf16.msra.mxu1 %v736_v30  ;;  %vm7020_vm14 = vmmov %vm7003_vm7 }
 0x139   :  { %v719_v8 = vpack.c.bf16 %v403_v55, %v378_v51  ;;  %v7004_v10 = vrot.slane %v4447_v53, %v3756_v25  ;;  %v3060_v0 = vunpack.i.h.bf16 %v4832_v5  ;;  %v3059_v22 = vunpack.i.l.bf16 %v4832_v5  ;;  %887 = vmatpush1.bf16.msra.mxu0 %v726_v42 }
 0x13a   :  { %v212_v57 = vsel %vm209_vm4, %v7001_v4, %v3015_v13  ;;  %v3045_v41 = vunpack.i.h.bf16 %v4872_v49  ;;  %v7008_v52 = vunpack.i.l.bf16 %v7007_v47  ;;  %v3055_v63 = vunpack.i.h.bf16 %v4902_v35 }
 0x13b   :  { %vm4984_vm0 = vcmp.eq.s32.totalorder %v7004_v10, 1  ;;  %v426_v17 = vsel %vm242_vm11, %v3035_v38, %v3054_v39  ;;  %888 = vmatprep.subr.bf16.mxu0 %v719_v8  ;;  %v711_v36 = vpack.c.bf16 %v353_v9, %v328_v32  ;;  %v7011_v5 = vunpack.i.l.bf16 %v7010_v31  ;;  %v7018_v38 = vld [vmem:[#allocation40_spill] sm:$0xff] }
 0x13c   :  { %v450_v18 = vsel %vm7009_vm12, %v3040_v23, %v7008_v52  ;;  %v718_v28 = vpack.c.bf16 %v404_v3, %v379_v46  ;;  %v7013_v23 = vrot.slane %v4447_v53, %v6940_v59  ;;  %vm5014_vm13 = vcmp.eq.s32.totalorder %v292_v14, 1  ;;  %v3073_v52 = vpop.permute.xlu0 %3072  ;;  %v5103_v35 = vpop.permute.xlu1 %781 }
 0x13d   :  { %v729_v19 = vpack.c.bf16 %v450_v18, %v425_v6  ;;  %v401_v49 = vsel %vm7012_vm9, %v397_v40, %v7011_v5  ;;  %v329_v39 = vsel %vm6999_vm2, %v7018_v38, %v3064_v34  ;;  %vm7019_vm3 = vcmp.lt.s32.totalorder %v3895_v56, 63  ;;  %v7029_v6 = vld [vmem:[#allocation42_spill] sm:$0xff]  ;;  %vm7033_vm9 = vmmov %vm6999_vm2  ;;  %v7037_v18 = vld [vmem:[#allocation36_spill] sm:$0xff] }
 0x13e   :  { %vm5007_vm10 = vcmp.eq.s32.totalorder %v7013_v23, 1  ;;  %v377_v55 = vsel %vm7019_vm3, %v3044_v21, %v3045_v41  ;;  %v402_v51 = vsel %vm7020_vm14, %v3050_v27, %v397_v40  ;;  %v288_v14 = vrot.slane %v4447_v53, %v7021_v43  ;;  %889 = vmatpush1.bf16.msra.mxu0 %v718_v28  ;;  %v7023_v21 = vld [vmem:[#allocation32_spill] sm:$0xff]  ;;  %vm7025_vm7 = vmmov %vm7019_vm3  ;;  %v7026_v27 = vld [vmem:[#allocation38_spill] sm:$0xff] }
 0x13f   :  { %927 = vmatprep.subr.bf16.mxu1 %v729_v19  ;;  %v222_v46 = vmax.f32 %v7022_v37, %v212_v57  ;;  %v211_v34 = vsel %vm209_vm4, %v3015_v13, %v3059_v22  ;;  %v728_v7 = vpack.c.bf16 %v451_v58, %v426_v17  ;;  %v7024_v30 = vunpack.i.l.bf16 %v7023_v21  ;;  %890 = vmatprep.subr.bf16.mxu0 %v711_v36  ;;  %v7031_v58 = vld [vmem:[#allocation37_spill] sm:$0xff]  ;;  %v7034_v40 = vld [vmem:[#allocation23_spill] sm:$0xff]  ;;  %vm7036_vm3 = vmmov %vm7033_vm9 }
 0x140   :  { %vm7027_vm12 = vcmp.lt.s32.totalorder %v3895_v56, 66  ;;  %v7028_v53 = vunpack.i.h.bf16 %v4662_v2  ;;  %v7030_v32 = vunpack.i.h.bf16 %v7029_v6  ;;  %v245_v4 = vsel %vm242_vm11, %v3055_v63, %v4918_v61  ;;  %v7040_v19 = vld [vmem:[#allocation43_spill] sm:$0xff] }
 0x141   :  { %v376_v45 = vsel %vm7025_vm7, %v3045_v41, %v7024_v30  ;;  %v354_v42 = vsel %vm7027_vm12, %v7026_v27, %v3069_v44  ;;  %v720_v57 = vpack.c.bf16 %v402_v51, %v377_v55  ;;  %v7032_v44 = vunpack.i.l.bf16 %v7031_v58  ;;  %928 = vmatpush1.bf16.msra.mxu1 %v728_v7  ;;  %vm7035_vm2 = vmmov %vm7027_vm12  ;;  %v695_v55 = vpop.permute.xlu0 %694  ;;  %v5111_v7 = vld [vmem:[%s6703_s2] sm:$0xff] }
 0x142   :  { %v246_v60 = vsel %vm242_vm11, %v7028_v53, %v3055_v63  ;;  %v217_v13 = vsel %vm209_vm4, %v3060_v0, %v7030_v32  ;;  %v721_v9 = vpack.c.bf16 %v401_v49, %v376_v45  ;;  %v710_v3 = vpack.c.bf16 %v354_v42, %v329_v39  ;;  %vm7039_vm14 = vmmov %vm7035_vm2  ;;  %v7045_v21 = vld [vmem:[#allocation7_spill] sm:$0xff] }
 0x143   :  { %v326_v2 = vsel %vm7033_vm9, %v322_v20, %v7032_v44  ;;  %v223_v8 = vmax.f32 %v7034_v40, %v211_v34  ;;  %v352_v10 = vsel %vm7035_vm2, %v3070_v24, %v347_v54  ;;  %v210_v41 = vsel %vm209_vm4, %v3059_v22, %v3060_v0  ;;  %v7042_v22 = vld [vmem:[#allocation18_spill] sm:$0xff]  ;;  %vm2627_vm7 = vmpackc.low %vm4984_vm0, %vm3634_vm15 }
 0x144   :  { %v327_v47 = vsel %vm7036_vm3, %v3065_v62, %v322_v20  ;;  %929 = vmatprep.subr.bf16.mxu1 %v721_v9  ;;  %v7038_v63 = vunpack.i.l.bf16 %v7037_v18  ;;  %v7041_v29 = vunpack.i.h.bf16 %v7040_v19  ;;  %v3075_v36 = vunpack.i.h.bf16 %v3073_v52  ;;  %891 = vmatpush1.bf16.msra.mxu0 %v710_v3  ;;  %vm2630_vm12 = vmpackc.low %vm5007_vm10, %vm3634_vm15  ;;  %v7043_v20 = vld [vmem:[#allocation27_spill] sm:$0xff] }
 0x145   :  { %v3074_v31 = vunpack.i.l.bf16 %v3073_v52  ;;  %v255_v0 = vmax.f32 %v222_v46, %v246_v60  ;;  %v256_v15 = vmax.f32 %v223_v8, %v245_v4  ;;  %v225_v5 = vmax.f32 %v7042_v22, %v217_v13  ;;  %930 = vmatpush1.bf16.msra.mxu1 %v720_v57  ;;  %vm2634_vm0 = vmpackc.low %vm5014_vm13, %vm3634_vm15  ;;  %v7046_v60 = vld [vmem:[#allocation4_spill] sm:$0xff] }
 0x146   :  { %v351_v17 = vsel %vm7039_vm14, %v347_v54, %v7038_v63  ;;  %v243_v24 = vsel %vm242_vm11, %v239_v33, %v7041_v29  ;;  %v712_v49 = vpack.c.bf16 %v352_v10, %v327_v47  ;;  %v244_v23 = vsel %vm242_vm11, %v4918_v61, %v239_v33  ;;  %v63_v57 = vld [vmem:[%s6706_s1 + $0x8] sm:$0xff] }
 0x147   :  { %v713_v62 = vpack.c.bf16 %v351_v17, %v326_v2  ;;  %v698_v28 = vsel %vm696_vm6, %v3074_v31, %v3075_v36  ;;  %v699_v54 = vsel %vm696_vm6, %v6933_v50, %v3074_v31  ;;  %v258_v38 = vmax.f32 %v225_v5, %v243_v24  ;;  %v7047_v47 = vld [vmem:[#allocation9_spill] sm:$0xff] }
 0x148   :  { %v2631_v39 = vpack.c.bf16 %v255_v0, %v699_v54  ;;  %v2628_v51 = vpack.c.bf16 %v256_v15, %v698_v28  ;;  %v224_v50 = vmax.f32 %v7043_v20, %v210_v41  ;;  %v7044_v37 = vunpack.i.l.bf16 %v4402_v26 }
 0x149   :  { %931 = vmatprep.subr.bf16.mxu1 %v713_v62  ;;  %vm299_vm9 = vcmp.eq.s32.totalorder %v288_v14, 1  ;;  %v697_v61 = vsel %vm696_vm6, %v3075_v36, %v695_v55  ;;  %v62_v14 = vld [vmem:[%s6706_s1] sm:$0xff]  ;;  %v5115_v30 = vrot.slane %v5111_v7, %v7045_v21  ;;  %v5121_v33 = vrot.slane %v5111_v7, %v7046_v60 }
 0x14a   :  { %v704_v11 = vsel %vm696_vm6, %v695_v55, %v7044_v37  ;;  %2629 = vmatprep.subr.msk.bf16.mxu0 %vm2627_vm7, %v2628_v51  ;;  %v257_v34 = vmax.f32 %v224_v50, %v244_v23  ;;  %932 = vmatpush1.bf16.msra.mxu1 %v712_v49  ;;  %vm2637_vm10 = vmpackc.low %vm299_vm9, %vm3634_vm15  ;;  %v66_v53 = vunpack.c.l.bf16 %v62_v14  ;;  %v5130_v44 = vrot.slane %v5111_v7, %v3730_v12 }
 0x14b   :  { %v2635_v46 = vpack.c.bf16 %v258_v38, %v704_v11  ;;  %2632 = vmatpush2.bf16.msk.msra.mxu0 %vm2630_vm12, %v2631_v39  ;;  %v67_v8 = vunpack.c.h.bf16 %v62_v14  ;;  %v5136_v52 = vrot.slane %v5111_v7, %v7047_v47  ;;  %v68_v18 = vunpack.c.l.bf16 %v63_v57 }
 0x14c   :  { %v2638_v26 = vpack.c.bf16 %v257_v34, %v697_v61  ;;  %v69_v31 = vunpack.c.h.bf16 %v63_v57  ;;  %v5180_v37 = vrot.slane %v5111_v7, %v6940_v59  ;;  %v5184_v61 = vrot.slane %v5111_v7, %v3756_v25  ;;  %v64_v25 = vld [vmem:[%s6706_s1 + $0x10] sm:$0xff]  ;;  %v65_v59 = vld [vmem:[%s6706_s1 + $0x18] sm:$0xff] }
 0x14d   :  { %2636 = vmatprep.subr.msk.bf16.mxu1 %vm2634_vm0, %v2635_v46  ;;  %v5188_v46 = vrot.slane %v5111_v7, %v7021_v43  ;;  %v73_v60 = vunpack.c.h.bf16 %v65_v59  ;;  %vm7048_vm15 = vcmask 130048   ;;  %vm7050_vm13 = vcmp.lt.s32.totalorder %v3895_v56, 127 }
 0x14e   :  { %909 = vmatmul.mubr.bf16.vlgmr.msra.gmra.mxu0 %v4492_v1  ;;  %2639 = vmatpush2.bf16.msk.msra.mxu1 %vm2637_vm10, %v2638_v26  ;;  %vm7049_vm6 = vmmov %vm7048_vm15  ;;  %vm7059_vm10 = vcmp.lt.s32.totalorder %v3895_v56, 21 }
 0x14f   :  { %vm7051_vm2 = vmmov %vm7050_vm13 }
 0x150   :  { %vm7052_vm3 = vmmov %vm7051_vm2 }
 0x151   :  { %950 = vmatmul.mubr.bf16.vlgmr.msra.gmra.mxu1 %v4492_v1  ;;  %vm7053_vm14 = vmmov %vm7051_vm2 }
 0x152   :  { %vm7054_vm7 = vmmov %vm7051_vm2 }
 0x153   :  { %vm7055_vm12 = vmmov %vm7051_vm2 }
 0x154   :  { %vm7056_vm0 = vmmov %vm7051_vm2 }
 0x155   :  { %vm7057_vm9 = vmmov %vm7056_vm0 }
 0x1da   :  { %v828_v48 = vpop.f32.mrf.mxu0 }
 0x1db   :  { %v829_v45 = vadd.f32 %v828_v48, %v5103_v35 }
 0x1dc   :  { %v830_v27 = vpop.f32.mrf.mxu0 }
 0x1dd   :  { %v831_v1 = vadd.f32 %v830_v27, %v5103_v35  ;;  %v958_v42 = vmax.f32 %v829_v45, 0.0  ;;  %v70_v27 = vunpack.c.l.bf16 %v64_v25 }
 0x1de   :  { %v832_v6 = vpop.f32.mrf.mxu0 }
 0x1df   :  { %v959_v32 = vmax.f32 %v831_v1, 0.0  ;;  %v1007_v13 = vmul.f32 %v5115_v30, %v958_v42  ;;  %v72_v1 = vunpack.c.l.bf16 %v65_v59  ;;  %v71_v42 = vunpack.c.h.bf16 %v64_v25 }
 0x1e0   :  { %v833_v9 = vpop.f32.mrf.mxu0 }
 0x1e1   :  { %v3082_v2 = vpack.i.bf16 %v66_v53, %v1007_v13  ;;  %v1008_v3 = vmul.f32 %v5121_v33, %v959_v32  ;;  %v5142_v24 = vpack.c.bf16 %v66_v53, %v1007_v13 }
 0x1e3   :  { %3083 = vrot.lane.b32.xlu0 %v3082_v2, %s3621_s21  ;;  %v5140_v29 = vpack.c.bf16 %v67_v8, %v1008_v3  ;;  %v3152_v49 = vpack.i.bf16 %v67_v8, %v1008_v3 }
 0x1e4   :  { %v869_v4 = vpop.f32.mrf.mxu1 }
 0x1e5   :  { %v870_v58 = vadd.f32 %v869_v4, %v5103_v35 }
 0x1e6   :  { %v871_v40 = vpop.f32.mrf.mxu1 }
 0x1e7   :  { %v960_v10 = vmax.f32 %v870_v58, 0.0  ;;  %v872_v41 = vadd.f32 %v871_v40, %v5103_v35 }
 0x1e8   :  { %v873_v63 = vpop.f32.mrf.mxu1 }
 0x1e9   :  { %v1009_v17 = vmul.f32 %v5130_v44, %v960_v10  ;;  %v961_v12 = vmax.f32 %v872_v41, 0.0 }
 0x1ea   :  { %v874_v19 = vpop.f32.mrf.mxu1 }
 0x1eb   :  { %v1010_v36 = vmul.f32 %v5136_v52, %v961_v12  ;;  %v5145_v0 = vpack.i.bf16 %v68_v18, %v1009_v17  ;;  %v5153_v22 = vpack.c.bf16 %v68_v18, %v1009_v17  ;;  %v1020_v17 = vld [vmem:[%s6708_s6 + $0x10] sm:$0xff] }
 0x1ed   :  { %3088 = vrot.lane.b32.xlu0 %v5145_v0, %s3624_s24  ;;  %3078 = vrot.lane.b32.xlu1 %v5145_v0, %s3621_s21  ;;  %v5151_v15 = vpack.c.bf16 %v69_v31, %v1010_v36  ;;  %v3167_v50 = vpack.i.bf16 %v69_v31, %v1010_v36  ;;  %v1021_v36 = vld [vmem:[%s6709_s7] sm:$0xff] }
 0x1f1   :  { %3103 = vrot.lane.b32.xlu0 %v3082_v2, %s3617_s0  ;;  %3093 = vrot.lane.b32.xlu1 %v3082_v2, %s3624_s24 }
 0x1f5   :  { %3113 = vrot.lane.b32.xlu0 %v3082_v2, %s3626_s26  ;;  %3098 = vrot.lane.b32.xlu1 %v5145_v0, %s3617_s0 }
 0x1f9   :  { %3123 = vrot.lane.b32.xlu0 %v5145_v0, %s3618_s18  ;;  %3108 = vrot.lane.b32.xlu1 %v3082_v2, %s3618_s18 }
 0x1fd   :  { %3128 = vrot.lane.b32.xlu0 %v3082_v2, %s3628_s28  ;;  %3118 = vrot.lane.b32.xlu1 %v3082_v2, %s3627_s27 }
 0x201   :  { %3138 = vrot.lane.b32.xlu0 %v5145_v0, %s3622_s22  ;;  %3133 = vrot.lane.b32.xlu1 %v5145_v0, %s3626_s26 }
 0x205   :  { %3148 = vrot.lane.b32.xlu0 %v5145_v0, %s3627_s27  ;;  %3143 = vrot.lane.b32.xlu1 %v3082_v2, %s3622_s22  ;;  %v5238_v2 = vld [vmem:[%s6707_s5 + $0x4] ss:$8 sps:$4 sm:$0xff]  }
 0x206   :  { %2645 = vmatprep.mubr.msk.bf16.mxu0 %vm7048_vm15, %v5238_v2  ;;  %2647 = vmatprep.mubr.msk.bf16.mxu1 %vm7049_vm6, %v5238_v2  ;;  %vm7061_vm15 = vmmov %vm7059_vm10 }
 0x207   :  { %vm7066_vm6 = vmmov %vm7059_vm10 }
 0x209   :  { %3153 = vrot.lane.b32.xlu0 %v3152_v49, %s3621_s21  ;;  %3158 = vrot.lane.b32.xlu1 %v3152_v49, %s3624_s24 }
 0x20d   :  { %3163 = vrot.lane.b32.xlu0 %v3152_v49, %s3617_s0  ;;  %3168 = vrot.lane.b32.xlu1 %v3167_v50, %s3621_s21 }
 0x20e   :  { %v910_v5 = vpop.f32.mrf.mxu0 }
 0x20f   :  { %v911_v38 = vadd.f32 %v910_v5, %v5103_v35  ;;  %v1018_v5 = vld [vmem:[%s6708_s6] sm:$0xff] }
 0x210   :  { %v912_v62 = vpop.f32.mrf.mxu0 }
 0x211   :  { %v913_v28 = vadd.f32 %v912_v62, %v5103_v35  ;;  %v951_v54 = vpop.f32.mrf.mxu1  ;;  %v962_v26 = vmax.f32 %v911_v38, 0.0  ;;  %3178 = vrot.lane.b32.xlu0 %v3152_v49, %s3618_s18  ;;  %3173 = vrot.lane.b32.xlu1 %v3167_v50, %s3624_s24  ;;  %v1019_v62 = vld [vmem:[%s6708_s6 + $0x8] sm:$0xff] }
 0x212   :  { %v914_v23 = vpop.f32.mrf.mxu0  ;;  %v952_v39 = vadd.f32 %v951_v54, %v5103_v35  ;;  %v18_v54 = vstv %s6710_s8 }
 0x213   :  { %v953_v55 = vpop.f32.mrf.mxu1  ;;  %v963_v11 = vmax.f32 %v913_v28, 0.0  ;;  %19 = vst [vmem:[#allocation2] sm:$0x1] %v18_v54 }
 0x214   :  { %v915_v51 = vpop.f32.mrf.mxu0  ;;  %v954_v20 = vadd.f32 %v953_v55, %v5103_v35  ;;  %v964_v48 = vmax.f32 %v952_v39, 0.0  ;;  %v5192_v35 = vrot.slane %v5111_v7, %v6966_v16  ;;  %v1011_v16 = vmul.f32 %v5180_v37, %v962_v26 }
 0x215   :  { %v955_v34 = vpop.f32.mrf.mxu1  ;;  %v1012_v45 = vmul.f32 %v5184_v61, %v963_v11  ;;  %3183 = vrot.lane.b32.xlu0 %v3167_v50, %s3617_s0  ;;  %3188 = vrot.lane.b32.xlu1 %v3152_v49, %s3626_s26 }
 0x216   :  { %v965_v14 = vmax.f32 %v954_v20, 0.0  ;;  %v1013_v7 = vmul.f32 %v5188_v46, %v964_v48  ;;  %v5212_v32 = vpack.c.bf16 %v70_v27, %v1011_v16  ;;  %v3222_v4 = vpack.i.bf16 %v70_v27, %v1011_v16 }
 0x217   :  { %v956_v43 = vpop.f32.mrf.mxu1  ;;  %v5208_v6 = vpack.c.bf16 %v71_v42, %v1012_v45  ;;  %v3302_v3 = vpack.i.bf16 %v71_v42, %v1012_v45 }
 0x218   :  { %v1014_v53 = vmul.f32 %v5192_v35, %v965_v14  ;;  %v5216_v9 = vpack.c.bf16 %v72_v1, %v1013_v7  ;;  %v3242_v58 = vpack.i.bf16 %v72_v1, %v1013_v7 }
 0x219   :  { %3193 = vrot.lane.b32.xlu0 %v3152_v49, %s3627_s27  ;;  %3198 = vrot.lane.b32.xlu1 %v3167_v50, %s3618_s18 }
 0x21a   :  { %v5214_v13 = vpack.c.bf16 %v73_v60, %v1014_v53  ;;  %v3252_v57 = vpack.i.bf16 %v73_v60, %v1014_v53  ;;  %v1022_v51 = vld [vmem:[#allocation2] sm:$0x1] }
 0x21d   :  { %3208 = vrot.lane.b32.xlu0 %v3167_v50, %s3626_s26  ;;  %3203 = vrot.lane.b32.xlu1 %v3152_v49, %s3628_s28 }
 0x221   :  { %3223 = vrot.lane.b32.xlu0 %v3222_v4, %s3621_s21  ;;  %3213 = vrot.lane.b32.xlu1 %v3152_v49, %s3622_s22 }
 0x225   :  { %3228 = vrot.lane.b32.xlu0 %v3222_v4, %s3624_s24  ;;  %3218 = vrot.lane.b32.xlu1 %v3167_v50, %s3627_s27 }
 0x229   :  { %3248 = vrot.lane.b32.xlu0 %v5145_v0, %s3628_s28  ;;  %3233 = vrot.lane.b32.xlu1 %v3222_v4, %s3617_s0 }
 0x22d   :  { %3253 = vrot.lane.b32.xlu0 %v3252_v57, %s3626_s26  ;;  %3238 = vrot.lane.b32.xlu1 %v3252_v57, %s3618_s18 }
 0x231   :  { %3273 = vrot.lane.b32.xlu0 %v3167_v50, %s3622_s22  ;;  %3243 = vrot.lane.b32.xlu1 %v3242_v58, %s3621_s21 }
 0x235   :  { %3288 = vrot.lane.b32.xlu0 %v3222_v4, %s3618_s18  ;;  %3258 = vrot.lane.b32.xlu1 %v3252_v57, %s3627_s27 }
 0x239   :  { %3298 = vrot.lane.b32.xlu0 %v3252_v57, %s3628_s28  ;;  %3263 = vrot.lane.b32.xlu1 %v3167_v50, %s3628_s28 }
 0x23d   :  { %3303 = vrot.lane.b32.xlu0 %v3302_v3, %s3621_s21  ;;  %3268 = vrot.lane.b32.xlu1 %v3242_v58, %s3624_s24 }
 0x241   :  { %3308 = vrot.lane.b32.xlu0 %v3302_v3, %s3624_s24  ;;  %3278 = vrot.lane.b32.xlu1 %v3222_v4, %s3622_s22 }
 0x245   :  { %3313 = vrot.lane.b32.xlu0 %v3302_v3, %s3617_s0  ;;  %3283 = vrot.lane.b32.xlu1 %v3242_v58, %s3617_s0 }
 0x249   :  { %3318 = vrot.lane.b32.xlu0 %v3252_v57, %s3621_s21  ;;  %3293 = vrot.lane.b32.xlu1 %v3222_v4, %s3626_s26 }
 0x24d   :  { %3343 = vrot.lane.b32.xlu0 %v3222_v4, %s3628_s28  ;;  %3323 = vrot.lane.b32.xlu1 %v3252_v57, %s3624_s24 }
 0x251   :  { %3348 = vrot.lane.b32.xlu0 %v3252_v57, %s3617_s0  ;;  %3328 = vrot.lane.b32.xlu1 %v3302_v3, %s3618_s18 }
 0x255   :  { %3353 = vrot.lane.b32.xlu0 %v3302_v3, %s3626_s26  ;;  %3333 = vrot.lane.b32.xlu1 %v3222_v4, %s3627_s27  ;;  %v5262_v40 = vpop.permute.xlu0 %3083 }
 0x256   :  { %v6811_v20 = vunpack.i.h.bf16 %v5262_v40  ;;  %v6812_v50 = vunpack.i.l.bf16 %v5262_v40 }
 0x259   :  { %3358 = vrot.lane.b32.xlu0 %v3302_v3, %s3627_s27  ;;  %3338 = vrot.lane.b32.xlu1 %v3242_v58, %s3618_s18 }
 0x25d   :  { %3363 = vrot.lane.b32.xlu0 %v3242_v58, %s3626_s26  ;;  %3373 = vrot.lane.b32.xlu1 %v3302_v3, %s3628_s28 }
 0x25f   :  { %v5266_v8 = vpop.permute.xlu0 %3088  ;;  %v5268_v10 = vpop.permute.xlu1 %3078 }
 0x260   :  { %v3081_v26 = vunpack.i.h.bf16 %v5268_v10  ;;  %v3080_v48 = vunpack.i.l.bf16 %v5268_v10  ;;  %v3091_v45 = vunpack.i.h.bf16 %v5266_v8  ;;  %v3090_v27 = vunpack.i.l.bf16 %v5266_v8 }
 0x261   :  { %3368 = vrot.lane.b32.xlu0 %v3242_v58, %s3622_s22  ;;  %3378 = vrot.lane.b32.xlu1 %v3302_v3, %s3622_s22 }
 0x263   :  { %v5272_v41 = vpop.permute.xlu0 %3103  ;;  %v5274_v47 = vpop.permute.xlu1 %3093 }
 0x264   :  { %v6809_v53 = vunpack.i.h.bf16 %v5274_v47  ;;  %v6810_v60 = vunpack.i.l.bf16 %v5274_v47 }
 0x265   :  { %3388 = vrot.lane.b32.xlu0 %v3242_v58, %s3628_s28  ;;  %3383 = vrot.lane.b32.xlu1 %v3242_v58, %s3627_s27 }
 0x267   :  { %v5278_v18 = vpop.permute.xlu0 %3113  ;;  %v5280_v63 = vpop.permute.xlu1 %3098 }
 0x269   :  { %3393 = vrot.lane.b32.xlu1 %v3252_v57, %s3622_s22  ;;  %1486 = vperm.xlu0 %3397, %v1019_v62   ;;  %v3101_v62 = vunpack.i.h.bf16 %v5280_v63 }
 0x26b   :  { %v5286_v12 = vpop.permute.xlu0 %3123  ;;  %v5288_v19 = vpop.permute.xlu1 %3108 }
 0x26d   :  { %1491 = vperm.xlu1 %3076, %v1020_v17   ;;  %1822 = vperm.xlu0 %3397, %v1022_v51  }
 0x26f   :  { %v5293_v31 = vpop.permute.xlu0 %3128  ;;  %v5295_v0 = vpop.permute.xlu1 %3118 }
 0x271   :  { %1761 = vperm.xlu1 %3076, %v1021_v36  }
 0x273   :  { %v5303_v49 = vpop.permute.xlu0 %3138  ;;  %v5305_v28 = vpop.permute.xlu1 %3133 }
 0x275   :  { %1481 = vperm.xlu1 %3076, %v1018_v5   ;;  %v3100_v5 = vunpack.i.l.bf16 %v5280_v63 }
 0x277   :  { %v5310_v23 = vpop.permute.xlu0 %3148  ;;  %v5312_v38 = vpop.permute.xlu1 %3143 }
 0x27b   :  { %v3154_v39 = vpop.permute.xlu0 %3153  ;;  %v3159_v55 = vpop.permute.xlu1 %3158 }
 0x27c   :  { %v3156_v11 = vunpack.i.h.bf16 %v3154_v39  ;;  %v3155_v34 = vunpack.i.l.bf16 %v3154_v39  ;;  %v3161_v14 = vunpack.i.h.bf16 %v3159_v55  ;;  %v3160_v25 = vunpack.i.l.bf16 %v3159_v55 }
 0x27e   :  { %v1356_v59 = vsel %vm209_vm4, %v6811_v20, %v3156_v11  ;;  %v1355_v43 = vsel %vm209_vm4, %v6812_v50, %v3155_v34  ;;  %v1353_v16 = vsel %vm209_vm4, %v3155_v34, %v3080_v48  ;;  %v1354_v7 = vsel %vm209_vm4, %v3156_v11, %v3081_v26 }
 0x27f   :  { %v3164_v1 = vpop.permute.xlu0 %3163  ;;  %v5328_v42 = vpop.permute.xlu1 %3168  ;;  %v1463_v4 = vpack.c.bf16 %v1356_v59, %v1355_v43  ;;  %v1464_v3 = vpack.c.bf16 %v1354_v7, %v1353_v16  ;;  %v1305_v17 = vsel %vm572_vm8, %v3160_v25, %v3090_v27  ;;  %v1306_v36 = vsel %vm572_vm8, %v3161_v14, %v3091_v45 }
 0x280   :  { %v3165_v57 = vunpack.i.l.bf16 %v3164_v1  ;;  %v3166_v58 = vunpack.i.h.bf16 %v3164_v1  ;;  %v1307_v54 = vsel %vm572_vm8, %v6810_v60, %v3160_v25  ;;  %v1308_v39 = vsel %vm572_vm8, %v6809_v53, %v3161_v14 }
 0x281   :  { %1515 = vmatprep.subr.bf16.mxu0 %v1464_v3  ;;  %v1456_v11 = vpack.c.bf16 %v1306_v36, %v1305_v17  ;;  %v6808_v59 = vunpack.i.h.bf16 %v5272_v41  ;;  %v6807_v25 = vunpack.i.l.bf16 %v5272_v41  ;;  %v1455_v43 = vpack.c.bf16 %v1308_v39, %v1307_v54 }
 0x282   :  { %1516 = vmatpush1.bf16.msra.mxu0 %v1463_v4  ;;  %v1257_v34 = vsel %vm7050_vm13, %v3165_v57, %v3100_v5  ;;  %v1258_v14 = vsel %vm7051_vm2, %v3166_v58, %v3101_v62  ;;  %v6814_v54 = vunpack.i.h.bf16 %v5288_v19  ;;  %vm7067_vm13 = vmmov %vm7066_vm6 }
 0x283   :  { %v5358_v55 = vpop.permute.xlu0 %3178  ;;  %v5360_v51 = vpop.permute.xlu1 %3173  ;;  %1517 = vmatprep.subr.bf16.mxu0 %v1456_v11  ;;  %v1259_v1 = vsel %vm7052_vm3, %v6807_v25, %v3165_v57  ;;  %v1260_v16 = vsel %vm7053_vm14, %v6808_v59, %v3166_v58  ;;  %v1448_v3 = vpack.c.bf16 %v1258_v14, %v1257_v34  ;;  %v6815_v57 = vunpack.i.l.bf16 %v5288_v19  ;;  %vm7069_vm2 = vmmov %vm7066_vm6 }
 0x284   :  { %v6813_v17 = vunpack.i.h.bf16 %v5358_v55  ;;  %v3180_v36 = vunpack.i.l.bf16 %v5358_v55  ;;  %v1447_v39 = vpack.c.bf16 %v1260_v16, %v1259_v1  ;;  %v3171_v16 = vunpack.i.h.bf16 %v5328_v42  ;;  %vm7072_vm3 = vmmov %vm7069_vm2 }
 0x285   :  { %vm7077_vm14 = vmmov %vm7069_vm2 }
 0x286   :  { %1518 = vmatpush1.bf16.msra.mxu0 %v1455_v43  ;;  %v1211_v58 = vsel %vm176_vm1, %v6815_v57, %v3180_v36  ;;  %v1212_v34 = vsel %vm176_vm1, %v6814_v54, %v6813_v17  ;;  %v1352_v60 = vsel %vm209_vm4, %v3081_v26, %v3171_v16  ;;  %v3176_v17 = vunpack.i.h.bf16 %v5360_v51 }
 0x287   :  { %v5380_v7 = vpop.permute.xlu0 %3183  ;;  %v5382_v4 = vpop.permute.xlu1 %3188  ;;  %1519 = vmatprep.subr.bf16.mxu0 %v1448_v3  ;;  %v1432_v1 = vpack.c.bf16 %v1212_v34, %v1211_v58  ;;  %v3170_v3 = vunpack.i.l.bf16 %v5328_v42 }
 0x289   :  { %v1351_v50 = vsel %vm209_vm4, %v3080_v48, %v3170_v3  ;;  %v3186_v48 = vunpack.i.h.bf16 %v5380_v7 }
 0x28a   :  { %1520 = vmatpush1.bf16.msra.mxu0 %v1447_v39  ;;  %v3136_v39 = vunpack.i.h.bf16 %v5305_v28  ;;  %v1465_v59 = vpack.c.bf16 %v1352_v60, %v1351_v50  ;;  %v3190_v60 = vunpack.i.l.bf16 %v5382_v4 }
 0x28b   :  { %v5388_v11 = vpop.permute.xlu0 %3193  ;;  %v5390_v25 = vpop.permute.xlu1 %3198  ;;  %1521 = vmatprep.subr.bf16.mxu0 %v5140_v29  ;;  %v3125_v29 = vunpack.i.l.bf16 %v5286_v12 }
 0x28c   :  { %v7074_v50 = vunpack.i.h.bf16 %v5388_v11 }
 0x28d   :  { %v5498_v63 = vsel %vm176_vm1, %v3180_v36, %v3125_v29  ;;  %v7058_v36 = vunpack.i.l.bf16 %v5278_v18 }
 0x28e   :  { %1522 = vmatpush1.bf16.msra.mxu0 %v5142_v24  ;;  %v3175_v24 = vunpack.i.l.bf16 %v5360_v51  ;;  %v3185_v51 = vunpack.i.l.bf16 %v5380_v7  ;;  %v1304_v7 = vsel %vm572_vm8, %v3091_v45, %v3176_v17 }
 0x28f   :  { %v5405_v14 = vpop.permute.xlu0 %3208  ;;  %v5407_v43 = vpop.permute.xlu1 %3203  ;;  %1523 = vmatprep.subr.bf16.mxu0 %v1432_v1 }
 0x290   :  { %v1255_v8 = vsel %vm7054_vm7, %v3100_v5, %v3185_v51  ;;  %vm7079_vm7 = vmmov %vm7069_vm2 }
 0x293   :  { %v5417_v20 = vpop.permute.xlu0 %3223  ;;  %v5419_v58 = vpop.permute.xlu1 %3213 }
 0x294   :  { %v6817_v42 = vunpack.i.h.bf16 %v5417_v20  ;;  %v6816_v1 = vunpack.i.l.bf16 %v5417_v20 }
 0x296   :  { %v1349_v57 = vsel %vm209_vm4, %v3170_v3, %v6816_v1  ;;  %v1350_v10 = vsel %vm209_vm4, %v3171_v16, %v6817_v42  ;;  %v3135_v16 = vunpack.i.l.bf16 %v5305_v28 }
 0x297   :  { %v5448_v53 = vpop.permute.xlu0 %3228  ;;  %v5450_v34 = vpop.permute.xlu1 %3218  ;;  %v1466_v54 = vpack.c.bf16 %v1350_v10, %v1349_v57  ;;  %v1303_v57 = vsel %vm572_vm8, %v3090_v27, %v3175_v24  ;;  %v1256_v27 = vsel %vm7055_vm12, %v3101_v62, %v3186_v48  ;;  %v6823_v62 = vunpack.i.h.bf16 %v5390_v25 }
 0x298   :  { %v6819_v3 = vunpack.i.h.bf16 %v5448_v53  ;;  %v6818_v1 = vunpack.i.l.bf16 %v5448_v53  ;;  %vm7082_vm12 = vcmp.lt.s32.totalorder %v3895_v56, 23  ;;  %v6829_v28 = vunpack.i.h.bf16 %v5450_v34 }
 0x299   :  { %1566 = vmatprep.subr.bf16.mxu1 %v1466_v54 }
 0x29a   :  { %1567 = vmatpush1.bf16.msra.mxu1 %v1465_v59  ;;  %v1301_v10 = vsel %vm572_vm8, %v3175_v24, %v6818_v1  ;;  %v1302_v45 = vsel %vm572_vm8, %v3176_v17, %v6819_v3  ;;  %v3191_v59 = vunpack.i.h.bf16 %v5382_v4  ;;  %v1457_v17 = vpack.c.bf16 %v1304_v7, %v1303_v57 }
 0x29b   :  { %v5484_v54 = vpop.permute.xlu0 %3248  ;;  %v5486_v24 = vpop.permute.xlu1 %3233  ;;  %v1458_v1 = vpack.c.bf16 %v1302_v45, %v1301_v10  ;;  %v6822_v4 = vunpack.i.l.bf16 %v5390_v25  ;;  %v1449_v7 = vpack.c.bf16 %v1256_v27, %v1255_v8  ;;  %v1163_v45 = vsel %vm7059_vm10, %v7058_v36, %v3190_v60 }
 0x29c   :  { %v6821_v3 = vunpack.i.h.bf16 %v5486_v24  ;;  %v6820_v26 = vunpack.i.l.bf16 %v5486_v24 }
 0x29d   :  { %1568 = vmatprep.subr.bf16.mxu1 %v1458_v1  ;;  %v3195_v1 = vunpack.i.l.bf16 %v5388_v11 }
 0x29e   :  { %1569 = vmatpush1.bf16.msra.mxu1 %v1457_v17  ;;  %v1253_v57 = vsel %vm7056_vm0, %v3185_v51, %v6820_v26  ;;  %v1254_v10 = vsel %vm7057_vm9, %v3186_v48, %v6821_v3  ;;  %v7060_v51 = vunpack.i.h.bf16 %v5278_v18  ;;  %vm7085_vm0 = vmmov %vm7082_vm12 }
 0x29f   :  { %v5516_v8 = vpop.permute.xlu0 %3253  ;;  %v5518_v27 = vpop.permute.xlu1 %3238  ;;  %v1450_v17 = vpack.c.bf16 %v1254_v10, %v1253_v57  ;;  %v1207_v57 = vsel %vm176_vm1, %v3125_v29, %v6822_v4  ;;  %v7062_v10 = vunpack.i.h.bf16 %v5286_v12  ;;  %v7064_v29 = vunpack.i.h.bf16 %v5288_v19  ;;  %vm7098_vm9 = vmmov %vm7085_vm0 }
 0x2a0   :  { %v1164_v26 = vsel %vm7061_vm15, %v7060_v51, %v3191_v59  ;;  %v6826_v3 = vunpack.i.l.bf16 %v5516_v8  ;;  %v6824_v36 = vunpack.i.h.bf16 %v5518_v27  ;;  %v6825_v5 = vunpack.i.l.bf16 %v5518_v27  ;;  %vm7100_vm10 = vmmov %vm7085_vm0 }
 0x2a1   :  { %1570 = vmatprep.subr.bf16.mxu1 %v1450_v17  ;;  %v1208_v51 = vsel %vm176_vm1, %v7062_v10, %v6823_v62  ;;  %v7063_v17 = vunpack.i.l.bf16 %v5288_v19  ;;  %v7065_v62 = vunpack.i.h.bf16 %v5358_v55  ;;  %v5572_v19 = vsel %vm7067_vm13, %v3191_v59, %v3136_v39  ;;  %vm7102_vm15 = vmmov %vm7085_vm0 }
 0x2a2   :  { %v1214_v4 = vsel %vm176_vm1, %v6824_v36, %v7064_v29  ;;  %1571 = vmatpush1.bf16.msra.mxu1 %v1449_v7  ;;  %v7068_v55 = vunpack.i.l.bf16 %v5278_v18  ;;  %v1424_v59 = vpack.c.bf16 %v1164_v26, %v1163_v45  ;;  %v3215_v36 = vunpack.i.l.bf16 %v5419_v58  ;;  %vm7105_vm13 = vmmov %vm7085_vm0 }
 0x2a3   :  { %v1213_v42 = vsel %vm176_vm1, %v6825_v5, %v7063_v17  ;;  %v1210_v48 = vsel %vm176_vm1, %v7065_v62, %v7062_v10  ;;  %v5566_v17 = vsel %vm7066_vm6, %v3190_v60, %v3135_v16  ;;  %v5574_v29 = vpop.permute.xlu0 %3273  ;;  %v5576_v12 = vpop.permute.xlu1 %3243  ;;  %1572 = vmatprep.subr.bf16.mxu1 %v5151_v15  ;;  %v7070_v62 = vunpack.i.h.bf16 %v5278_v18  ;;  %vm7104_vm6 = vmmov %vm7085_vm0 }
 0x2a4   :  { %v1431_v7 = vpack.c.bf16 %v1214_v4, %v1213_v42  ;;  %v1165_v60 = vsel %vm7069_vm2, %v6826_v3, %v7068_v55  ;;  %v7071_v10 = vunpack.i.h.bf16 %v5516_v8  ;;  %v7073_v4 = vunpack.i.l.bf16 %v5295_v0  ;;  %vm7106_vm2 = vmmov %vm7085_vm0 }
 0x2a5   :  { %v1434_v5 = vpack.c.bf16 %v1208_v51, %v1207_v57  ;;  %v7075_v55 = vunpack.i.h.bf16 %v5295_v0  ;;  %v7076_v3 = vunpack.i.l.bf16 %v5405_v14  ;;  %v3216_v45 = vunpack.i.h.bf16 %v5419_v58 }
 0x2a6   :  { %v1166_v42 = vsel %vm7072_vm3, %v7071_v10, %v7070_v62  ;;  %v1115_v15 = vsel %vm242_vm11, %v7073_v4, %v3195_v1  ;;  %1524 = vmatpush1.bf16.msra.mxu0 %v1431_v7  ;;  %1573 = vmatpush1.bf16.msra.mxu1 %v5153_v22  ;;  %v7078_v57 = vunpack.i.h.bf16 %v5405_v14  ;;  %v7081_v7 = vunpack.i.l.bf16 %v5293_v31 }
 0x2a7   :  { %v1116_v18 = vsel %vm242_vm11, %v7075_v55, %v7074_v50  ;;  %v1159_v26 = vsel %vm7077_vm14, %v3135_v16, %v7076_v3  ;;  %1525 = vmatprep.subr.bf16.mxu0 %v1424_v59  ;;  %v7080_v50 = vunpack.i.l.bf16 %v5407_v43  ;;  %v7083_v3 = vunpack.i.h.bf16 %v5407_v43  ;;  %v5631_v59 = vpop.permute.xlu0 %3288  ;;  %v5633_v4 = vpop.permute.xlu1 %3258  ;;  %1574 = vmatprep.subr.bf16.mxu1 %v1434_v5 }
 0x2a8   :  { %v1160_v51 = vsel %vm7079_vm7, %v3136_v39, %v7078_v57  ;;  %v7084_v58 = vunpack.i.h.bf16 %v5293_v31  ;;  %v1433_v16 = vpack.c.bf16 %v1210_v48, %v5498_v63  ;;  %v3220_v39 = vunpack.i.l.bf16 %v5450_v34 }
 0x2a9   :  { %v1067_v62 = vsel %vm7082_vm12, %v7081_v7, %v7080_v50  ;;  %v1423_v10 = vpack.c.bf16 %v1166_v42, %v1165_v60  ;;  %v1425_v55 = vpack.c.bf16 %v5572_v19, %v5566_v17  ;;  %v6827_v57 = vunpack.i.h.bf16 %v5633_v4 }
 0x2aa   :  { %v1068_v22 = vsel %vm7085_vm0, %v7084_v58, %v7083_v3  ;;  %v6828_v50 = vunpack.i.l.bf16 %v5633_v4  ;;  %v1416_v7 = vpack.c.bf16 %v1116_v18, %v1115_v15  ;;  %v7086_v63 = vunpack.i.l.bf16 %v5310_v23  ;;  %1575 = vmatpush1.bf16.msra.mxu1 %v1433_v16 }
 0x2ab   :  { %1526 = vmatpush1.bf16.msra.mxu0 %v1423_v10  ;;  %v1426_v60 = vpack.c.bf16 %v1160_v51, %v1159_v26  ;;  %v1408_v42 = vpack.c.bf16 %v1068_v22, %v1067_v62  ;;  %v7087_v3 = vunpack.i.l.bf16 %v5303_v49  ;;  %v3250_v17 = vunpack.i.l.bf16 %v5484_v54  ;;  %v5665_v22 = vpop.permute.xlu0 %3298  ;;  %v5667_v10 = vpop.permute.xlu1 %3263 }
 0x2ac   :  { %v1113_v48 = vsel %vm242_vm11, %v3195_v1, %v7086_v63  ;;  %v7088_v19 = vunpack.i.l.bf16 %v5295_v0  ;;  %v7089_v18 = vunpack.i.h.bf16 %v5295_v0  ;;  %1527 = vmatprep.subr.bf16.mxu0 %v1416_v7  ;;  %v7090_v26 = vunpack.i.h.bf16 %v5303_v49 }
 0x2ad   :  { %v1401_v5 = vsel %vm621_vm5, %v3215_v36, %v7087_v3  ;;  %v3251_v62 = vunpack.i.h.bf16 %v5484_v54  ;;  %v7091_v0 = vmov %v7086_v63  ;;  %v7092_v63 = vunpack.i.h.bf16 %v5310_v23  ;;  %1576 = vmatprep.subr.bf16.mxu1 %v1426_v60 }
 0x2ae   :  { %v1117_v15 = vsel %vm242_vm11, %v6828_v50, %v7088_v19  ;;  %v1118_v1 = vsel %vm242_vm11, %v6827_v57, %v7089_v18  ;;  %v1402_v51 = vsel %vm621_vm5, %v3216_v45, %v7090_v26  ;;  %v1111_v7 = vsel %vm242_vm11, %v7091_v0, %v3220_v39  ;;  %1577 = vmatpush1.bf16.msra.mxu1 %v1425_v55 }
 0x2af   :  { %v1415_v58 = vpack.c.bf16 %v1118_v1, %v1117_v15  ;;  %v1112_v54 = vsel %vm242_vm11, %v7092_v63, %v6829_v28  ;;  %v6830_v16 = vunpack.i.h.bf16 %v5665_v22  ;;  %v6831_v3 = vunpack.i.l.bf16 %v5665_v22 }
 0x2b0   :  { %v3266_v19 = vunpack.i.h.bf16 %v5667_v10  ;;  %v3265_v15 = vunpack.i.l.bf16 %v5667_v10  ;;  %v7093_v18 = vmov %v7092_v63  ;;  %v7094_v1 = vunpack.i.h.bf16 %v5388_v11 }
 0x2b1   :  { %v7095_v0 = vunpack.i.l.bf16 %v5312_v38  ;;  %v7096_v57 = vunpack.i.h.bf16 %v5312_v38  ;;  %1528 = vmatpush1.bf16.msra.mxu0 %v1415_v58  ;;  %v1472_v28 = vpack.c.bf16 %v1402_v51, %v1401_v5  ;;  %v7097_v60 = vunpack.i.l.bf16 %v5407_v43  ;;  %v5718_v5 = vld [vmem:[%s6707_s5 + $0x10] sm:$0xff] }
 0x2b2   :  { %v1114_v26 = vsel %vm242_vm11, %v7094_v1, %v7093_v18  ;;  %v7099_v11 = vunpack.i.l.bf16 %v5293_v31  ;;  %1529 = vmatprep.subr.bf16.mxu0 %v1408_v42  ;;  %v7103_v51 = vunpack.i.h.bf16 %v5407_v43  ;;  %v1063_v42 = vsel %vm7105_vm13, %v3250_v17, %v3265_v15 }
 0x2b3   :  { %v1403_v63 = vsel %vm621_vm5, %v7095_v0, %v3215_v36  ;;  %v1404_v50 = vsel %vm621_vm5, %v7096_v57, %v3216_v45  ;;  %v1065_v23 = vsel %vm7098_vm9, %v7097_v60, %v3250_v17  ;;  %v7101_v36 = vunpack.i.h.bf16 %v5293_v31  ;;  %v3304_v31 = vpop.permute.xlu0 %3303  ;;  %v5724_v0 = vpop.permute.xlu1 %3268 }
 0x2b4   :  { %v1069_v18 = vsel %vm7100_vm10, %v6831_v3, %v7099_v11  ;;  %v1418_v57 = vpack.c.bf16 %v1112_v54, %v1111_v7  ;;  %v1066_v58 = vsel %vm7104_vm6, %v7103_v51, %v3251_v62  ;;  %v1064_v7 = vsel %vm7106_vm2, %v3251_v62, %v3266_v19 }
 0x2b5   :  { %v1070_v45 = vsel %vm7102_vm15, %v6830_v16, %v7101_v36  ;;  %v3246_v43 = vunpack.i.h.bf16 %v5576_v12  ;;  %v3245_v54 = vunpack.i.l.bf16 %v5576_v12  ;;  %v3306_v60 = vunpack.i.h.bf16 %v3304_v31 }
 0x2b6   :  { %v1407_v1 = vpack.c.bf16 %v1070_v45, %v1069_v18  ;;  %v3305_v11 = vunpack.i.l.bf16 %v3304_v31  ;;  %1578 = vmatprep.subr.bf16.mxu1 %v1418_v57  ;;  %v1417_v55 = vpack.c.bf16 %v1114_v26, %v1113_v48  ;;  %v3276_v18 = vunpack.i.h.bf16 %v5574_v29 }
 0x2b7   :  { %v3275_v36 = vunpack.i.l.bf16 %v5574_v29  ;;  %v5740_v17 = vcombine.high %v5718_v5, %v5718_v5  ;;  %v1471_v45 = vpack.c.bf16 %v1404_v50, %v1403_v63  ;;  %v1410_v62 = vpack.c.bf16 %v1064_v7, %v1063_v42  ;;  %v3309_v63 = vpop.permute.xlu0 %3308 }
 0x2b8   :  { %1530 = vmatpush1.bf16.msra.mxu0 %v1407_v1  ;;  %v1345_v51 = vsel %vm209_vm4, %v3305_v11, %v3245_v54  ;;  %v1346_v48 = vsel %vm209_vm4, %v3306_v60, %v3246_v43  ;;  %v1409_v26 = vpack.c.bf16 %v1066_v58, %v1065_v23  ;;  %v7107_v29 = vunpack.i.l.bf16 %v5417_v20  ;;  %1579 = vmatpush1.bf16.msra.mxu1 %v1417_v55  ;;  %v5758_v1 = vpop.permute.xlu1 %3278  ;;  %v5765_v58 = vld [vmem:[%s6707_s5] ss:$8 sps:$4 sm:$0xff]  }
 0x2b9   :  { %1545 = vmatprep.subr.bf16.mxu0 %v1472_v28  ;;  %v7108_v50 = vunpack.i.h.bf16 %v5417_v20  ;;  %v1468_v31 = vpack.c.bf16 %v1346_v48, %v1345_v51  ;;  %v3311_v42 = vunpack.i.h.bf16 %v3309_v63  ;;  %v3310_v7 = vunpack.i.l.bf16 %v3309_v63  ;;  %1580 = vmatprep.subr.bf16.mxu1 %v1410_v62 }
 0x2ba   :  { %v1347_v57 = vsel %vm209_vm4, %v7107_v29, %v3305_v11  ;;  %v3281_v16 = vunpack.i.h.bf16 %v5758_v1  ;;  %v3280_v23 = vunpack.i.l.bf16 %v5758_v1  ;;  %v7109_v20 = vunpack.i.l.bf16 %v5303_v49 }
 0x2bb   :  { %v1348_v28 = vsel %vm209_vm4, %v7108_v50, %v3306_v60  ;;  %v7110_v11 = vunpack.i.h.bf16 %v5303_v49  ;;  %v3271_v51 = vunpack.i.h.bf16 %v5724_v0  ;;  %v3270_v48 = vunpack.i.l.bf16 %v5724_v0 }
 0x2bc   :  { %v1399_v60 = vsel %vm621_vm5, %v7109_v20, %v3275_v36  ;;  %1546 = vmatpush2.bf16.msra.mxu0 %v1471_v45  ;;  %v1467_v62 = vpack.c.bf16 %v1348_v28, %v1347_v57  ;;  %v7111_v29 = vunpack.i.l.bf16 %v5448_v53  ;;  %v1397_v49 = vsel %vm621_vm5, %v3275_v36, %v3280_v23  ;;  %1581 = vmatpush1.bf16.msra.mxu1 %v1409_v26  ;;  %v3314_v57 = vpop.permute.xlu0 %3313  ;;  %v5793_v28 = vpop.permute.xlu1 %3283 }
 0x2bd   :  { %v1400_v55 = vsel %vm621_vm5, %v7110_v11, %v3276_v18  ;;  %1617 = vmatprep.subr.bf16.mxu0 %v1468_v31  ;;  %v1398_v63 = vsel %vm621_vm5, %v3276_v18, %v3281_v16  ;;  %v7112_v20 = vunpack.i.h.bf16 %v5448_v53  ;;  %v1297_v11 = vsel %vm572_vm8, %v3310_v7, %v3270_v48 }
 0x2be   :  { %v1299_v50 = vsel %vm572_vm8, %v7111_v29, %v3310_v7  ;;  %v1474_v31 = vpack.c.bf16 %v1398_v63, %v1397_v49  ;;  %v1298_v36 = vsel %vm572_vm8, %v3311_v42, %v3271_v51  ;;  %v3316_v29 = vunpack.i.h.bf16 %v3314_v57 }
 0x2bf   :  { %v1300_v45 = vsel %vm572_vm8, %v7112_v20, %v3311_v42  ;;  %v3315_v18 = vunpack.i.l.bf16 %v3314_v57  ;;  %v3286_v53 = vunpack.i.h.bf16 %v5793_v28  ;;  %v3285_v3 = vunpack.i.l.bf16 %v5793_v28  ;;  %1548 = vmatmul.mubr.bf16.vlgmr.msra.gmra.mxu0 %v5765_v58 }
 0x2c0   :  { %v1473_v26 = vpack.c.bf16 %v1400_v55, %v1399_v60  ;;  %1596 = vmatprep.subr.bf16.mxu1 %v1474_v31  ;;  %1618 = vmatpush1.bf16.msra.mxu0 %v1467_v62  ;;  %v1460_v49 = vpack.c.bf16 %v1298_v36, %v1297_v11  ;;  %vm7113_vm3 = vcmp.lt.s32.totalorder %v3895_v56, 127  ;;  %vm7115_vm7 = vcmask 130048   ;;  %v3319_v60 = vpop.permute.xlu0 %3318  ;;  %v5814_v55 = vpop.permute.xlu1 %3293 }
 0x2c1   :  { %v1249_v7 = vsel %vm7113_vm3, %v3315_v18, %v3285_v3  ;;  %vm7114_vm14 = vmmov %vm7113_vm3  ;;  %2646 = vmatprep.mubr.msk.bf16.mxu0 %vm7115_vm7, %v5740_v17  ;;  %v1459_v63 = vpack.c.bf16 %v1300_v45, %v1299_v50  ;;  %v5818_v20 = vcombine.low %v5718_v5, %v5718_v5  ;;  %v7116_v57 = vunpack.i.l.bf16 %v5486_v24 }
 0x2c2   :  { %v1250_v42 = vsel %vm7114_vm14, %v3316_v29, %v3286_v53  ;;  %1597 = vmatpush2.bf16.msra.mxu1 %v1473_v26  ;;  %1619 = vmatprep.subr.bf16.mxu0 %v1460_v49  ;;  %vm7117_vm12 = vmmov %vm7113_vm3  ;;  %v7118_v11 = vunpack.i.h.bf16 %v5486_v24  ;;  %v3321_v45 = vunpack.i.h.bf16 %v3319_v60  ;;  %v3320_v36 = vunpack.i.l.bf16 %v3319_v60 }
 0x2c3   :  { %v1452_v62 = vpack.c.bf16 %v1250_v42, %v1249_v7  ;;  %v1251_v31 = vsel %vm7117_vm12, %v7116_v57, %v3315_v18  ;;  %vm7119_vm0 = vmmov %vm7113_vm3  ;;  %v3291_v26 = vunpack.i.h.bf16 %v5631_v59  ;;  %v3290_v49 = vunpack.i.l.bf16 %v5631_v59 }
 0x2c4   :  { %v1252_v50 = vsel %vm7119_vm0, %v7118_v11, %v3316_v29  ;;  %1620 = vmatpush1.bf16.msra.mxu0 %v1459_v63  ;;  %v1343_v5 = vsel %vm209_vm4, %v3245_v54, %v3320_v36  ;;  %v1344_v24 = vsel %vm209_vm4, %v3246_v43, %v3321_v45  ;;  %v5839_v18 = vpop.permute.xlu0 %3343  ;;  %v3324_v7 = vpop.permute.xlu1 %3323  ;;  %v7120_v42 = vunpack.i.l.bf16 %v5262_v40  ;;  %vm7122_vm9 = vmmov %vm7115_vm7 }
 0x2c5   :  { %1599 = vmatmul.mubr.bf16.vlgmr.msra.gmra.mxu1 %v5765_v58  ;;  %v1451_v29 = vpack.c.bf16 %v1252_v50, %v1251_v31  ;;  %1621 = vmatprep.subr.bf16.mxu0 %v1452_v62  ;;  %v7121_v63 = vunpack.i.h.bf16 %v5262_v40  ;;  %v1469_v54 = vpack.c.bf16 %v1344_v24, %v1343_v5  ;;  %v3326_v60 = vunpack.i.h.bf16 %v3324_v7  ;;  %vm7123_vm10 = vmmov %vm7115_vm7 }
 0x2c6   :  { %v1357_v59 = vsel %vm209_vm4, %v3320_v36, %v7120_v42  ;;  %v3325_v43 = vunpack.i.l.bf16 %v3324_v7  ;;  %2648 = vmatprep.mubr.msk.bf16.mxu1 %vm7122_vm9, %v5740_v17  ;;  %v3296_v62 = vunpack.i.h.bf16 %v5814_v55  ;;  %v3295_v57 = vunpack.i.l.bf16 %v5814_v55  ;;  %vm7132_vm13 = vmmov %vm7119_vm0 }
 0x2c7   :  { %v1358_v12 = vsel %vm209_vm4, %v3321_v45, %v7121_v63  ;;  %1558 = vmatmul.mubr.bf16.gmra.mxu0 %v5818_v20  ;;  %v7124_v40 = vunpack.i.l.bf16 %v5390_v25  ;;  %v7125_v50 = vunpack.i.h.bf16 %v5390_v25  ;;  %v1296_v55 = vsel %vm572_vm8, %v3271_v51, %v3326_v60  ;;  %vm7133_vm2 = vmmov %vm7119_vm0 }
 0x2c8   :  { %1622 = vmatpush1.bf16.msra.mxu0 %v1451_v29  ;;  %v1470_v31 = vpack.c.bf16 %v1358_v12, %v1357_v59  ;;  %2649 = vmatprep.mubr.msk.bf16.mxu0 %vm7123_vm10, %v5238_v2  ;;  %v1295_v36 = vsel %vm572_vm8, %v3270_v48, %v3325_v43  ;;  %v3349_v24 = vpop.permute.xlu0 %3348  ;;  %v3329_v29 = vpop.permute.xlu1 %3328  ;;  %v7126_v7 = vunpack.i.l.bf16 %v5274_v47  ;;  %v7127_v42 = vunpack.i.h.bf16 %v5274_v47  ;;  %vm7135_vm3 = vmmov %vm7119_vm0 }
 0x2c9   :  { %v1205_v11 = vsel %vm176_vm1, %v7124_v40, %v3290_v49  ;;  %v1206_v45 = vsel %vm176_vm1, %v7125_v50, %v3291_v26  ;;  %1623 = vmatprep.subr.bf16.mxu0 %v5208_v6  ;;  %v1461_v5 = vpack.c.bf16 %v1296_v55, %v1295_v36  ;;  %v3351_v0 = vunpack.i.h.bf16 %v3349_v24  ;;  %vm7137_vm14 = vmmov %vm7119_vm0 }
 0x2ca   :  { %1668 = vmatprep.subr.bf16.mxu1 %v1470_v31  ;;  %v1309_v25 = vsel %vm572_vm8, %v3325_v43, %v7126_v7  ;;  %v1310_v48 = vsel %vm572_vm8, %v3326_v60, %v7127_v42  ;;  %v3350_v59 = vunpack.i.l.bf16 %v3349_v24  ;;  %v3331_v51 = vunpack.i.h.bf16 %v3329_v29 }
 0x2cb   :  { %1669 = vmatpush1.bf16.msra.mxu1 %v1469_v54  ;;  %v3330_v63 = vunpack.i.l.bf16 %v3329_v29  ;;  %v1435_v6 = vpack.c.bf16 %v1206_v45, %v1205_v11  ;;  %v7128_v12 = vunpack.i.h.bf16 %v5405_v14  ;;  %vm7129_vm15 = vcmp.lt.s32.totalorder %v3895_v56, 21 }
 0x2cc   :  { %v7130_v40 = vunpack.i.l.bf16 %v5405_v14  ;;  %vm7131_vm6 = vmmov %vm7129_vm15  ;;  %1624 = vmatpush1.bf16.msra.mxu0 %v5212_v32  ;;  %v1462_v47 = vpack.c.bf16 %v1310_v48, %v1309_v25  ;;  %v1247_v54 = vsel %vm7132_vm13, %v3285_v3, %v3350_v59  ;;  %v1248_v60 = vsel %vm7133_vm2, %v3286_v53, %v3351_v0  ;;  %v3354_v50 = vpop.permute.xlu0 %3353  ;;  %v3334_v45 = vpop.permute.xlu1 %3333 }
 0x2cd   :  { %v1158_v31 = vsel %vm7129_vm15, %v7128_v12, %v3296_v62  ;;  %1609 = vmatmul.mubr.bf16.gmra.mxu1 %v5818_v20  ;;  %v1203_v14 = vsel %vm176_vm1, %v3290_v49, %v3330_v63  ;;  %v1204_v11 = vsel %vm176_vm1, %v3291_v26, %v3331_v51  ;;  %v1453_v32 = vpack.c.bf16 %v1248_v60, %v1247_v54  ;;  %vm7139_vm12 = vmmov %vm7131_vm6 }
 0x2ce   :  { %v1157_v43 = vsel %vm7131_vm6, %v7130_v40, %v3295_v57  ;;  %1670 = vmatprep.subr.bf16.mxu1 %v1462_v47  ;;  %v1436_v36 = vpack.c.bf16 %v1204_v11, %v1203_v14  ;;  %v7134_v3 = vunpack.i.l.bf16 %v5272_v41  ;;  %v7136_v53 = vunpack.i.h.bf16 %v5272_v41  ;;  %2651 = vmatprep.mubr.msk.bf16.mxu1 %vm7115_vm7, %v5238_v2  ;;  %vm7140_vm0 = vmmov %vm7131_vm6 }
 0x2cf   :  { %1671 = vmatpush1.bf16.msra.mxu1 %v1461_v5  ;;  %v3356_v49 = vunpack.i.h.bf16 %v3354_v50  ;;  %v3355_v24 = vunpack.i.l.bf16 %v3354_v50  ;;  %v3336_v29 = vunpack.i.h.bf16 %v3334_v45  ;;  %v3335_v26 = vunpack.i.l.bf16 %v3334_v45  ;;  %vm7145_vm15 = vmmov %vm7140_vm0 }
 0x2d0   :  { %v1261_v28 = vsel %vm7135_vm3, %v3350_v59, %v7134_v3  ;;  %v1262_v55 = vsel %vm7137_vm14, %v3351_v0, %v7136_v53  ;;  %v3346_v7 = vunpack.i.h.bf16 %v5839_v18  ;;  %v3345_v25 = vunpack.i.l.bf16 %v5839_v18  ;;  %1625 = vmatprep.subr.bf16.mxu0 %v1436_v36  ;;  %v5925_v59 = vpop.permute.xlu0 %3358  ;;  %v3339_v12 = vpop.permute.xlu1 %3338  ;;  %vm7146_vm6 = vmmov %vm7140_vm0 }
 0x2d1   :  { %v1454_v42 = vpack.c.bf16 %v1262_v55, %v1261_v28  ;;  %v1109_v41 = vsel %vm242_vm11, %v3220_v39, %v3335_v26  ;;  %v7138_v5 = vunpack.i.h.bf16 %v5450_v34  ;;  %1626 = vmatpush1.bf16.msra.mxu0 %v1435_v6  ;;  %v1155_v2 = vsel %vm7139_vm12, %v3295_v57, %v3355_v24  ;;  %vm7150_vm3 = vmmov %vm7140_vm0 }
 0x2d2   :  { %v1156_v0 = vsel %vm7140_vm0, %v3296_v62, %v3356_v49  ;;  %v1427_v18 = vpack.c.bf16 %v1158_v31, %v1157_v43  ;;  %v3361_v39 = vunpack.i.h.bf16 %v5925_v59  ;;  %v3360_v34 = vunpack.i.l.bf16 %v5925_v59  ;;  %vm7152_vm14 = vmmov %vm7140_vm0 }
 0x2d3   :  { %v1110_v48 = vsel %vm242_vm11, %v7138_v5, %v3336_v29  ;;  %1672 = vmatprep.subr.bf16.mxu1 %v1454_v42  ;;  %v1428_v40 = vpack.c.bf16 %v1156_v0, %v1155_v2  ;;  %v3341_v47 = vunpack.i.h.bf16 %v3339_v12  ;;  %v3340_v54 = vunpack.i.l.bf16 %v3339_v12 }
 0x2d4   :  { %1673 = vmatpush1.bf16.msra.mxu1 %v1453_v32  ;;  %vm7141_vm9 = vcmp.lt.s32.totalorder %v3895_v56, 23  ;;  %v1419_v6 = vpack.c.bf16 %v1110_v48, %v1109_v41  ;;  %v1108_v10 = vsel %vm242_vm11, %v3336_v29, %v3361_v39  ;;  %v5950_v60 = vpop.permute.xlu1 %3373  ;;  %v7144_v11 = vunpack.i.h.bf16 %v5518_v27 }
 0x2d5   :  { %v1061_v57 = vsel %vm7141_vm9, %v3265_v15, %v3345_v25  ;;  %vm7142_vm10 = vmmov %vm7141_vm9  ;;  %1674 = vmatprep.subr.bf16.mxu1 %v5214_v13  ;;  %1627 = vmatprep.subr.bf16.mxu0 %v1428_v40  ;;  %v1201_v31 = vsel %vm176_vm1, %v3330_v63, %v3340_v54  ;;  %v1202_v43 = vsel %vm176_vm1, %v3331_v51, %v3341_v47  ;;  %v3364_v13 = vpop.permute.xlu0 %3363  ;;  %v7143_v63 = vunpack.i.l.bf16 %v5518_v27 }
 0x2d6   :  { %v1062_v62 = vsel %vm7142_vm10, %v3266_v19, %v3346_v7  ;;  %1628 = vmatpush1.bf16.msra.mxu0 %v1427_v18  ;;  %v1107_v15 = vsel %vm242_vm11, %v3335_v26, %v3360_v34  ;;  %v1437_v19 = vpack.c.bf16 %v1202_v43, %v1201_v31  ;;  %v1200_v32 = vsel %vm176_vm1, %v3341_v47, %v7144_v11  ;;  %vm7147_vm13 = vmmov %vm7141_vm9 }
 0x2d7   :  { %v1420_v14 = vpack.c.bf16 %v1108_v10, %v1107_v15  ;;  %v1199_v51 = vsel %vm176_vm1, %v3340_v54, %v7143_v63  ;;  %v3366_v50 = vunpack.i.h.bf16 %v3364_v13  ;;  %v3365_v45 = vunpack.i.l.bf16 %v3364_v13  ;;  %vm7148_vm2 = vmmov %vm7141_vm9 }
 0x2d8   :  { %1675 = vmatpush1.bf16.msra.mxu1 %v5216_v9  ;;  %v3376_v36 = vunpack.i.h.bf16 %v5950_v60  ;;  %v3375_v3 = vunpack.i.l.bf16 %v5950_v60  ;;  %v1411_v28 = vpack.c.bf16 %v1062_v62, %v1061_v57  ;;  %v1438_v53 = vpack.c.bf16 %v1200_v32, %v1199_v51  ;;  %v3379_v41 = vpop.permute.xlu1 %3378  ;;  %vm7156_vm7 = vmmov %vm7148_vm2 }
 0x2d9   :  { %1629 = vmatprep.subr.bf16.mxu0 %v1420_v14  ;;  %v1153_v55 = vsel %vm7145_vm15, %v3355_v24, %v3365_v45  ;;  %v1154_v27 = vsel %vm7146_vm6, %v3356_v49, %v3366_v50  ;;  %v3369_v42 = vpop.permute.xlu0 %3368  ;;  %v7149_v48 = vunpack.i.l.bf16 %v5516_v8  ;;  %v7151_v2 = vunpack.i.h.bf16 %v5516_v8  ;;  %vm7158_vm12 = vmmov %vm7148_vm2 }
 0x2da   :  { %1630 = vmatpush1.bf16.msra.mxu0 %v1419_v6  ;;  %v1059_v29 = vsel %vm7147_vm13, %v3345_v25, %v3375_v3  ;;  %v1060_v9 = vsel %vm7148_vm2, %v3346_v7, %v3376_v36  ;;  %v1429_v26 = vpack.c.bf16 %v1154_v27, %v1153_v55  ;;  %1676 = vmatprep.subr.bf16.mxu1 %v1438_v53  ;;  %v3371_v25 = vunpack.i.h.bf16 %v3369_v42  ;;  %vm7159_vm0 = vmmov %vm7148_vm2 }
 0x2db   :  { %v1412_v5 = vpack.c.bf16 %v1060_v9, %v1059_v29  ;;  %v1151_v24 = vsel %vm7150_vm3, %v3365_v45, %v7149_v48  ;;  %v1152_v49 = vsel %vm7152_vm14, %v3366_v50, %v7151_v2  ;;  %v3370_v0 = vunpack.i.l.bf16 %v3369_v42  ;;  %vm7160_vm9 = vmmov %vm7159_vm0 }
 0x2dc   :  { %1677 = vmatpush1.bf16.msra.mxu1 %v1437_v19  ;;  %v3381_v18 = vunpack.i.h.bf16 %v3379_v41  ;;  %v3380_v7 = vunpack.i.l.bf16 %v3379_v41  ;;  %v1430_v12 = vpack.c.bf16 %v1152_v49, %v1151_v24  ;;  %v3384_v6 = vpop.permute.xlu1 %3383  ;;  %v7153_v60 = vunpack.i.l.bf16 %v5633_v4 }
 0x2dd   :  { %1631 = vmatprep.subr.bf16.mxu0 %v1412_v5  ;;  %v3389_v62 = vpop.permute.xlu0 %3388  ;;  %v3385_v15 = vunpack.i.l.bf16 %v3384_v6  ;;  %v7154_v63 = vunpack.i.h.bf16 %v5633_v4  ;;  %v7155_v59 = vunpack.i.l.bf16 %v5665_v22  ;;  %v7157_v50 = vunpack.i.h.bf16 %v5665_v22 }
 0x2de   :  { %v1395_v40 = vsel %vm621_vm5, %v3280_v23, %v3380_v7  ;;  %v1396_v8 = vsel %vm621_vm5, %v3281_v16, %v3381_v18  ;;  %1632 = vmatpush1.bf16.msra.mxu0 %v1411_v28  ;;  %v1393_v47 = vsel %vm621_vm5, %v3380_v7, %v3370_v0  ;;  %v1394_v54 = vsel %vm621_vm5, %v3381_v18, %v3371_v25 }
 0x2df   :  { %v1475_v57 = vpack.c.bf16 %v1396_v8, %v1395_v40  ;;  %1678 = vmatprep.subr.bf16.mxu1 %v1430_v12  ;;  %v1476_v31 = vpack.c.bf16 %v1394_v54, %v1393_v47  ;;  %v3390_v43 = vunpack.i.l.bf16 %v3389_v62  ;;  %v3386_v23 = vunpack.i.h.bf16 %v3384_v6 }
 0x2e0   :  { %1679 = vmatpush1.bf16.msra.mxu1 %v1429_v26  ;;  %v3391_v1 = vunpack.i.h.bf16 %v3389_v62  ;;  %v1105_v10 = vsel %vm242_vm11, %v3360_v34, %v3385_v15  ;;  %v3394_v13 = vpop.permute.xlu1 %3393  ;;  %v1103_v14 = vsel %vm242_vm11, %v3385_v15, %v7153_v60  ;;  %v7161_v55 = vunpack.i.l.bf16 %v5312_v38 }
 0x2e1   :  { %1647 = vmatprep.subr.bf16.mxu0 %v1476_v31  ;;  %v1106_v16 = vsel %vm242_vm11, %v3361_v39, %v3386_v23  ;;  %v1104_v51 = vsel %vm242_vm11, %v3386_v23, %v7154_v63  ;;  %v3396_v11 = vunpack.i.h.bf16 %v3394_v13  ;;  %v3395_v39 = vunpack.i.l.bf16 %v3394_v13 }
 0x2e2   :  { %1648 = vmatpush2.bf16.msra.mxu0 %v1475_v57  ;;  %v1421_v19 = vpack.c.bf16 %v1106_v16, %v1105_v10  ;;  %v1422_v32 = vpack.c.bf16 %v1104_v51, %v1103_v14  ;;  %v1055_v34 = vsel %vm7156_vm7, %v3390_v43, %v7155_v59  ;;  %v1056_v45 = vsel %vm7158_vm12, %v3391_v1, %v7157_v50 }
 0x2e3   :  { %v1057_v4 = vsel %vm7159_vm0, %v3375_v3, %v3390_v43  ;;  %v1058_v28 = vsel %vm7160_vm9, %v3376_v36, %v3391_v1  ;;  %v1414_v53 = vpack.c.bf16 %v1056_v45, %v1055_v34  ;;  %v1405_v27 = vsel %vm621_vm5, %v3395_v39, %v7161_v55 }
 0x2e4   :  { %1680 = vmatprep.subr.bf16.mxu1 %v1422_v32  ;;  %v7162_v29 = vunpack.i.h.bf16 %v5312_v38  ;;  %vm7163_vm10 = vcmask 130048   ;;  %v1413_v3 = vpack.c.bf16 %v1058_v28, %v1057_v4  ;;  %v1392_v36 = vsel %vm621_vm5, %v3371_v25, %v3396_v11  ;;  %v6045_v48 = vpop.permute.xlu0 %1486 }
 0x2e5   :  { %1650 = vmatmul.mubr.bf16.vlgmr.msra.gmra.mxu0 %v5765_v58  ;;  %1681 = vmatpush1.bf16.msra.mxu1 %v1421_v19  ;;  %v1391_v9 = vsel %vm621_vm5, %v3370_v0, %v3395_v39  ;;  %v7164_v38 = vmov 0   ;;  %vm7165_vm15 = vmmov %vm7163_vm10  ;;  %vm2179_vm6 = vcmask 1043456   ;;  %vm7166_vm13 = vcmp.lt.s32.totalorder %v3895_v56, 127 }
 0x2e6   :  { %v1406_v22 = vsel %vm621_vm5, %v3396_v11, %v7162_v29  ;;  %2650 = vmatprep.mubr.msk.bf16.mxu0 %vm7163_vm10, %v5740_v17  ;;  %1682 = vmatprep.subr.bf16.mxu1 %v1414_v53  ;;  %v1477_v42 = vpack.c.bf16 %v1392_v36, %v1391_v9  ;;  %vm7167_vm2 = vmmov %vm7166_vm13  ;;  %vm7172_vm7 = vcmp.lt.s32.totalorder %v3895_v56, 21 }
 0x2e7   :  { %v1478_v26 = vpack.c.bf16 %v1406_v22, %v1405_v27  ;;  %vm7168_vm3 = vmmov %vm7167_vm2 }
 0x2e8   :  { %v6049_v25 = vpop.permute.xlu1 %1491  ;;  %vm7169_vm14 = vmmov %vm7167_vm2 }
 0x2e9   :  { %1683 = vmatpush1.bf16.msra.mxu1 %v1413_v3  ;;  %vm7173_vm12 = vmmov %vm7172_vm7 }
 0x2ea   :  { %1698 = vmatprep.subr.bf16.mxu1 %v1478_v26  ;;  %vm7180_vm9 = vmmov %vm7172_vm7 }
 0x2eb   :  { %vm7183_vm10 = vmmov %vm7172_vm7 }
 0x2ec   :  { %v6060_v60 = vpop.permute.xlu1 %1761 }
 0x2ed   :  { %1660 = vmatmul.mubr.bf16.gmra.mxu0 %v5818_v20  ;;  %1699 = vmatpush2.bf16.msra.mxu1 %v1477_v42 }
 0x2ee   :  { %2236 = vmatprep.mubr.bf16.mxu0 %v7164_v38 }
 0x2f0   :  { %1701 = vmatmul.mubr.bf16.vlgmr.msra.gmra.mxu1 %v5765_v58 }
 0x2f1   :  { %2652 = vmatprep.mubr.msk.bf16.mxu1 %vm7165_vm15, %v5740_v17  ;;  %vm7185_vm15 = vmmov %vm7159_vm0 }
 0x2f8   :  { %1711 = vmatmul.mubr.bf16.gmra.mxu1 %v5818_v20 }
 0x2f9   :  { %2287 = vmatprep.mubr.bf16.mxu1 %v7164_v38 }
 0x37f   :  { %v6041_v41 = vpop.f32.mrf.mxu0 }
 0x381   :  { %v6043_v5 = vpop.f32.mrf.mxu0 }
 0x383   :  { %v1553_v24 = vpop.f32.mrf.mxu0 }
 0x384   :  { %v1554_v58 = vadd.f32 %v1553_v24, %v6045_v48 }
 0x385   :  { %v6047_v2 = vpop.f32.mrf.mxu1  ;;  %v1555_v49 = vpop.f32.mrf.mxu0 }
 0x386   :  { %v1556_v20 = vadd.f32 %v1555_v49, %v6045_v48  ;;  %v1727_v40 = vmax.f32 %v1554_v58, 0.0  ;;  %v1823_v58 = vpop.permute.xlu0 %1822 }
 0x387   :  { %v6052_v0 = vpop.f32.mrf.mxu1  ;;  %v1559_v17 = vpop.f32.mrf.mxu0 }
 0x388   :  { %v1560_v18 = vadd.f32 %v1559_v17, %v6049_v25  ;;  %v1728_v6 = vmax.f32 %v1556_v20, 0.0 }
 0x389   :  { %v1604_v7 = vpop.f32.mrf.mxu1  ;;  %v1561_v12 = vpop.f32.mrf.mxu0 }
 0x38a   :  { %v1735_v8 = vmax.f32 %v1560_v18, 0.0  ;;  %v1605_v47 = vadd.f32 %v1604_v7, %v6045_v48  ;;  %v1562_v54 = vadd.f32 %v1561_v12, %v6049_v25  ;;  %v6068_v12 = vrot.slane %v1823_v58, %v7045_v21 }
 0x38b   :  { %v1606_v57 = vpop.f32.mrf.mxu1  ;;  %v1563_v62 = vpop.f32.mrf.mxu0 }
 0x38c   :  { %v1743_v31 = vmul.f32 %v1735_v8, %v1727_v40  ;;  %v1736_v43 = vmax.f32 %v1562_v54, 0.0  ;;  %v1607_v23 = vadd.f32 %v1606_v57, %v6045_v48  ;;  %v1729_v10 = vmax.f32 %v1605_v47, 0.0 }
 0x38d   :  { %v1610_v15 = vpop.f32.mrf.mxu1  ;;  %v1564_v1 = vpop.f32.mrf.mxu0 }
 0x38e   :  { %v1751_v16 = vmax.f32 %v1743_v31, 0.0  ;;  %v1744_v19 = vmul.f32 %v1736_v43, %v1728_v6  ;;  %v1611_v13 = vadd.f32 %v1610_v15, %v6049_v25  ;;  %v1730_v14 = vmax.f32 %v1607_v23, 0.0 }
 0x38f   :  { %v1612_v63 = vpop.f32.mrf.mxu1 }
 0x390   :  { %v1764_v51 = vmul.f32 %v6060_v60, %v1751_v16  ;;  %v1752_v11 = vmax.f32 %v1744_v19, 0.0  ;;  %v1737_v39 = vmax.f32 %v1611_v13, 0.0  ;;  %v1613_v32 = vadd.f32 %v1612_v63, %v6049_v25 }
 0x391   :  { %v1614_v59 = vpop.f32.mrf.mxu1 }
 0x392   :  { %v1772_v34 = vrot.slane %v1764_v51, 4  ;;  %v1765_v50 = vmul.f32 %v6060_v60, %v1752_v11  ;;  %v1745_v45 = vmul.f32 %v1737_v39, %v1729_v10  ;;  %v1738_v4 = vmax.f32 %v1613_v32, 0.0 }
 0x393   :  { %v1615_v28 = vpop.f32.mrf.mxu1 }
 0x394   :  { %v1773_v53 = vadd.f32 %v1772_v34, %v1764_v51  ;;  %v1778_v55 = vrot.slane %v1765_v50, 4  ;;  %v1753_v27 = vmax.f32 %v1745_v45, 0.0  ;;  %v1746_v29 = vmul.f32 %v1738_v4, %v1730_v14 }
 0x395   :  { %v20_v14 = vstv %s6711_s12 }
 0x396   :  { %v1774_v22 = vrot.slane %v1773_v53, 2  ;;  %v1779_v3 = vadd.f32 %v1778_v55, %v1765_v50  ;;  %v1766_v36 = vmul.f32 %v6060_v60, %v1753_v27  ;;  %v1754_v9 = vmax.f32 %v1746_v29, 0.0  ;;  %21 = vst [vmem:[#allocation3] sm:$0x1] %v20_v14 }
 0x398   :  { %v1775_v26 = vadd.f32 %v1774_v22, %v1773_v53  ;;  %v1780_v42 = vrot.slane %v1779_v3, 2  ;;  %v1784_v24 = vrot.slane %v1766_v36, 4  ;;  %v1767_v49 = vmul.f32 %v6060_v60, %v1754_v9 }
 0x39a   :  { %v1776_v17 = vrot.slane %v1775_v26, 1  ;;  %v1781_v20 = vadd.f32 %v1780_v42, %v1779_v3  ;;  %v1785_v18 = vadd.f32 %v1784_v24, %v1766_v36  ;;  %v1790_v7 = vrot.slane %v1767_v49, 4 }
 0x39c   :  { %v1777_v40 = vadd.f32 %v1776_v17, %v1775_v26  ;;  %v1782_v8 = vrot.slane %v1781_v20, 1  ;;  %v1786_v47 = vrot.slane %v1785_v18, 2  ;;  %v1791_v54 = vadd.f32 %v1790_v7, %v1767_v49 }
 0x39e   :  { %v1783_v57 = vadd.f32 %v1782_v8, %v1781_v20  ;;  %v1787_v62 = vadd.f32 %v1786_v47, %v1785_v18  ;;  %v1792_v6 = vrot.slane %v1791_v54, 2  ;;  %v1829_v31 = vadd.f32 %v6068_v12, %v1777_v40 }
 0x3a0   :  { %v1788_v43 = vrot.slane %v1787_v62, 1  ;;  %v1793_v23 = vadd.f32 %v1792_v6, %v1791_v54  ;;  %v1830_v15 = vadd.f32 %v6068_v12, %v1783_v57  ;;  %v1837_v1 = vmax.f32 %v1829_v31, 0.0 }
 0x3a2   :  { %v1789_v16 = vadd.f32 %v1788_v43, %v1787_v62  ;;  %v1794_v10 = vrot.slane %v1793_v23, 1  ;;  %v1838_v19 = vmax.f32 %v1830_v15, 0.0  ;;  %v2653_v13 = vmul.f32 -1.442695, %v1837_v1 }
 0x3a4   :  { %v1795_v63 = vadd.f32 %v1794_v10, %v1793_v23  ;;  %v1831_v51 = vadd.f32 %v6068_v12, %v1789_v16  ;;  %3552 = vpow2.f32 %v2653_v13  ;;  %v2654_v11 = vmul.f32 -1.442695, %v1838_v19 }
 0x3a5   :  { %v6076_v39 = vpop.f32.mrf.mxu0 }
 0x3a6   :  { %v1832_v32 = vadd.f32 %v6068_v12, %v1795_v63  ;;  %v1839_v59 = vmax.f32 %v1831_v51, 0.0  ;;  %3554 = vpow2.f32 %v2654_v11  ;;  %v6092_v51 = vpop.permute.xlu1 %1481 }
 0x3a7   :  { %v6079_v34 = vpop.f32.mrf.mxu0 }
 0x3a8   :  { %v1840_v50 = vmax.f32 %v1832_v32, 0.0  ;;  %v2655_v45 = vmul.f32 -1.442695, %v1839_v59  ;;  %v1550_v59 = vadd.f32 %v6041_v41, %v6092_v51 }
 0x3a9   :  { %v1655_v4 = vpop.f32.mrf.mxu0 }
 0x3aa   :  { %3556 = vpow2.f32 %v2655_v45  ;;  %v2656_v28 = vmul.f32 -1.442695, %v1840_v50  ;;  %v1656_v55 = vadd.f32 %v1655_v4, %v6045_v48 }
 0x3ab   :  { %v1657_v53 = vpop.f32.mrf.mxu0 }
 0x3ac   :  { %3558 = vpow2.f32 %v2656_v28  ;;  %v1658_v29 = vadd.f32 %v1657_v53, %v6045_v48  ;;  %v1731_v36 = vmax.f32 %v1656_v55, 0.0 }
 0x3ad   :  { %v1661_v27 = vpop.f32.mrf.mxu0 }
 0x3ae   :  { %v1662_v22 = vadd.f32 %v1661_v27, %v6049_v25  ;;  %v1732_v49 = vmax.f32 %v1658_v29, 0.0 }
 0x3af   :  { %v1663_v3 = vpop.f32.mrf.mxu0 }
 0x3b0   :  { %v1739_v9 = vmax.f32 %v1662_v22, 0.0  ;;  %v1664_v26 = vadd.f32 %v1663_v3, %v6049_v25  ;;  %v6085_v20 = vpop.f32.mrf.mxu1 }
 0x3b1   :  { %v1665_v42 = vpop.f32.mrf.mxu0  ;;  %v3553_v24 = vpop.eup %3552 }
 0x3b2   :  { %v1747_v58 = vmul.f32 %v1739_v9, %v1731_v36  ;;  %v1740_v17 = vmax.f32 %v1664_v26, 0.0  ;;  %v1869_v18 = vadd.f32 1.0, %v3553_v24  ;;  %v6087_v54 = vpop.f32.mrf.mxu1  ;;  %v1552_v36 = vadd.f32 %v6043_v5, %v6092_v51 }
 0x3b3   :  { %v1666_v7 = vpop.f32.mrf.mxu0  ;;  %v3555_v40 = vpop.eup %3554 }
 0x3b4   :  { %v1755_v8 = vmax.f32 %v1747_v58, 0.0  ;;  %v1748_v47 = vmul.f32 %v1740_v17, %v1732_v49  ;;  %v1870_v57 = vadd.f32 1.0, %v3555_v40  ;;  %3560 = vrcp.f32 %v1869_v18  ;;  %v1706_v31 = vpop.f32.mrf.mxu1 }
 0x3b5   :  { %v1707_v10 = vadd.f32 %v1706_v31, %v6045_v48  ;;  %v1719_v49 = vmax.f32 %v1550_v59, 0.0 }
 0x3b6   :  { %v1768_v62 = vmul.f32 %v6060_v60, %v1755_v8  ;;  %v1756_v6 = vmax.f32 %v1748_v47, 0.0  ;;  %3562 = vrcp.f32 %v1870_v57  ;;  %v1708_v1 = vpop.f32.mrf.mxu1  ;;  %v1720_v8 = vmax.f32 %v1552_v36, 0.0 }
 0x3b7   :  { %v3557_v43 = vpop.eup %3556  ;;  %v1709_v11 = vadd.f32 %v1708_v1, %v6045_v48  ;;  %v1733_v53 = vmax.f32 %v1707_v10, 0.0 }
 0x3b8   :  { %v1796_v23 = vrot.slane %v1768_v62, 4  ;;  %v1769_v15 = vmul.f32 %v6060_v60, %v1756_v6  ;;  %v1871_v16 = vadd.f32 1.0, %v3557_v43  ;;  %v1712_v63 = vpop.f32.mrf.mxu1 }
 0x3b9   :  { %v3559_v19 = vpop.eup %3558  ;;  %v1713_v32 = vadd.f32 %v1712_v63, %v6049_v25  ;;  %v1734_v48 = vmax.f32 %v1709_v11, 0.0 }
 0x3ba   :  { %v1797_v13 = vadd.f32 %v1796_v23, %v1768_v62  ;;  %v1802_v14 = vrot.slane %v1769_v15, 4  ;;  %3564 = vrcp.f32 %v1871_v16  ;;  %v1714_v4 = vpop.f32.mrf.mxu1  ;;  %v1872_v28 = vadd.f32 1.0, %v3559_v19 }
 0x3bb   :  { %v1741_v55 = vmax.f32 %v1713_v32, 0.0  ;;  %v1715_v27 = vadd.f32 %v1714_v4, %v6049_v25  ;;  %v1601_v25 = vadd.f32 %v6047_v2, %v6092_v51 }
 0x3bc   :  { %v1798_v50 = vrot.slane %v1797_v13, 2  ;;  %v1803_v45 = vadd.f32 %v1802_v14, %v1769_v15  ;;  %v1716_v3 = vpop.f32.mrf.mxu1  ;;  %3566 = vrcp.f32 %v1872_v28  ;;  %v1603_v28 = vadd.f32 %v6052_v0, %v6092_v51 }
 0x3bd   :  { %v1749_v9 = vmul.f32 %v1741_v55, %v1733_v53  ;;  %v1742_v26 = vmax.f32 %v1715_v27, 0.0  ;;  %v1721_v1 = vmax.f32 %v1601_v25, 0.0 }
 0x3be   :  { %v1799_v29 = vadd.f32 %v1798_v50, %v1797_v13  ;;  %v1804_v22 = vrot.slane %v1803_v45, 2  ;;  %v1717_v41 = vpop.f32.mrf.mxu1 }
 0x3bf   :  { %v1757_v58 = vmax.f32 %v1749_v9, 0.0  ;;  %v1750_v17 = vmul.f32 %v1742_v26, %v1734_v48  ;;  %v1722_v48 = vmax.f32 %v1603_v28, 0.0 }
 0x3c0   :  { %v1800_v42 = vrot.slane %v1799_v29, 1  ;;  %v1805_v24 = vadd.f32 %v1804_v22, %v1803_v45 }
 0x3c1   :  { %v3561_v18 = vpop.eup %3560  ;;  %v1770_v47 = vmul.f32 %v6060_v60, %v1757_v58  ;;  %v1758_v5 = vmax.f32 %v1750_v17, 0.0 }
 0x3c2   :  { %v1801_v7 = vadd.f32 %v1800_v42, %v1799_v29  ;;  %v1806_v40 = vrot.slane %v1805_v24, 1  ;;  %v1893_v57 = vmul.f32 %v3561_v18, %v1719_v49 }
 0x3c3   :  { %v3563_v62 = vpop.eup %3562  ;;  %v1808_v43 = vrot.slane %v1770_v47, 4  ;;  %v1771_v23 = vmul.f32 %v6060_v60, %v1758_v5  ;;  %v1652_v5 = vadd.f32 %v6076_v39, %v6092_v51 }
 0x3c4   :  { %v1833_v6 = vadd.f32 %v6068_v12, %v1801_v7  ;;  %v1807_v31 = vadd.f32 %v1806_v40, %v1805_v24  ;;  %v1894_v15 = vmul.f32 %v3563_v62, %v1720_v8  ;;  %v6108_v13 = vmul.f32 %v1893_v57, %v5115_v30 }
 0x3c5   :  { %v1809_v2 = vadd.f32 %v1808_v43, %v1770_v47  ;;  %v1814_v19 = vrot.slane %v1771_v23, 4  ;;  %v1654_v62 = vadd.f32 %v6079_v34, %v6092_v51  ;;  %v1723_v43 = vmax.f32 %v1652_v5, 0.0 }
 0x3c6   :  { %v1841_v16 = vmax.f32 %v1833_v6, 0.0  ;;  %v1834_v10 = vadd.f32 %v6068_v12, %v1807_v31  ;;  %v6111_v14 = vmul.f32 %v1894_v15, %v5121_v33 }
 0x3c7   :  { %v3565_v63 = vpop.eup %3564  ;;  %v1810_v59 = vrot.slane %v1809_v2, 2  ;;  %v1815_v50 = vadd.f32 %v1814_v19, %v1771_v23 }
 0x3c8   :  { %v2657_v11 = vmul.f32 -1.442695, %v1841_v16  ;;  %v1842_v32 = vmax.f32 %v1834_v10, 0.0  ;;  %v3398_v60 = vpack.i.bf16 %v6111_v14, %v6108_v13  ;;  %v1895_v45 = vmul.f32 %v3565_v63, %v1721_v1 }
 0x3c9   :  { %v1811_v53 = vadd.f32 %v1810_v59, %v1809_v2  ;;  %v1816_v55 = vrot.slane %v1815_v50, 2  ;;  %v3567_v36 = vpop.eup %3566  ;;  %v1724_v1 = vmax.f32 %v1654_v62, 0.0 }
 0x3ca   :  { %3568 = vpow2.f32 %v2657_v11  ;;  %v2658_v4 = vmul.f32 -1.442695, %v1842_v32  ;;  %3399 = vrot.lane.b32.xlu0 %v3398_v60, %s3622_s22  ;;  %v6119_v27 = vmul.f32 %v1895_v45, %v5130_v44  ;;  %v1896_v24 = vmul.f32 %v3567_v36, %v1722_v48  ;;  %v1912_v36 = vld [vmem:[%s6713_s10] sm:$0xff]  ;;  %v1914_v48 = vld [vmem:[%s6713_s10 + $0x10] sm:$0xff] }
 0x3cb   :  { %v1812_v29 = vrot.slane %v1811_v53, 1  ;;  %v1817_v22 = vadd.f32 %v1816_v55, %v1815_v50  ;;  %v1705_v11 = vadd.f32 %v6087_v54, %v6092_v51  ;;  %v1703_v32 = vadd.f32 %v6085_v20, %v6092_v51 }
 0x3cc   :  { %3570 = vpow2.f32 %v2658_v4  ;;  %v3423_v3 = vpack.i.bf16 %v6119_v27, %v6111_v14  ;;  %v6130_v18 = vmul.f32 %v1896_v24, %v5136_v52 }
 0x3cd   :  { %v1813_v9 = vadd.f32 %v1812_v29, %v1811_v53  ;;  %v1818_v26 = vrot.slane %v1817_v22, 1  ;;  %v1726_v50 = vmax.f32 %v1705_v11, 0.0  ;;  %v1725_v45 = vmax.f32 %v1703_v32, 0.0 }
 0x3ce   :  { %3424 = vrot.lane.b32.xlu1 %v3423_v3, %s3624_s24  ;;  %3404 = vrot.lane.b32.xlu0 %v3398_v60, %s3626_s26 }
 0x3cf   :  { %v1835_v0 = vadd.f32 %v6068_v12, %v1813_v9  ;;  %v1819_v42 = vadd.f32 %v1818_v26, %v1817_v22  ;;  %v1913_v22 = vld [vmem:[%s6713_s10 + $0x8] sm:$0xff]  ;;  %v1916_v9 = vld [vmem:[#allocation3] sm:$0x1] }
 0x3d1   :  { %v1843_v41 = vmax.f32 %v1835_v0, 0.0  ;;  %v1836_v49 = vadd.f32 %v6068_v12, %v1819_v42  ;;  %v3438_v12 = vpack.i.bf16 %v6130_v18, %v6119_v27 }
 0x3d2   :  { %3429 = vrot.lane.b32.xlu1 %v3423_v3, %s3621_s21  ;;  %3409 = vrot.lane.b32.xlu0 %v3398_v60, %s3618_s18 }
 0x3d3   :  { %v2659_v58 = vmul.f32 -1.442695, %v1843_v41  ;;  %v1844_v17 = vmax.f32 %v1836_v49, 0.0 }
 0x3d5   :  { %3572 = vpow2.f32 %v2659_v58  ;;  %v2660_v7 = vmul.f32 -1.442695, %v1844_v17 }
 0x3d6   :  { %3434 = vrot.lane.b32.xlu1 %v3423_v3, %s3617_s0  ;;  %3414 = vrot.lane.b32.xlu0 %v3398_v60, %s3628_s28  ;;  %v1915_v3 = vld [vmem:[%s6714_s11] sm:$0xff] }
 0x3d7   :  { %v3569_v25 = vpop.eup %3568  ;;  %3574 = vpow2.f32 %v2660_v7 }
 0x3d8   :  { %v1873_v40 = vadd.f32 1.0, %v3569_v25 }
 0x3d9   :  { %v3571_v8 = vpop.eup %3570 }
 0x3da   :  { %3576 = vrcp.f32 %v1873_v40  ;;  %v1874_v47 = vadd.f32 1.0, %v3571_v8  ;;  %3439 = vrot.lane.b32.xlu1 %v3438_v12, %s3622_s22  ;;  %3419 = vrot.lane.b32.xlu0 %v3398_v60, %s3627_s27 }
 0x3dc   :  { %3578 = vrcp.f32 %v1874_v47 }
 0x3de   :  { %3444 = vrot.lane.b32.xlu1 %v3438_v12, %s3626_s26 }
 0x3e2   :  { %3449 = vrot.lane.b32.xlu1 %v3438_v12, %s3618_s18  ;;  %v3573_v57 = vpop.eup %3572 }
 0x3e3   :  { %v1875_v6 = vadd.f32 1.0, %v3573_v57 }
 0x3e4   :  { %v3575_v31 = vpop.eup %3574 }
 0x3e5   :  { %v1876_v15 = vadd.f32 1.0, %v3575_v31  ;;  %3580 = vrcp.f32 %v1875_v6 }
 0x3e6   :  { %3454 = vrot.lane.b32.xlu1 %v3438_v12, %s3628_s28 }
 0x3e7   :  { %v3577_v23 = vpop.eup %3576  ;;  %3582 = vrcp.f32 %v1876_v15 }
 0x3e8   :  { %v1897_v16 = vmul.f32 %v3577_v23, %v1723_v43 }
 0x3e9   :  { %v3579_v10 = vpop.eup %3578 }
 0x3ea   :  { %v6146_v39 = vmul.f32 %v1897_v16, %v5180_v37  ;;  %v1898_v2 = vmul.f32 %v3579_v10, %v1724_v1  ;;  %3459 = vrot.lane.b32.xlu1 %v3438_v12, %s3627_s27 }
 0x3ec   :  { %v6150_v34 = vmul.f32 %v1898_v2, %v5184_v61  ;;  %v3463_v19 = vpack.i.bf16 %v6146_v39, %v6130_v18 }
 0x3ee   :  { %3464 = vrot.lane.b32.xlu0 %v3463_v19, %s3624_s24  ;;  %v3483_v63 = vpack.i.bf16 %v6150_v34, %v6108_v13  ;;  %v3478_v53 = vpack.i.bf16 %v6150_v34, %v6146_v39 }
 0x3f0   :  { %3484 = vrot.lane.b32.xlu1 %v3483_v63, %s3624_s24 }
 0x3f2   :  { %3469 = vrot.lane.b32.xlu0 %v3463_v19, %s3621_s21  ;;  %v3581_v59 = vpop.eup %3580 }
 0x3f3   :  { %v1899_v28 = vmul.f32 %v3581_v59, %v1725_v45 }
 0x3f4   :  { %3494 = vrot.lane.b32.xlu1 %v3483_v63, %s3617_s0  ;;  %v3583_v60 = vpop.eup %3582 }
 0x3f5   :  { %v1900_v4 = vmul.f32 %v3583_v60, %v1726_v50  ;;  %v6174_v20 = vmul.f32 %v1899_v28, %v5188_v46 }
 0x3f6   :  { %3474 = vrot.lane.b32.xlu0 %v3463_v19, %s3617_s0 }
 0x3f7   :  { %v6168_v54 = vmul.f32 %v1900_v4, %v5192_v35  ;;  %v3498_v51 = vpack.i.bf16 %v6174_v20, %v6150_v34 }
 0x3f9   :  { %2003 = vrot.lane.b32.xlu1 %v6168_v54, %s3618_s18  ;;  %v3503_v55 = vpack.i.bf16 %v6146_v39, %v6168_v54  ;;  %v3518_v29 = vpack.i.bf16 %v6168_v54, %v6174_v20 }
 0x3fa   :  { %3479 = vrot.lane.b32.xlu0 %v3478_v53, %s3622_s22 }
 0x3fd   :  { %1955 = vrot.lane.b32.xlu1 %v6168_v54, %s3627_s27 }
 0x3fe   :  { %3489 = vrot.lane.b32.xlu0 %v3483_v63, %s3621_s21 }
 0x401   :  { %3509 = vrot.lane.b32.xlu1 %v3478_v53, %s3618_s18 }
 0x402   :  { %3499 = vrot.lane.b32.xlu0 %v3498_v51, %s3626_s26 }
 0x405   :  { %3519 = vrot.lane.b32.xlu1 %v3518_v29, %s3624_s24 }
 0x406   :  { %3504 = vrot.lane.b32.xlu0 %v3503_v55, %s3626_s26 }
 0x409   :  { %3529 = vrot.lane.b32.xlu1 %v3518_v29, %s3617_s0 }
 0x40a   :  { %1931 = vrot.lane.b32.xlu0 %v6168_v54, %s3628_s28 }
 0x40d   :  { %3534 = vrot.lane.b32.xlu1 %v3478_v53, %s3628_s28 }
 0x40e   :  { %3514 = vrot.lane.b32.xlu0 %v3518_v29, %s3622_s22 }
 0x411   :  { %3539 = vrot.lane.b32.xlu1 %v3478_v53, %s3627_s27 }
 0x412   :  { %3524 = vrot.lane.b32.xlu0 %v3518_v29, %s3621_s21 }
 0x415   :  { %2156 = vperm.xlu1 %3076, %v1913_v22  }
 0x416   :  { %2001 = vrot.lane.b32.xlu0 %v6174_v20, %s3618_s18 }
 0x419   :  { %2450 = vperm.xlu1 %3076, %v1915_v3  }
 0x41a   :  { %1929 = vrot.lane.b32.xlu0 %v6174_v20, %s3628_s28 }
 0x41d   :  { %2151 = vperm.xlu1 %3076, %v1912_v36  }
 0x41e   :  { %1953 = vrot.lane.b32.xlu0 %v6174_v20, %s3627_s27 }
 0x422   :  { %2161 = vperm.xlu0 %3397, %v1914_v48  }
 0x426   :  { %2511 = vperm.xlu0 %3397, %v1916_v9  }
 0x43c   :  { %v6216_v0 = vpop.permute.xlu0 %3399 }
 0x43d   :  { %v3402_v24 = vunpack.i.h.bf16 %v6216_v0  ;;  %v6832_v41 = vunpack.i.l.bf16 %v6216_v0 }
 0x43f   :  { %v2107_v7 = vsel %vm621_vm5, %v6832_v41, %v3402_v24 }
 0x440   :  { %v6214_v26 = vpop.permute.xlu1 %3424  ;;  %v6224_v58 = vpop.permute.xlu0 %3404  ;;  %v2141_v5 = vpack.c.bf16 %v2107_v7, %v2107_v7 }
 0x441   :  { %v3427_v8 = vunpack.i.h.bf16 %v6214_v26  ;;  %v3426_v12 = vunpack.i.l.bf16 %v6214_v26 }
 0x442   :  { %v2181_v15 = vsel %vm2179_vm6, %v2141_v5, 0 }
 0x443   :  { %v2058_v23 = vsel %vm572_vm8, %v3426_v12, %v3427_v8 }
 0x444   :  { %v6218_v42 = vpop.permute.xlu1 %3429  ;;  %v6234_v57 = vpop.permute.xlu0 %3409 }
 0x445   :  { %v3432_v17 = vunpack.i.h.bf16 %v6218_v42  ;;  %v3431_v25 = vunpack.i.l.bf16 %v6218_v42  ;;  %v6834_v4 = vunpack.i.h.bf16 %v6234_v57  ;;  %v6833_v28 = vunpack.i.l.bf16 %v6234_v57 }
 0x447   :  { %v2082_v6 = vsel %vm209_vm4, %v3431_v25, %v3432_v17 }
 0x448   :  { %v6222_v49 = vpop.permute.xlu1 %3434  ;;  %v2134_v1 = vpack.c.bf16 %v2082_v6, %v2058_v23  ;;  %v6256_v10 = vpop.permute.xlu0 %3414 }
 0x449   :  { %v3437_v29 = vunpack.i.h.bf16 %v6222_v49  ;;  %v3436_v22 = vunpack.i.l.bf16 %v6222_v49  ;;  %v6298_v49 = vsel %vm176_vm1, %v6833_v28, %v6834_v4 }
 0x44b   :  { %v2034_v28 = vsel %vm7166_vm13, %v3436_v22, %v3437_v29  ;;  %vm7186_vm13 = vmmov %vm7159_vm0 }
 0x44c   :  { %v3440_v40 = vpop.permute.xlu1 %3439  ;;  %v6260_v19 = vpop.permute.xlu0 %3419 }
 0x44d   :  { %v3441_v47 = vunpack.i.l.bf16 %v3440_v40  ;;  %v3442_v50 = vunpack.i.h.bf16 %v3440_v40 }
 0x44f   :  { %v2106_v62 = vsel %vm621_vm5, %v3402_v24, %v3441_v47  ;;  %v2105_v55 = vsel %vm621_vm5, %v3441_v47, %v3442_v50 }
 0x450   :  { %v2142_v31 = vpack.c.bf16 %v2106_v62, %v2106_v62  ;;  %v6244_v43 = vpop.permute.xlu1 %3444  ;;  %v2143_v5 = vpack.c.bf16 %v2105_v55, %v2105_v55 }
 0x452   :  { %2663 = vmatprep.subr.msk.bf16.mxu0 %vm2179_vm6, %v2142_v31  ;;  %v2187_v4 = vsel %vm2179_vm6, %v2143_v5, 0  ;;  %v3446_v5 = vunpack.i.l.bf16 %v6244_v43 }
 0x453   :  { %2211 = vmatpush1.bf16.msra.mxu0 %v2181_v15 }
 0x454   :  { %v6254_v16 = vpop.permute.xlu1 %3449  ;;  %2212 = vmatprep.subr.bf16.mxu0 %v2134_v1 }
 0x455   :  { %v3451_v36 = vunpack.i.l.bf16 %v6254_v16 }
 0x458   :  { %v6258_v2 = vpop.permute.xlu1 %3454 }
 0x45c   :  { %v6262_v63 = vpop.permute.xlu1 %3459 }
 0x45d   :  { %v6840_v26 = vunpack.i.h.bf16 %v6262_v63 }
 0x460   :  { %v6264_v11 = vpop.permute.xlu0 %3464 }
 0x461   :  { %v6837_v48 = vunpack.i.h.bf16 %v6264_v11  ;;  %v3466_v9 = vunpack.i.l.bf16 %v6264_v11 }
 0x462   :  { %v6266_v32 = vpop.permute.xlu1 %3484 }
 0x463   :  { %v3486_v47 = vunpack.i.l.bf16 %v6266_v32  ;;  %v2057_v42 = vsel %vm572_vm8, %v3427_v8, %v3466_v9  ;;  %v3461_v8 = vunpack.i.l.bf16 %v6262_v63 }
 0x464   :  { %v6268_v59 = vpop.permute.xlu0 %3469 }
 0x465   :  { %v6836_v53 = vunpack.i.h.bf16 %v6268_v59  ;;  %v3471_v51 = vunpack.i.l.bf16 %v6268_v59 }
 0x466   :  { %v6272_v45 = vpop.permute.xlu1 %3494 }
 0x467   :  { %v2080_v23 = vsel %vm209_vm4, %v3471_v51, %v6836_v53  ;;  %v3496_v40 = vunpack.i.l.bf16 %v6272_v45  ;;  %v2056_v53 = vsel %vm572_vm8, %v3466_v9, %v6837_v48  ;;  %v2081_v15 = vsel %vm209_vm4, %v3432_v17, %v3471_v51 }
 0x468   :  { %v6270_v60 = vpop.permute.xlu0 %3474  ;;  %v2136_v1 = vpack.c.bf16 %v2080_v23, %v2056_v53  ;;  %v2059_v48 = vsel %vm572_vm8, %v3486_v47, %v3426_v12  ;;  %v3447_v51 = vunpack.i.h.bf16 %v6244_v43 }
 0x469   :  { %v6838_v62 = vunpack.i.h.bf16 %v6270_v60  ;;  %v3476_v6 = vunpack.i.l.bf16 %v6270_v60 }
 0x46b   :  { %v6288_v7 = vpop.permute.xlu1 %2003  ;;  %v2032_v53 = vsel %vm7167_vm2, %v3476_v6, %v6838_v62  ;;  %vm7188_vm2 = vmmov %vm7159_vm0 }
 0x46c   :  { %v6282_v3 = vpop.permute.xlu0 %3479  ;;  %v2128_v9 = vpack.c.bf16 %v2032_v53, %v6130_v18  ;;  %v7175_v53 = vunpack.i.l.bf16 %v6260_v19 }
 0x46d   :  { %v6835_v24 = vunpack.i.l.bf16 %v6282_v3 }
 0x46f   :  { %v2104_v31 = vsel %vm621_vm5, %v3442_v50, %v6835_v24  ;;  %v6319_v24 = vpop.permute.xlu1 %1955 }
 0x470   :  { %v2144_v55 = vpack.c.bf16 %v2104_v31, %v2104_v31  ;;  %v6312_v41 = vpop.permute.xlu0 %3489  ;;  %v6841_v31 = vunpack.i.h.bf16 %v6254_v16 }
 0x471   :  { %v6839_v50 = vunpack.i.l.bf16 %v6312_v41 }
 0x472   :  { %2666 = vmatprep.subr.msk.bf16.mxu1 %vm2179_vm6, %v2144_v55  ;;  %v2035_v55 = vsel %vm7168_vm3, %v3496_v40, %v3436_v22  ;;  %v7170_v22 = vunpack.i.h.bf16 %v6224_v58  ;;  %vm2172_vm3 = vcmask 588800  }
 0x473   :  { %v2083_v17 = vsel %vm209_vm4, %v6839_v50, %v3431_v25  ;;  %2262 = vmatpush1.bf16.msra.mxu1 %v2187_v4  ;;  %v3416_v25 = vunpack.i.l.bf16 %v6256_v10  ;;  %v2135_v4 = vpack.c.bf16 %v2081_v15, %v2057_v42  ;;  %v6362_v62 = vpop.permute.xlu1 %3509  ;;  %v2126_v50 = vpack.c.bf16 %v2034_v28, %v6111_v14 }
 0x474   :  { %v2133_v12 = vpack.c.bf16 %v2083_v17, %v2059_v48  ;;  %v6355_v23 = vpop.permute.xlu0 %3499  ;;  %2263 = vmatprep.subr.bf16.mxu1 %v2136_v1  ;;  %v2033_v48 = vsel %vm7169_vm14, %v3437_v29, %v3476_v6  ;;  %v3482_v15 = vunpack.i.h.bf16 %v6282_v3  ;;  %v7171_v1 = vunpack.i.l.bf16 %v6224_v58 }
 0x475   :  { %v2009_v28 = vsel %vm176_vm1, %v3451_v36, %v6841_v31  ;;  %v2125_v29 = vpack.c.bf16 %v2035_v55, %v6108_v13  ;;  %v7174_v17 = vunpack.i.h.bf16 %v6260_v19  ;;  %v3456_v13 = vunpack.i.l.bf16 %v6258_v2 }
 0x476   :  { %2213 = vmatpush1.bf16.msra.mxu0 %v2133_v12  ;;  %v1987_v14 = vsel %vm7172_vm7, %v7171_v1, %v7170_v22  ;;  %v3457_v12 = vunpack.i.h.bf16 %v6258_v2 }
 0x477   :  { %2214 = vmatprep.subr.bf16.mxu0 %v2126_v50  ;;  %2264 = vmatpush1.bf16.msra.mxu1 %v2135_v4  ;;  %v2118_v18 = vpack.c.bf16 %v6298_v49, %v1987_v14  ;;  %v1985_v50 = vsel %vm7173_vm12, %v3446_v5, %v3447_v51  ;;  %v1963_v42 = vsel %vm242_vm11, %v7175_v53, %v7174_v17  ;;  %v6399_v55 = vpop.permute.xlu1 %3519  ;;  %v7177_v14 = vunpack.i.h.bf16 %v6256_v10 }
 0x478   :  { %v6382_v6 = vpop.permute.xlu0 %3504  ;;  %2265 = vmatprep.subr.bf16.mxu1 %v2128_v9  ;;  %v2127_v4 = vpack.c.bf16 %v2033_v48, %v6119_v27  ;;  %v7176_v9 = vunpack.i.h.bf16 %v6234_v57  ;;  %v2120_v1 = vpack.c.bf16 %v2009_v28, %v1985_v50  ;;  %v1961_v27 = vsel %vm242_vm11, %v3461_v8, %v6840_v26 }
 0x479   :  { %v3506_v49 = vunpack.i.l.bf16 %v6382_v6  ;;  %v1939_v17 = vsel %vm7159_vm0, %v3416_v25, %v7177_v14  ;;  %v7178_v48 = vunpack.i.l.bf16 %v6234_v57  ;;  %v7182_v50 = vunpack.i.h.bf16 %v6224_v58 }
 0x47a   :  { %v2010_v22 = vsel %vm176_vm1, %v7176_v9, %v3451_v36  ;;  %2215 = vmatpush1.bf16.msra.mxu0 %v2125_v29  ;;  %v7179_v36 = vunpack.i.l.bf16 %v6224_v58  ;;  %v7181_v29 = vunpack.i.l.bf16 %v6282_v3  ;;  %v2110_v26 = vpack.c.bf16 %v1963_v42, %v1939_v17 }
 0x47b   :  { %v2012_v53 = vsel %vm176_vm1, %v6288_v7, %v7178_v48  ;;  %2216 = vmatprep.subr.bf16.mxu0 %v2118_v18  ;;  %2266 = vmatpush1.bf16.msra.mxu1 %v2127_v4  ;;  %v1986_v9 = vsel %vm7183_vm10, %v7182_v50, %v3446_v5  ;;  %v7184_v18 = vunpack.i.h.bf16 %v6260_v19  ;;  %v6443_v31 = vpop.permute.xlu1 %3529  ;;  %v1937_v58 = vsel %vm7186_vm13, %v3456_v13, %v3457_v12  ;;  %vm7205_vm10 = vmmov %vm7188_vm2 }
 0x47c   :  { %v1988_v28 = vsel %vm7180_vm9, %v3506_v49, %v7179_v36  ;;  %v2103_v57 = vsel %vm621_vm5, %v7181_v29, %v3482_v15  ;;  %v6434_v48 = vpop.permute.xlu0 %1931  ;;  %2267 = vmatprep.subr.bf16.mxu1 %v2120_v1  ;;  %v2119_v36 = vpack.c.bf16 %v2010_v22, %v1986_v9  ;;  %v3487_v5 = vunpack.i.h.bf16 %v6266_v32  ;;  %vm7204_vm9 = vmmov %vm7188_vm2 }
 0x47d   :  { %v2117_v14 = vpack.c.bf16 %v2012_v53, %v1988_v28  ;;  %v1962_v4 = vsel %vm242_vm11, %v7184_v18, %v3461_v8  ;;  %v1940_v29 = vsel %vm7185_vm15, %v6434_v48, %v3416_v25  ;;  %v2112_v42 = vpack.c.bf16 %v1961_v27, %v1937_v58 }
 0x47e   :  { %v2145_v22 = vpack.c.bf16 %v2103_v57, %v2103_v57  ;;  %v7187_v1 = vunpack.i.h.bf16 %v6256_v10  ;;  %v3492_v17 = vunpack.i.h.bf16 %v6312_v41  ;;  %v7189_v25 = vunpack.i.l.bf16 %v6260_v19  ;;  %v6465_v19 = vld [vmem:[%s6712_s9] sm:$0xff]  }
 0x47f   :  { %2217 = vmatpush1.bf16.msra.mxu0 %v2117_v14  ;;  %2268 = vmatpush1.bf16.msra.mxu1 %v2119_v36  ;;  %v3522_v10 = vunpack.i.h.bf16 %v6399_v55  ;;  %v3521_v27 = vunpack.i.l.bf16 %v6399_v55  ;;  %v7190_v14 = vunpack.i.h.bf16 %v6264_v11  ;;  %v3497_v36 = vunpack.i.h.bf16 %v6272_v45 }
 0x480   :  { %v1938_v8 = vsel %vm7188_vm2, %v7187_v1, %v3456_v13  ;;  %v1964_v53 = vsel %vm242_vm11, %v6319_v24, %v7189_v25  ;;  %2218 = vmatprep.subr.bf16.mxu0 %v2110_v26  ;;  %v3515_v9 = vpop.permute.xlu0 %3514  ;;  %2269 = vmatprep.subr.bf16.mxu1 %v2112_v42  ;;  %v3531_v18 = vunpack.i.l.bf16 %v6443_v31  ;;  %v2193_v55 = vsel %vm2179_vm6, %v2145_v22, 0 }
 0x481   :  { %v2111_v28 = vpack.c.bf16 %v1962_v4, %v1938_v8  ;;  %v2109_v50 = vpack.c.bf16 %v1964_v53, %v1940_v29  ;;  %v3517_v13 = vunpack.i.h.bf16 %v3515_v9  ;;  %v3516_v57 = vunpack.i.l.bf16 %v3515_v9  ;;  %v6473_v4 = vpop.permute.xlu1 %3534 }
 0x482   :  { %v2055_v26 = vsel %vm572_vm8, %v7190_v14, %v3487_v5  ;;  %v7191_v29 = vunpack.i.h.bf16 %v6268_v59  ;;  %v7192_v42 = vunpack.i.l.bf16 %v6216_v0  ;;  %v3532_v22 = vunpack.i.h.bf16 %v6443_v31 }
 0x483   :  { %2219 = vmatpush1.bf16.msra.mxu0 %v2109_v50  ;;  %v2102_v1 = vsel %vm621_vm5, %v3482_v15, %v3516_v57  ;;  %2270 = vmatpush1.bf16.msra.mxu1 %v2111_v28  ;;  %v2101_v8 = vsel %vm621_vm5, %v3516_v57, %v3517_v13  ;;  %v3507_v0 = vunpack.i.h.bf16 %v6382_v6  ;;  %v2053_v9 = vsel %vm572_vm8, %v3521_v27, %v3522_v10 }
 0x484   :  { %v2079_v58 = vsel %vm209_vm4, %v7191_v29, %v3492_v17  ;;  %v2108_v11 = vsel %vm621_vm5, %v3517_v13, %v7192_v42  ;;  %v2146_v25 = vpack.c.bf16 %v2102_v1, %v2102_v1  ;;  %v3525_v53 = vpop.permute.xlu0 %3524  ;;  %v2147_v50 = vpack.c.bf16 %v2101_v8, %v2101_v8  ;;  %vm7193_vm5 = vmmov %vm7169_vm14 }
 0x485   :  { %v2148_v59 = vpack.c.bf16 %v2108_v11, %v2108_v11  ;;  %v3527_v14 = vunpack.i.h.bf16 %v3525_v53  ;;  %v3526_v3 = vunpack.i.l.bf16 %v3525_v53  ;;  %v2054_v15 = vsel %vm572_vm8, %v3487_v5, %v3521_v27  ;;  %v6532_v53 = vld [vmem:[%s6712_s9 + $0x8] ss:$0 sps:$4 sm:$0xff]   ;;  %vm7199_vm14 = vmmov %vm7193_vm5 }
 0x486   :  { %2664 = vmatmul.mubr.msk.bf16.vlgmr.msra.gmra.mxu0 %vm2172_vm3, %v6465_v19  ;;  %2667 = vmatmul.mubr.msk.bf16.vlgmr.msra.gmra.mxu1 %vm2172_vm3, %v6465_v19  ;;  %v2199_v31 = vsel %vm2179_vm6, %v2147_v50, 0  ;;  %v2060_v28 = vsel %vm572_vm8, %v3522_v10, %v3486_v47  ;;  %v2030_v13 = vsel %vm7193_vm5, %v3497_v36, %v3531_v18  ;;  %v3501_v57 = vunpack.i.l.bf16 %v6355_v23  ;;  %v3540_v10 = vpop.permute.xlu1 %3539  ;;  %vm7195_vm8 = vmmov %vm7193_vm5 }
 0x487   :  { %2669 = vmatprep.subr.msk.bf16.mxu0 %vm2179_vm6, %v2146_v25  ;;  %v2077_v29 = vsel %vm209_vm4, %v3526_v3, %v3527_v14  ;;  %2672 = vmatprep.subr.msk.bf16.mxu1 %vm2179_vm6, %v2148_v59  ;;  %v2078_v42 = vsel %vm209_vm4, %v3492_v17, %v3526_v3  ;;  %v7194_v5 = vunpack.i.l.bf16 %v6312_v41  ;;  %v2036_v8 = vsel %vm7195_vm8, %v3532_v22, %v3496_v40  ;;  %vm7197_vm6 = vmmov %vm7193_vm5 }
 0x488   :  { %2313 = vmatpush1.bf16.msra.mxu0 %v2193_v55  ;;  %v2139_v47 = vpack.c.bf16 %v2077_v29, %v2053_v9  ;;  %2364 = vmatpush1.bf16.msra.mxu1 %v2199_v31  ;;  %v2002_v27 = vpop.permute.xlu0 %2001  ;;  %v2138_v11 = vpack.c.bf16 %v2078_v42, %v2054_v15  ;;  %v7196_v55 = vunpack.i.h.bf16 %v6270_v60  ;;  %v2137_v41 = vpack.c.bf16 %v2079_v58, %v2055_v26 }
 0x489   :  { %v2084_v32 = vsel %vm209_vm4, %v3527_v14, %v7194_v5  ;;  %v3512_v59 = vunpack.i.h.bf16 %v6362_v62  ;;  %v3511_v25 = vunpack.i.l.bf16 %v6362_v62  ;;  %2246 = vmatprep.mubr.bf16.mxu0 %v7164_v38  ;;  %2297 = vmatprep.mubr.bf16.mxu1 %v7164_v38  ;;  %v2130_v60 = vpack.c.bf16 %v2030_v13, %v6150_v34  ;;  %vm7198_vm4 = vmmov %vm7172_vm7 }
 0x48a   :  { %v2140_v1 = vpack.c.bf16 %v2084_v32, %v2060_v28  ;;  %v2031_v17 = vsel %vm7197_vm6, %v7196_v55, %v3497_v36  ;;  %2314 = vmatprep.subr.bf16.mxu0 %v2138_v11  ;;  %v1983_v45 = vsel %vm7198_vm4, %v3507_v0, %v3501_v57  ;;  %v2029_v40 = vsel %vm7199_vm14, %v3531_v18, %v3532_v22  ;;  %vm7200_vm7 = vmmov %vm7198_vm4 }
 0x48b   :  { %v3542_v62 = vunpack.i.h.bf16 %v3540_v10  ;;  %v3541_v26 = vunpack.i.l.bf16 %v3540_v10  ;;  %v2132_v36 = vpack.c.bf16 %v2036_v8, %v6168_v54  ;;  %v2129_v58 = vpack.c.bf16 %v2031_v17, %v6146_v39  ;;  %vm7201_vm12 = vmmov %vm7198_vm4 }
 0x48c   :  { %2365 = vmatprep.subr.bf16.mxu1 %v2140_v1  ;;  %2315 = vmatpush1.bf16.msra.mxu0 %v2137_v41  ;;  %v3502_v50 = vunpack.i.h.bf16 %v6355_v23  ;;  %v2005_v9 = vsel %vm176_vm1, %v2002_v27, %v6288_v7  ;;  %v1930_v34 = vpop.permute.xlu0 %1929  ;;  %v1984_v18 = vsel %vm7200_vm7, %v3447_v51, %v3507_v0  ;;  %v3537_v22 = vunpack.i.h.bf16 %v6473_v4  ;;  %vm7203_vm0 = vmmov %vm7198_vm4 }
 0x48d   :  { %2366 = vmatpush1.bf16.msra.mxu1 %v2139_v47  ;;  %2316 = vmatprep.subr.bf16.mxu0 %v2130_v60  ;;  %v3536_v54 = vunpack.i.l.bf16 %v6473_v4  ;;  %v2007_v39 = vsel %vm176_vm1, %v3511_v25, %v3512_v59  ;;  %v2131_v7 = vpack.c.bf16 %v2029_v40, %v6174_v20  ;;  %v2006_v23 = vsel %vm176_vm1, %v3512_v59, %v2002_v27 }
 0x48e   :  { %2367 = vmatprep.subr.bf16.mxu1 %v2132_v36  ;;  %2665 = vmatmul.mubr.msk.bf16.gmra.mxu0 %vm2172_vm3, %v6532_v53  ;;  %v1981_v43 = vsel %vm7201_vm12, %v3502_v50, %v3506_v49  ;;  %v2122_v51 = vpack.c.bf16 %v2007_v39, %v1983_v45  ;;  %v1959_v0 = vsel %vm242_vm11, %v3541_v26, %v3542_v62  ;;  %v7202_v20 = vunpack.i.h.bf16 %v6254_v16 }
 0x48f   :  { %2668 = vmatmul.mubr.msk.bf16.gmra.mxu1 %vm2172_vm3, %v6532_v53  ;;  %2338 = vmatprep.mubr.bf16.mxu0 %v7164_v38  ;;  %v2124_v4 = vpack.c.bf16 %v2005_v9, %v1981_v43  ;;  %v1982_v49 = vsel %vm7203_vm0, %v3501_v57, %v3502_v50  ;;  %v1933_v31 = vsel %vm7204_vm9, %v1930_v34, %v6434_v48  ;;  %v7206_v28 = vunpack.i.h.bf16 %v6262_v63 }
 0x490   :  { %2317 = vmatpush1.bf16.msra.mxu0 %v2129_v58  ;;  %2389 = vmatprep.mubr.bf16.mxu1 %v7164_v38  ;;  %v2008_v6 = vsel %vm176_vm1, %v7202_v20, %v3511_v25  ;;  %v1954_v14 = vpop.permute.xlu0 %1953  ;;  %v1935_v16 = vsel %vm7205_vm10, %v3536_v54, %v3537_v22  ;;  %v2123_v57 = vpack.c.bf16 %v2006_v23, %v1982_v49  ;;  %vm7207_vm1 = vmmov %vm7188_vm2  ;;  %v6613_v27 = vpop.permute.xlu1 %2156 }
 0x491   :  { %2368 = vmatpush1.bf16.msra.mxu1 %v2131_v7  ;;  %2318 = vmatprep.subr.bf16.mxu0 %v2122_v51  ;;  %v2121_v3 = vpack.c.bf16 %v2008_v6, %v1984_v18  ;;  %v1957_v15 = vsel %vm242_vm11, %v1954_v14, %v6319_v24  ;;  %v1960_v13 = vsel %vm242_vm11, %v7206_v28, %v3541_v26  ;;  %vm7208_vm15 = vmmov %vm7207_vm1 }
 0x492   :  { %2369 = vmatprep.subr.bf16.mxu1 %v2124_v4  ;;  %v2116_v29 = vpack.c.bf16 %v1957_v15, %v1933_v31  ;;  %v2114_v42 = vpack.c.bf16 %v1959_v0, %v1935_v16  ;;  %v1958_v5 = vsel %vm242_vm11, %v3542_v62, %v1954_v14  ;;  %v1936_v24 = vsel %vm7207_vm1, %v3457_v12, %v3536_v54 }
 0x493   :  { %v2113_v48 = vpack.c.bf16 %v1960_v13, %v1936_v24  ;;  %v1934_v63 = vsel %vm7208_vm15, %v3537_v22, %v1930_v34 }
 0x494   :  { %2319 = vmatpush1.bf16.msra.mxu0 %v2121_v3  ;;  %v2115_v32 = vpack.c.bf16 %v1958_v5, %v1934_v63  ;;  %v6625_v6 = vpop.permute.xlu1 %2450 }
 0x495   :  { %2370 = vmatpush1.bf16.msra.mxu1 %v2123_v57  ;;  %2320 = vmatprep.subr.bf16.mxu0 %v2114_v42 }
 0x496   :  { %2371 = vmatprep.subr.bf16.mxu1 %v2116_v29 }
 0x498   :  { %2321 = vmatpush1.bf16.msra.mxu0 %v2113_v48 }
 0x499   :  { %2372 = vmatpush1.bf16.msra.mxu1 %v2115_v32 }
 0x49b   :  { %2670 = vmatmul.mubr.msk.bf16.vlgmr.msra.gmra.mxu0 %vm2172_vm3, %v6465_v19 }
 0x49c   :  { %2673 = vmatmul.mubr.msk.bf16.vlgmr.msra.gmra.mxu1 %vm2172_vm3, %v6465_v19  ;;  %2348 = vmatprep.mubr.bf16.mxu0 %v7164_v38 }
 0x49d   :  { %2399 = vmatprep.mubr.bf16.mxu1 %v7164_v38  ;;  %v6616_v8 = vpop.permute.xlu0 %2161 }
 0x4a3   :  { %2671 = vmatmul.mubr.msk.bf16.gmra.mxu0 %vm2172_vm3, %v6532_v53 }
 0x4a4   :  { %2674 = vmatmul.mubr.msk.bf16.gmra.mxu1 %vm2172_vm3, %v6532_v53 }
 0x546   :  { %v6605_v56 = vpop.f32.mrf.mxu0  ;;  %v6607_v2 = vpop.f32.mrf.mxu1 }
 0x548   :  { %v6609_v12 = vpop.f32.mrf.mxu0  ;;  %v6611_v47 = vpop.f32.mrf.mxu1 }
 0x54a   :  { %v2242_v10 = vpop.f32.mrf.mxu0  ;;  %v2293_v19 = vpop.f32.mrf.mxu1 }
 0x54b   :  { %v2243_v38 = vadd.f32 %v2242_v10, %v6613_v27  ;;  %v2294_v55 = vadd.f32 %v2293_v19, %v6613_v27 }
 0x54c   :  { %v2244_v11 = vpop.f32.mrf.mxu0  ;;  %v2295_v1 = vpop.f32.mrf.mxu1 }
 0x54d   :  { %v2245_v41 = vadd.f32 %v2244_v11, %v6613_v27  ;;  %v2296_v53 = vadd.f32 %v2295_v1, %v6613_v27  ;;  %v2416_v40 = vmax.f32 %v2243_v38, 0.0  ;;  %v2418_v58 = vmax.f32 %v2294_v55, 0.0  ;;  %v2512_v38 = vpop.permute.xlu0 %2511 }
 0x54e   :  { %v2248_v17 = vpop.f32.mrf.mxu0 }
 0x54f   :  { %v2249_v59 = vadd.f32 %v2248_v17, %v6616_v8  ;;  %v2299_v25 = vpop.f32.mrf.mxu1  ;;  %v2417_v18 = vmax.f32 %v2245_v41, 0.0  ;;  %v2419_v7 = vmax.f32 %v2296_v53, 0.0 }
 0x550   :  { %v2300_v60 = vadd.f32 %v2299_v25, %v6616_v8  ;;  %v2250_v45 = vpop.f32.mrf.mxu0 }
 0x551   :  { %v2424_v62 = vmax.f32 %v2249_v59, 0.0  ;;  %v2251_v26 = vadd.f32 %v2250_v45, %v6616_v8  ;;  %v2301_v36 = vpop.f32.mrf.mxu1 }
 0x552   :  { %v2426_v50 = vmax.f32 %v2300_v60, 0.0  ;;  %v2302_v9 = vadd.f32 %v2301_v36, %v6616_v8  ;;  %v2252_v34 = vpop.f32.mrf.mxu0 }
 0x553   :  { %v2432_v22 = vmul.f32 %v2424_v62, %v2416_v40  ;;  %v2425_v54 = vmax.f32 %v2251_v26, 0.0  ;;  %v2303_v39 = vpop.f32.mrf.mxu1  ;;  %v6641_v62 = vrot.slane %v2512_v38, %v7045_v21 }
 0x554   :  { %v2434_v43 = vmul.f32 %v2426_v50, %v2418_v58  ;;  %v2427_v51 = vmax.f32 %v2302_v9, 0.0  ;;  %v2253_v23 = vpop.f32.mrf.mxu0 }
 0x555   :  { %v2440_v4 = vmax.f32 %v2432_v22, 0.0  ;;  %v2433_v0 = vmul.f32 %v2425_v54, %v2417_v18  ;;  %v2304_v20 = vpop.f32.mrf.mxu1 }
 0x556   :  { %v2442_v49 = vmax.f32 %v2434_v43, 0.0  ;;  %v2435_v14 = vmul.f32 %v2427_v51, %v2419_v7 }
 0x557   :  { %v2453_v3 = vmul.f32 %v6625_v6, %v2440_v4  ;;  %v2441_v31 = vmax.f32 %v2433_v0, 0.0 }
 0x558   :  { %v2455_v15 = vmul.f32 %v6625_v6, %v2442_v49  ;;  %v2443_v16 = vmax.f32 %v2435_v14, 0.0 }
 0x559   :  { %v2461_v28 = vrot.slane %v2453_v3, 4  ;;  %v2454_v13 = vmul.f32 %v6625_v6, %v2441_v31 }
 0x55a   :  { %v2473_v57 = vrot.slane %v2455_v15, 4  ;;  %v2456_v29 = vmul.f32 %v6625_v6, %v2443_v16 }
 0x55b   :  { %v2462_v42 = vadd.f32 %v2461_v28, %v2453_v3  ;;  %v2467_v5 = vrot.slane %v2454_v13, 4  ;;  %v6631_v24 = vpop.f32.mrf.mxu0 }
 0x55c   :  { %v2474_v48 = vadd.f32 %v2473_v57, %v2455_v15  ;;  %v2479_v63 = vrot.slane %v2456_v29, 4  ;;  %v6633_v32 = vpop.f32.mrf.mxu1 }
 0x55d   :  { %v2463_v10 = vrot.slane %v2462_v42, 2  ;;  %v2468_v19 = vadd.f32 %v2467_v5, %v2454_v13  ;;  %v6635_v11 = vpop.f32.mrf.mxu0 }
 0x55e   :  { %v2475_v1 = vrot.slane %v2474_v48, 2  ;;  %v2480_v55 = vadd.f32 %v2479_v63, %v2456_v29  ;;  %v6637_v17 = vpop.f32.mrf.mxu1 }
 0x55f   :  { %v2464_v41 = vadd.f32 %v2463_v10, %v2462_v42  ;;  %v2469_v59 = vrot.slane %v2468_v19, 2  ;;  %v2344_v25 = vpop.f32.mrf.mxu0 }
 0x560   :  { %v2476_v53 = vadd.f32 %v2475_v1, %v2474_v48  ;;  %v2481_v60 = vrot.slane %v2480_v55, 2  ;;  %v2345_v45 = vadd.f32 %v2344_v25, %v6613_v27  ;;  %v2395_v40 = vpop.f32.mrf.mxu1 }
 0x561   :  { %v2465_v26 = vrot.slane %v2464_v41, 1  ;;  %v2470_v36 = vadd.f32 %v2469_v59, %v2468_v19  ;;  %v2396_v58 = vadd.f32 %v2395_v40, %v6613_v27  ;;  %v2346_v50 = vpop.f32.mrf.mxu0 }
 0x562   :  { %v2477_v9 = vrot.slane %v2476_v53, 1  ;;  %v2482_v34 = vadd.f32 %v2481_v60, %v2480_v55  ;;  %v2420_v18 = vmax.f32 %v2345_v45, 0.0  ;;  %v2347_v22 = vadd.f32 %v2346_v50, %v6613_v27  ;;  %v2397_v54 = vpop.f32.mrf.mxu1 }
 0x563   :  { %v2466_v39 = vadd.f32 %v2465_v26, %v2464_v41  ;;  %v2471_v7 = vrot.slane %v2470_v36, 1  ;;  %v2422_v43 = vmax.f32 %v2396_v58, 0.0  ;;  %v2398_v51 = vadd.f32 %v2397_v54, %v6613_v27  ;;  %v2350_v23 = vpop.f32.mrf.mxu0 }
 0x564   :  { %v2478_v4 = vadd.f32 %v2477_v9, %v2476_v53  ;;  %v2483_v21 = vrot.slane %v2482_v34, 1  ;;  %v2421_v0 = vmax.f32 %v2347_v22, 0.0  ;;  %v2351_v20 = vadd.f32 %v2350_v23, %v6616_v8  ;;  %v2401_v49 = vpop.f32.mrf.mxu1 }
 0x565   :  { %v2518_v14 = vadd.f32 %v6641_v62, %v2466_v39  ;;  %v2472_v3 = vadd.f32 %v2471_v7, %v2470_v36  ;;  %v2423_v31 = vmax.f32 %v2398_v51, 0.0  ;;  %v2402_v15 = vadd.f32 %v2401_v49, %v6616_v8  ;;  %v2352_v16 = vpop.f32.mrf.mxu0 }
 0x566   :  { %v2520_v28 = vadd.f32 %v6641_v62, %v2478_v4  ;;  %v2484_v13 = vadd.f32 %v2483_v21, %v2482_v34  ;;  %v2428_v57 = vmax.f32 %v2351_v20, 0.0  ;;  %v2353_v27 = vadd.f32 %v2352_v16, %v6616_v8  ;;  %v2403_v29 = vpop.f32.mrf.mxu1 }
 0x567   :  { %v2526_v42 = vmax.f32 %v2518_v14, 0.0  ;;  %v2519_v5 = vadd.f32 %v6641_v62, %v2472_v3  ;;  %v2430_v48 = vmax.f32 %v2402_v15, 0.0  ;;  %v2404_v63 = vadd.f32 %v2403_v29, %v6616_v8  ;;  %v2354_v10 = vpop.f32.mrf.mxu0 }
 0x568   :  { %v2528_v19 = vmax.f32 %v2520_v28, 0.0  ;;  %v2521_v38 = vadd.f32 %v6641_v62, %v2484_v13  ;;  %v2436_v1 = vmul.f32 %v2428_v57, %v2420_v18  ;;  %v2429_v55 = vmax.f32 %v2353_v27, 0.0  ;;  %v2405_v41 = vpop.f32.mrf.mxu1 }
 0x569   :  { %v2675_v59 = vmul.f32 -1.442695, %v2526_v42  ;;  %v2527_v25 = vmax.f32 %v2519_v5, 0.0  ;;  %v2438_v53 = vmul.f32 %v2430_v48, %v2422_v43  ;;  %v2431_v60 = vmax.f32 %v2404_v63, 0.0  ;;  %v2355_v45 = vpop.f32.mrf.mxu0 }
 0x56a   :  { %v2677_v40 = vmul.f32 -1.442695, %v2528_v19  ;;  %v2529_v26 = vmax.f32 %v2521_v38, 0.0  ;;  %v2444_v36 = vmax.f32 %v2436_v1, 0.0  ;;  %v2437_v58 = vmul.f32 %v2429_v55, %v2421_v0  ;;  %v2406_v50 = vpop.f32.mrf.mxu1 }
 0x56b   :  { %3584 = vpow2.f32 %v2675_v59  ;;  %v2676_v9 = vmul.f32 -1.442695, %v2527_v25  ;;  %v2446_v8 = vmax.f32 %v2438_v53, 0.0  ;;  %v2439_v34 = vmul.f32 %v2431_v60, %v2423_v31 }
 0x56c   :  { %3586 = vpow2.f32 %v2677_v40  ;;  %v2678_v22 = vmul.f32 -1.442695, %v2529_v26  ;;  %v2457_v18 = vmul.f32 %v6625_v6, %v2444_v36  ;;  %v2445_v54 = vmax.f32 %v2437_v58, 0.0 }
 0x56d   :  { %3588 = vpow2.f32 %v2676_v9  ;;  %v2459_v39 = vmul.f32 %v6625_v6, %v2446_v8  ;;  %v2447_v7 = vmax.f32 %v2439_v34, 0.0 }
 0x56e   :  { %3590 = vpow2.f32 %v2678_v22  ;;  %v2485_v43 = vrot.slane %v2457_v18, 4  ;;  %v2458_v51 = vmul.f32 %v6625_v6, %v2445_v54 }
 0x56f   :  { %v2497_v23 = vrot.slane %v2459_v39, 4  ;;  %v2460_v4 = vmul.f32 %v6625_v6, %v2447_v7  ;;  %v2152_v7 = vpop.permute.xlu1 %2151 }
 0x570   :  { %v2486_v21 = vadd.f32 %v2485_v43, %v2457_v18  ;;  %v2491_v0 = vrot.slane %v2458_v51, 4  ;;  %v2239_v43 = vadd.f32 %v6605_v56, %v2152_v7 }
 0x571   :  { %v2498_v20 = vadd.f32 %v2497_v23, %v2459_v39  ;;  %v2503_v49 = vrot.slane %v2460_v4, 4  ;;  %v2241_v23 = vadd.f32 %v6609_v12, %v2152_v7 }
 0x572   :  { %v2487_v14 = vrot.slane %v2486_v21, 2  ;;  %v2492_v3 = vadd.f32 %v2491_v0, %v2458_v51  ;;  %v2290_v51 = vadd.f32 %v6607_v2, %v2152_v7 }
 0x573   :  { %v2499_v31 = vrot.slane %v2498_v20, 2  ;;  %v2504_v15 = vadd.f32 %v2503_v49, %v2460_v4  ;;  %v2408_v4 = vmax.f32 %v2239_v43, 0.0  ;;  %v2409_v49 = vmax.f32 %v2241_v23, 0.0 }
 0x574   :  { %v2488_v16 = vadd.f32 %v2487_v14, %v2486_v21  ;;  %v2493_v28 = vrot.slane %v2492_v3, 2  ;;  %v2410_v0 = vmax.f32 %v2290_v51, 0.0 }
 0x575   :  { %v2500_v13 = vadd.f32 %v2499_v31, %v2498_v20  ;;  %v2505_v57 = vrot.slane %v2504_v15, 2 }
 0x576   :  { %v2489_v27 = vrot.slane %v2488_v16, 1  ;;  %v2494_v29 = vadd.f32 %v2493_v28, %v2492_v3 }
 0x577   :  { %v2501_v42 = vrot.slane %v2500_v13, 1  ;;  %v2506_v5 = vadd.f32 %v2505_v57, %v2504_v15 }
 0x578   :  { %v3585_v48 = vpop.eup %3584  ;;  %v2490_v63 = vadd.f32 %v2489_v27, %v2488_v16  ;;  %v2495_v10 = vrot.slane %v2494_v29, 1 }
 0x579   :  { %v3587_v6 = vpop.eup %3586  ;;  %v2558_v19 = vadd.f32 1.0, %v3585_v48  ;;  %v2502_v38 = vadd.f32 %v2501_v42, %v2500_v13  ;;  %v2507_v1 = vrot.slane %v2506_v5, 1  ;;  %v2392_v48 = vadd.f32 %v6633_v32, %v2152_v7 }
 0x57a   :  { %v3589_v55 = vpop.eup %3588  ;;  %v2560_v41 = vadd.f32 1.0, %v3587_v6  ;;  %v2522_v59 = vadd.f32 %v6641_v62, %v2490_v63  ;;  %v2496_v25 = vadd.f32 %v2495_v10, %v2494_v29  ;;  %v2343_v63 = vadd.f32 %v6635_v11, %v2152_v7 }
 0x57b   :  { %v3591_v53 = vpop.eup %3590  ;;  %3592 = vrcp.f32 %v2558_v19  ;;  %v2559_v60 = vadd.f32 1.0, %v3589_v55  ;;  %v2524_v45 = vadd.f32 %v6641_v62, %v2502_v38  ;;  %v2508_v40 = vadd.f32 %v2507_v1, %v2506_v5 }
 0x57c   :  { %3594 = vrcp.f32 %v2560_v41  ;;  %v2561_v26 = vadd.f32 1.0, %v3591_v53  ;;  %v2530_v36 = vmax.f32 %v2522_v59, 0.0  ;;  %v2523_v58 = vadd.f32 %v6641_v62, %v2496_v25 }
 0x57d   :  { %3596 = vrcp.f32 %v2559_v60  ;;  %v2532_v50 = vmax.f32 %v2524_v45, 0.0  ;;  %v2525_v9 = vadd.f32 %v6641_v62, %v2508_v40  ;;  %v2292_v62 = vadd.f32 %v6611_v47, %v2152_v7 }
 0x57e   :  { %3598 = vrcp.f32 %v2561_v26  ;;  %v2679_v8 = vmul.f32 -1.442695, %v2530_v36  ;;  %v2531_v34 = vmax.f32 %v2523_v58, 0.0  ;;  %v2394_v10 = vadd.f32 %v6637_v17, %v2152_v7 }
 0x57f   :  { %v2681_v22 = vmul.f32 -1.442695, %v2532_v50  ;;  %v2533_v18 = vmax.f32 %v2525_v9, 0.0  ;;  %v2411_v31 = vmax.f32 %v2292_v62, 0.0  ;;  %v2414_v38 = vmax.f32 %v2392_v48, 0.0 }
 0x580   :  { %3600 = vpow2.f32 %v2679_v8  ;;  %v2680_v54 = vmul.f32 -1.442695, %v2531_v34  ;;  %v2413_v55 = vmax.f32 %v2343_v63, 0.0  ;;  %v2415_v25 = vmax.f32 %v2394_v10, 0.0 }
 0x581   :  { %3602 = vpow2.f32 %v2681_v22  ;;  %v2682_v39 = vmul.f32 -1.442695, %v2533_v18 }
 0x582   :  { %3604 = vpow2.f32 %v2680_v54 }
 0x583   :  { %3606 = vpow2.f32 %v2682_v39 }
 0x588   :  { %v3593_v21 = vpop.eup %3592 }
 0x589   :  { %v3595_v20 = vpop.eup %3594  ;;  %v2582_v14 = vmul.f32 %v3593_v21, %v2408_v4 }
 0x58a   :  { %v3597_v3 = vpop.eup %3596  ;;  %v2584_v15 = vmul.f32 %v3595_v20, %v2410_v0 }
 0x58b   :  { %v3599_v16 = vpop.eup %3598  ;;  %v2590_v28 = vmul.f32 %v2582_v14, %v5115_v30  ;;  %v2583_v56 = vmul.f32 %v3597_v3, %v2409_v49 }
 0x58c   :  { %v2592_v13 = vmul.f32 %v2584_v15, %v5130_v44  ;;  %v2585_v2 = vmul.f32 %v3599_v16, %v2411_v31 }
 0x58d   :  { %v3601_v57 = vpop.eup %3600  ;;  %2598 = vst [vmem:[%s6715_s13] sm:$0xff] %v2590_v28  ;;  %v2591_v12 = vmul.f32 %v2583_v56, %v5121_v33 }
 0x58e   :  { %v3603_v47 = vpop.eup %3602  ;;  %2600 = vst [vmem:[%s6715_s13 + $0x10] sm:$0xff] %v2592_v13  ;;  %v2593_v27 = vmul.f32 %v2585_v2, %v5136_v52  ;;  %v2562_v29 = vadd.f32 1.0, %v3601_v57  ;;  %v2341_v52 = vadd.f32 %v6631_v24, %v2152_v7 }
 0x58f   :  { %v3605_v30 = vpop.eup %3604  ;;  %2599 = vst [vmem:[%s6715_s13 + $0x8] sm:$0xff] %v2591_v12  ;;  %v2564_v44 = vadd.f32 1.0, %v3603_v47 }
 0x590   :  { %v3607_v42 = vpop.eup %3606  ;;  %2601 = vst [vmem:[%s6715_s13 + $0x18] sm:$0xff] %v2593_v27  ;;  %3608 = vrcp.f32 %v2562_v29  ;;  %v2563_v33 = vadd.f32 1.0, %v3605_v30  ;;  %v2412_v6 = vmax.f32 %v2341_v52, 0.0 }
 0x591   :  { %3610 = vrcp.f32 %v2564_v44  ;;  %v2565_v5 = vadd.f32 1.0, %v3607_v42 }
 0x592   :  { %3612 = vrcp.f32 %v2563_v33 }
 0x593   :  { %3614 = vrcp.f32 %v2565_v5 }
 0x59d   :  { %v3609_v19 = vpop.eup %3608 }
 0x59e   :  { %v3611_v1 = vpop.eup %3610  ;;  %v2586_v41 = vmul.f32 %v3609_v19, %v2412_v6 }
 0x59f   :  { %v3613_v59 = vpop.eup %3612  ;;  %v2588_v53 = vmul.f32 %v3611_v1, %v2414_v38 }
 0x5a0   :  { %v3615_v60 = vpop.eup %3614  ;;  %v2594_v45 = vmul.f32 %v2586_v41, %v5180_v37  ;;  %v2587_v40 = vmul.f32 %v3613_v59, %v2413_v55 }
 0x5a1   :  { %v2596_v24 = vmul.f32 %v2588_v53, %v5188_v46  ;;  %v2589_v32 = vmul.f32 %v3615_v60, %v2415_v25 }
 0x5a2   :  { %2602 = vst [vmem:[%s6715_s13 + $0x20] sm:$0xff] %v2594_v45  ;;  %v2595_v11 = vmul.f32 %v2587_v40, %v5184_v61 }
 0x5a3   :  { %2604 = vst [vmem:[%s6715_s13 + $0x30] sm:$0xff] %v2596_v24  ;;  %v2597_v17 = vmul.f32 %v2589_v32, %v5192_v35 }
 0x5a4   :  { %2603 = vst [vmem:[%s6715_s13 + $0x28] sm:$0xff] %v2595_v11 }
 0x5a5   :  { %2605 = vst [vmem:[%s6715_s13 + $0x38] sm:$0xff] %v2597_v17 }

</bundles_post_ra>
